<compile_context>
chip_gen: v5e
topology: v5e:2x2
jax: 0.10.0
libtpu: 0.0.40
codegen_flags: <defaults>
</compile_context>

<pallas_src>
import math
from functools import partial

import jax
import jax.numpy as jnp
from jax.experimental import pallas as pl
from jax.experimental.pallas import tpu as pltpu


_EPS = 1e-5
_LANE = 128


def _round_up(x, m):
    return ((x + m - 1) // m) * m


def get_padding_elem(L_in: int, stride: int, kernel_size: int, dilation: int):
    if stride > 1:
        n_steps = math.ceil((L_in - kernel_size * dilation) / stride + 1)
        padding = [kernel_size // 2, kernel_size // 2]
    else:
        L_out = (L_in - dilation * (kernel_size - 1) - 1) // stride + 1
        padding = [(L_in - L_out) // 2, (L_in - L_out) // 2]
    return padding


def _hw_config():
    """Pick (vmem_limit_bytes, default time tile) per TPU generation."""
    vmem_cap = None
    try:
        vmem_cap = int(pltpu.get_tpu_info().vmem_capacity_bytes)
    except Exception:
        vmem_cap = None
    if vmem_cap is None:
        try:
            kind = jax.devices()[0].device_kind.lower()
            vmem_cap = (128 * 1024 * 1024
                        if any(t in kind for t in ("v4", "v5", "v6"))
                        else 64 * 1024 * 1024)
        except Exception:
            vmem_cap = 64 * 1024 * 1024
    if vmem_cap >= 128 * 1024 * 1024:          # v5e / v6e: 128 MiB physical VMEM
        return 96 * 1024 * 1024, 1024
    return 48 * 1024 * 1024, 512               # v7x: 64 MiB per TensorCore


# -----------------------------------------------------------------------------
# Pass 1: im2col slab -> single MXU contraction + bias + ReLU
#         + per-tile per-channel BatchNorm partial statistics (sum, sumsq).
# -----------------------------------------------------------------------------
def _conv_relu_stats_kernel(x_ref, xh_ref, w_ref, b_ref, act_ref, stat_ref,
                            slab_ref, *, K, dilation, TM, C_in_p, L_valid,
                            precision):
    # Build the (TM, K*C_in_p) im2col slab: tap k is the time window shifted by
    # k*dilation.  All offsets are static; every store is lane-aligned because
    # C_in_p is a multiple of 128.
    for k in range(K):
        off = k * dilation
        col = k * C_in_p
        if off == 0:
            slab_ref[:, pl.ds(col, C_in_p)] = x_ref[0]
        else:
            if TM - off > 0:
                slab_ref[pl.ds(0, TM - off), pl.ds(col, C_in_p)] = (
                    x_ref[0, pl.ds(off, TM - off), :])
            slab_ref[pl.ds(TM - off, off), pl.ds(col, C_in_p)] = (
                xh_ref[0, pl.ds(0, off), :])

    # One MXU contraction over K*C_in: all taps accumulate in the MXU f32 path.
    acc = jnp.dot(slab_ref[...], w_ref[...],
                  preferred_element_type=jnp.float32, precision=precision)
    act = jnp.maximum(acc + b_ref[...], 0.0)
    act_ref[0] = act.astype(act_ref.dtype)

    # Per-channel partial sums for BatchNorm; zero-padded tail rows of the last
    # tile are masked out of the statistics.
    t = pl.program_id(1)
    row = t * TM + jax.lax.broadcasted_iota(jnp.int32, (TM, 1), 0)
    act_m = jnp.where(row < L_valid, act, 0.0)
    stat_ref[0, 0] = jnp.concatenate(
        [jnp.sum(act_m, axis=0, keepdims=True),
         jnp.sum(act_m * act_m, axis=0, keepdims=True)], axis=0)


# -----------------------------------------------------------------------------
# Pass 2: y = act * scale + shift (BN folded), transposed in-kernel so the
#         output is written directly in (B, C, L) layout.
# -----------------------------------------------------------------------------
def _bn_apply_transpose_kernel(act_ref, scale_ref, shift_ref, o_ref):
    y = act_ref[0].astype(jnp.float32) * scale_ref[...] + shift_ref[...]
    o_ref[0] = jnp.transpose(y, (1, 0)).astype(o_ref.dtype)


@partial(jax.jit, static_argnames=("kernel_size", "dilation", "tm", "compute_dtype"))
def tdnn_block(x, weight, bias, gamma, beta, *, kernel_size, dilation,
               tm=None, compute_dtype=jnp.bfloat16):
    """TDNNBlock forward. x: (B, C_in, L) f32 -> (B, C_out, L_out) f32.

    stride=1, groups=1; BatchNorm uses training-mode batch statistics.
    compute_dtype=f32 (+ HIGHEST MXU precision) is a test-only path.
    """
    # TODO(synk): BatchNorm1d running_mean/running_var (momentum) buffers are not
    # tracked; they do not affect the training-mode forward output computed here.
    B, C_in, L = x.shape
    C_out = weight.shape[0]
    K, d = kernel_size, dilation
    halo = d * (K - 1)

    vmem_limit, tm_default = _hw_config()
    if tm is None:
        tm = tm_default

    # --- 'same' reflect padding (stride==1 branch of get_padding_elem) -------
    pad_l, pad_r = get_padding_elem(L, 1, K, d)
    if pad_l >= L or pad_r >= L:
        raise ValueError(
            f"Reflect padding requires pad < length (pad=({pad_l},{pad_r}), L={L}).")
    x_nlc = jnp.transpose(x, (0, 2, 1))                          # (B, L, C_in)
    x_pad = jnp.pad(x_nlc, ((0, 0), (pad_l, pad_r), (0, 0)), mode="reflect")
    L_conv = L + pad_l + pad_r - halo                            # conv output length

    # --- tiling parameters ----------------------------------------------------
    C_in_p = _round_up(C_in, _LANE)              # lane-aligned im2col columns
    C_out_p = _round_up(C_out, _LANE)            # lane-dense output channels
    halo_blk = max(16, _round_up(halo, 16))      # sublane-aligned halo block
    g = math.lcm(halo_blk, _LANE)                # TM granularity: halo map + transpose
    TM = _round_up(min(max(tm, g), _round_up(L_conv, g)), g)
    nLT = pl.cdiv(L_conv, TM)
    L_out_p = nLT * TM
    L_tot = L_out_p + halo_blk

    # Zero-pad channels/time so every (main + halo) block is in-bounds; cast the
    # MXU inputs (f32 accumulation happens inside the kernel).
    x_pad = jnp.pad(x_pad, ((0, 0), (0, L_tot - (L_conv + halo)),
                            (0, C_in_p - C_in)))
    x_pad = x_pad.astype(compute_dtype)

    # weight (C_out, C_in, K) -> (K*C_in_p, C_out_p); bias -> (1, C_out_p) f32
    w_kio = jnp.transpose(weight, (2, 1, 0)).astype(compute_dtype)
    w_kio = jnp.pad(w_kio, ((0, 0), (0, C_in_p - C_in), (0, C_out_p - C_out)))
    w2d = w_kio.reshape(K * C_in_p, C_out_p)
    b2d = jnp.pad(bias.astype(jnp.float32), (0, C_out_p - C_out)).reshape(1, C_out_p)

    mxu_precision = (jax.lax.Precision.HIGHEST if compute_dtype == jnp.float32
                     else jax.lax.Precision.DEFAULT)

    # Resident weight block: single-buffer it when large (a K=5, C=1536 bf16
    # weight is ~22.5 MiB; double-buffering would not fit v7x's 64 MiB VMEM).
    w_bytes = int(w2d.size) * jnp.dtype(w2d.dtype).itemsize
    w_spec = pl.BlockSpec((K * C_in_p, C_out_p), lambda b, t: (0, 0))
    if w_bytes >= 4 * 1024 * 1024:
        try:
            w_spec = pl.BlockSpec((K * C_in_p, C_out_p), lambda b, t: (0, 0),
                                  pipeline_mode=pl.Buffered(1))
        except Exception:
            pass  # older API: fall back to default (double-buffered) spec

    # --- pass 1: conv (one contraction) + ReLU + partial stats ----------------
    kernel1 = partial(_conv_relu_stats_kernel, K=K, dilation=d, TM=TM,
                      C_in_p=C_in_p, L_valid=L_conv, precision=mxu_precision)
    act, stats = pl.pallas_call(
        kernel1,
        grid=(B, nLT),
        in_specs=[
            pl.BlockSpec((1, TM, C_in_p), lambda b, t: (b, t, 0)),              # main tile
            pl.BlockSpec((1, halo_blk, C_in_p),
                         lambda b, t: (b, (t + 1) * (TM // halo_blk), 0)),      # halo rows
            w_spec,                                                             # resident W
            pl.BlockSpec((1, C_out_p), lambda b, t: (0, 0)),                    # bias
        ],
        out_specs=[
            pl.BlockSpec((1, TM, C_out_p), lambda b, t: (b, t, 0)),             # activation
            pl.BlockSpec((1, 1, 2, C_out_p), lambda b, t: (b, t, 0, 0)),        # sum/sumsq
        ],
        out_shape=[
            jax.ShapeDtypeStruct((B, L_out_p, C_out_p), compute_dtype),
            jax.ShapeDtypeStruct((B, nLT, 2, C_out_p), jnp.float32),
        ],
        scratch_shapes=[pltpu.VMEM((TM, K * C_in_p), compute_dtype)],           # im2col slab
        compiler_params=pltpu.CompilerParams(
            dimension_semantics=("parallel", "parallel"),
            vmem_limit_bytes=vmem_limit),
    )(x_pad, x_pad, w2d, b2d)

    # --- fold BN statistics into one per-channel scale & shift (tiny, XLA) ----
    # NOTE: var = E[x^2] - mean^2 in f32 with a clamp; can lose precision when
    # mean >> std (post-ReLU channels), acceptable for forward BN here.
    m = B * L_conv
    s = jnp.sum(stats, axis=(0, 1))                              # (2, C_out_p)
    mean = s[0] / m
    var = jnp.maximum(s[1] / m - mean * mean, 0.0)
    inv = jax.lax.rsqrt(var + _EPS)
    gamma_p = jnp.pad(gamma.astype(jnp.float32), (0, C_out_p - C_out))
    beta_p = jnp.pad(beta.astype(jnp.float32), (0, C_out_p - C_out))
    scale = (gamma_p * inv).reshape(1, C_out_p)
    shift = (beta_p - mean * gamma_p * inv).reshape(1, C_out_p)

    # --- pass 2: fused multiply-add + in-kernel transpose to (B, C, L) --------
    out = pl.pallas_call(
        _bn_apply_transpose_kernel,
        grid=(B, nLT),
        in_specs=[
            pl.BlockSpec((1, TM, C_out_p), lambda b, t: (b, t, 0)),
            pl.BlockSpec((1, C_out_p), lambda b, t: (0, 0)),
            pl.BlockSpec((1, C_out_p), lambda b, t: (0, 0)),
        ],
        out_specs=pl.BlockSpec((1, C_out_p, TM), lambda b, t: (b, 0, t)),
        out_shape=jax.ShapeDtypeStruct((B, C_out_p, L_out_p), jnp.float32),
        compiler_params=pltpu.CompilerParams(
            dimension_semantics=("parallel", "parallel"),
            vmem_limit_bytes=vmem_limit),
    )(act, scale, shift)

    return out[:, :C_out, :L_conv]                               # (B, C_out, L_conv)


# -----------------------------------------------------------------------------
# Pure-JAX/XLA reference (for correctness checking only)
# -----------------------------------------------------------------------------
def tdnn_reference(x, weight, bias, gamma, beta, *, kernel_size, dilation, eps=_EPS):
    B, C_in, L = x.shape
    K, d = kernel_size, dilation
    pad_l, pad_r = get_padding_elem(L, 1, K, d)
    x_pad = jnp.pad(x, ((0, 0), (0, 0), (pad_l, pad_r)), mode="reflect")
    Lc = x_pad.shape[-1] - d * (K - 1)
    wx = jnp.zeros((B, weight.shape[0], Lc), jnp.float32)
    for k in range(K):
        xk = x_pad[:, :, k * d:k * d + Lc]
        wx = wx + jnp.einsum("bil,oi->bol", xk, weight[:, :, k],
                             precision=jax.lax.Precision.HIGHEST)
    act = jnp.maximum(wx + bias[None, :, None], 0.0)
    mean = jnp.mean(act, axis=(0, 2), keepdims=True)
    var = jnp.mean((act - mean) ** 2, axis=(0, 2), keepdims=True)
    return ((act - mean) * jax.lax.rsqrt(var + eps) * gamma[None, :, None]
            + beta[None, :, None])


if __name__ == "__main__":
    # Small deterministic example: TDNNBlock(in=4, out=8, kernel_size=3, dilation=2)
    B, C_in, C_out, L, K, DIL = 2, 4, 8, 16, 3, 2

    key = jax.random.PRNGKey(0)
    kx, kw, kb, kg, kbt = jax.random.split(key, 5)
    x = jax.random.normal(kx, (B, C_in, L), dtype=jnp.float32)
    weight = 0.1 * jax.random.normal(kw, (C_out, C_in, K), dtype=jnp.float32)
    bias = 0.1 * jax.random.normal(kb, (C_out,), dtype=jnp.float32)
    gamma = 1.0 + 0.1 * jax.random.normal(kg, (C_out,), dtype=jnp.float32)
    beta = 0.1 * jax.random.normal(kbt, (C_out,), dtype=jnp.float32)

    y_ref = tdnn_reference(x, weight, bias, gamma, beta, kernel_size=K, dilation=DIL)

    # Test-only f32 MXU path: tight check against the pure-JAX reference.
    y32 = tdnn_block(x, weight, bias, gamma, beta, kernel_size=K, dilation=DIL,
                     compute_dtype=jnp.float32)
    jax.block_until_ready(y32)
    assert y32.shape == y_ref.shape, (y32.shape, y_ref.shape)
    assert jnp.allclose(y32, y_ref, atol=2e-3, rtol=2e-3), \
        float(jnp.max(jnp.abs(y32 - y_ref)))

    # Production path (bf16 MXU inputs & intermediate, f32 accumulation/BN math).
    y = tdnn_block(x, weight, bias, gamma, beta, kernel_size=K, dilation=DIL)
    jax.block_until_ready(y)
    assert y.shape == y_ref.shape, (y.shape, y_ref.shape)
    assert bool(jnp.all(jnp.isfinite(y)))
    assert jnp.allclose(y, y_ref, atol=1e-1, rtol=1e-1), \
        float(jnp.max(jnp.abs(y - y_ref)))

    print("KERNEL_OK")
</pallas_src>

<mosaic_0001>
module attributes {stable_mosaic.version = 11 : i64} {
  func.func @_conv_relu_stats_kernel(%arg0: i32, %arg1: i32, %arg2: memref<1x128x128xf32, #tpu.memory_space<vmem>>, %arg3: memref<1x16x128xf32, #tpu.memory_space<vmem>>, %arg4: memref<384x128xf32, #tpu.memory_space<vmem>>, %arg5: memref<1x128xf32, #tpu.memory_space<vmem>>, %arg6: memref<1x128x128xf32, #tpu.memory_space<vmem>>, %arg7: memref<1x1x2x128xf32, #tpu.memory_space<vmem>>, %arg8: memref<128x384xf32, #tpu.memory_space<vmem>>) attributes {dimension_semantics = [#tpu.dimension_semantics<parallel>, #tpu.dimension_semantics<parallel>], iteration_bounds = array<i64: 2, 1>, scalar_prefetch = 0 : i64, scratch_operands = 1 : i64, tpu.core_type = #tpu.core_type<tc>, window_params = [{transform_indices = @transform_0, window_bounds = array<i64: 1, 128, 128>}, {transform_indices = @transform_1, window_bounds = array<i64: 1, 16, 128>}, {pipeline_mode = #tpu.pipeline_mode<synchronous>, transform_indices = @transform_2, window_bounds = array<i64: 384, 128>}, {pipeline_mode = #tpu.pipeline_mode<synchronous>, transform_indices = @transform_3, window_bounds = array<i64: 1, 128>}, {transform_indices = @transform_4, window_bounds = array<i64: 1, 128, 128>}, {transform_indices = @transform_5, window_bounds = array<i64: 1, 1, 2, 128>}]} {
    %c0 = arith.constant 0 : index
    %c0_0 = arith.constant 0 : index
    %c0_1 = arith.constant 0 : index
    %0 = vector.load %arg2[%c0, %c0_0, %c0_1] : memref<1x128x128xf32, #tpu.memory_space<vmem>>, vector<1x128x128xf32>
    %1 = vector.shape_cast %0 : vector<1x128x128xf32> to vector<128x128xf32>
    %c0_2 = arith.constant 0 : index
    %c0_3 = arith.constant 0 : index
    %2 = vector.load %arg8[%c0_2, %c0_3] : memref<128x384xf32, #tpu.memory_space<vmem>>, vector<128x128xf32>
    tpu.vector_store %arg8[%c0_2, %c0_3], %1 {strides = array<i32>} : memref<128x384xf32, #tpu.memory_space<vmem>>, vector<128x128xf32>,
    %c0_4 = arith.constant 0 : index
    %c2 = arith.constant 2 : index
    %c0_5 = arith.constant 0 : index
    %3 = vector.load %arg2[%c0_4, %c2, %c0_5] : memref<1x128x128xf32, #tpu.memory_space<vmem>>, vector<1x126x128xf32>
    %4 = vector.shape_cast %3 : vector<1x126x128xf32> to vector<126x128xf32>
    %c0_6 = arith.constant 0 : index
    %c128 = arith.constant 128 : index
    %5 = vector.load %arg8[%c0_6, %c128] : memref<128x384xf32, #tpu.memory_space<vmem>>, vector<126x128xf32>
    tpu.vector_store %arg8[%c0_6, %c128], %4 {strides = array<i32>} : memref<128x384xf32, #tpu.memory_space<vmem>>, vector<126x128xf32>,
    %c0_7 = arith.constant 0 : index
    %c0_8 = arith.constant 0 : index
    %c0_9 = arith.constant 0 : index
    %6 = vector.load %arg3[%c0_7, %c0_8, %c0_9] : memref<1x16x128xf32, #tpu.memory_space<vmem>>, vector<1x2x128xf32>
    %7 = vector.shape_cast %6 : vector<1x2x128xf32> to vector<2x128xf32>
    %c126 = arith.constant 126 : index
    %c128_10 = arith.constant 128 : index
    %8 = vector.load %arg8[%c126, %c128_10] : memref<128x384xf32, #tpu.memory_space<vmem>>, vector<2x128xf32>
    tpu.vector_store %arg8[%c126, %c128_10], %7 {strides = array<i32>} : memref<128x384xf32, #tpu.memory_space<vmem>>, vector<2x128xf32>,
    %c0_11 = arith.constant 0 : index
    %c4 = arith.constant 4 : index
    %c0_12 = arith.constant 0 : index
    %9 = vector.load %arg2[%c0_11, %c4, %c0_12] : memref<1x128x128xf32, #tpu.memory_space<vmem>>, vector<1x124x128xf32>
    %10 = vector.shape_cast %9 : vector<1x124x128xf32> to vector<124x128xf32>
    %c0_13 = arith.constant 0 : index
    %c256 = arith.constant 256 : index
    %11 = vector.load %arg8[%c0_13, %c256] : memref<128x384xf32, #tpu.memory_space<vmem>>, vector<124x128xf32>
    tpu.vector_store %arg8[%c0_13, %c256], %10 {strides = array<i32>} : memref<128x384xf32, #tpu.memory_space<vmem>>, vector<124x128xf32>,
    %c0_14 = arith.constant 0 : index
    %c0_15 = arith.constant 0 : index
    %c0_16 = arith.constant 0 : index
    %12 = vector.load %arg3[%c0_14, %c0_15, %c0_16] : memref<1x16x128xf32, #tpu.memory_space<vmem>>, vector<1x4x128xf32>
    %13 = vector.shape_cast %12 : vector<1x4x128xf32> to vector<4x128xf32>
    %c124 = arith.constant 124 : index
    %c256_17 = arith.constant 256 : index
    %14 = vector.load %arg8[%c124, %c256_17] : memref<128x384xf32, #tpu.memory_space<vmem>>, vector<4x128xf32>
    tpu.vector_store %arg8[%c124, %c256_17], %13 {strides = array<i32>} : memref<128x384xf32, #tpu.memory_space<vmem>>, vector<4x128xf32>,
    %c0_18 = arith.constant 0 : index
    %c0_19 = arith.constant 0 : index
    %15 = vector.load %arg8[%c0_18, %c0_19] : memref<128x384xf32, #tpu.memory_space<vmem>>, vector<128x384xf32>
    %c0_20 = arith.constant 0 : index
    %c0_21 = arith.constant 0 : index
    %16 = vector.load %arg4[%c0_20, %c0_21] : memref<384x128xf32, #tpu.memory_space<vmem>>, vector<384x128xf32>
    %cst = arith.constant dense<0.000000e+00> : vector<128x128xf32>
    %17 = tpu.matmul %15, %16, %cst {dimension_numbers = #tpu.dot_dimension_numbers<[1], [0], [0], [1], [0, 0, 1, 1], [], []>, precision = #tpu.contract_precision<fp32>} : vector<128x384xf32>, vector<384x128xf32>, vector<128x128xf32> -> vector<128x128xf32>
    %c0_22 = arith.constant 0 : index
    %c0_23 = arith.constant 0 : index
    %18 = vector.load %arg5[%c0_22, %c0_23] : memref<1x128xf32, #tpu.memory_space<vmem>>, vector<1x128xf32>
    %19 = vector.broadcast %18 : vector<1x128xf32> to vector<128x128xf32>
    %20 = arith.addf %17, %19 : vector<128x128xf32>
    %cst_24 = arith.constant 0.000000e+00 : f32
    %21 = vector.broadcast %cst_24 : f32 to vector<128x128xf32>
    %22 = arith.maximumf %20, %21 : vector<128x128xf32>
    %c0_25 = arith.constant 0 : index
    %c0_26 = arith.constant 0 : index
    %c0_27 = arith.constant 0 : index
    %23 = vector.load %arg6[%c0_25, %c0_26, %c0_27] : memref<1x128x128xf32, #tpu.memory_space<vmem>>, vector<1x128x128xf32>
    %24 = vector.shape_cast %23 : vector<1x128x128xf32> to vector<128x128xf32>
    %25 = vector.shape_cast %22 : vector<128x128xf32> to vector<1x128x128xf32>
    tpu.vector_store %arg6[%c0_25, %c0_26, %c0_27], %25 {strides = array<i32>} : memref<1x128x128xf32, #tpu.memory_space<vmem>>, vector<1x128x128xf32>,
    %c128_i32 = arith.constant 128 : i32
    %26 = arith.muli %arg1, %c128_i32 : i32
    %27 = tpu.iota {dimensions = array<i32: 0>} : vector<128x1xi32>
    %28 = vector.broadcast %26 : i32 to vector<128x1xi32>
    %29 = arith.addi %28, %27 : vector<128x1xi32>
    %c16_i32 = arith.constant 16 : i32
    %30 = vector.broadcast %c16_i32 : i32 to vector<128x1xi32>
    %31 = arith.cmpi slt, %29, %30 : vector<128x1xi32>
    %cst_28 = arith.constant 0.000000e+00 : f32
    %32 = vector.shape_cast %31 : vector<128x1xi1> to vector<128x1xi1>
    %33 = vector.broadcast %32 : vector<128x1xi1> to vector<128x128xi1>
    %34 = vector.broadcast %cst_28 : f32 to vector<128x128xf32>
    %35 = arith.select %33, %22, %34 : vector<128x128xi1>, vector<128x128xf32>
    %cst_29 = arith.constant dense<0.000000e+00> : vector<128xf32>
    %36 = vector.multi_reduction <add>, %35, %cst_29 [0] : vector<128x128xf32> to vector<128xf32>
    %37 = vector.shape_cast %36 : vector<128xf32> to vector<1x128xf32>
    %38 = arith.mulf %35, %35 : vector<128x128xf32>
    %cst_30 = arith.constant dense<0.000000e+00> : vector<128xf32>
    %39 = vector.multi_reduction <add>, %38, %cst_30 [0] : vector<128x128xf32> to vector<128xf32>
    %40 = vector.shape_cast %39 : vector<128xf32> to vector<1x128xf32>
    %41 = tpu.concatenate %37, %40 in 0 : vector<1x128xf32>, vector<1x128xf32> -> vector<2x128xf32>
    %c0_31 = arith.constant 0 : index
    %c0_32 = arith.constant 0 : index
    %c0_33 = arith.constant 0 : index
    %c0_34 = arith.constant 0 : index
    %42 = vector.load %arg7[%c0_31, %c0_32, %c0_33, %c0_34] : memref<1x1x2x128xf32, #tpu.memory_space<vmem>>, vector<1x1x2x128xf32>
    %43 = vector.shape_cast %42 : vector<1x1x2x128xf32> to vector<2x128xf32>
    %44 = vector.shape_cast %41 : vector<2x128xf32> to vector<1x1x2x128xf32>
    tpu.vector_store %arg7[%c0_31, %c0_32, %c0_33, %c0_34], %44 {strides = array<i32>} : memref<1x1x2x128xf32, #tpu.memory_space<vmem>>, vector<1x1x2x128xf32>,
    return
  }
  func.func @transform_0(%arg0: i32, %arg1: i32) -> (i32, i32, i32) {
    %c0_i32 = arith.constant 0 : i32
    %c0_i32_0 = arith.constant 0 : i32
    return %arg0, %arg1, %c0_i32 : i32, i32, i32
  }
  func.func @transform_1(%arg0: i32, %arg1: i32) -> (i32, i32, i32) {
    %c1_i32 = arith.constant 1 : i32
    %0 = arith.addi %arg1, %c1_i32 : i32
    %c8_i32 = arith.constant 8 : i32
    %1 = arith.muli %0, %c8_i32 : i32
    %c0_i32 = arith.constant 0 : i32
    %c0_i32_0 = arith.constant 0 : i32
    return %arg0, %1, %c0_i32 : i32, i32, i32
  }
  func.func @transform_2(%arg0: i32, %arg1: i32) -> (i32, i32) {
    %c0_i32 = arith.constant 0 : i32
    %c0_i32_0 = arith.constant 0 : i32
    %c0_i32_1 = arith.constant 0 : i32
    return %c0_i32, %c0_i32_0 : i32, i32
  }
  func.func @transform_3(%arg0: i32, %arg1: i32) -> (i32, i32) {
    %c0_i32 = arith.constant 0 : i32
    %c0_i32_0 = arith.constant 0 : i32
    %c0_i32_1 = arith.constant 0 : i32
    return %c0_i32, %c0_i32_0 : i32, i32
  }
  func.func @transform_4(%arg0: i32, %arg1: i32) -> (i32, i32, i32) {
    %c0_i32 = arith.constant 0 : i32
    %c0_i32_0 = arith.constant 0 : i32
    return %arg0, %arg1, %c0_i32 : i32, i32, i32
  }
  func.func @transform_5(%arg0: i32, %arg1: i32) -> (i32, i32, i32, i32) {
    %c0_i32 = arith.constant 0 : i32
    %c0_i32_0 = arith.constant 0 : i32
    %c0_i32_1 = arith.constant 0 : i32
    return %arg0, %arg1, %c0_i32, %c0_i32_0 : i32, i32, i32, i32
  }
}

module attributes {stable_mosaic.version = 11 : i64} {
  func.func @_bn_apply_transpose_kernel(%arg0: i32, %arg1: i32, %arg2: memref<1x128x128xf32, #tpu.memory_space<vmem>>, %arg3: memref<1x128xf32, #tpu.memory_space<vmem>>, %arg4: memref<1x128xf32, #tpu.memory_space<vmem>>, %arg5: memref<1x128x128xf32, #tpu.memory_space<vmem>>) attributes {dimension_semantics = [#tpu.dimension_semantics<parallel>, #tpu.dimension_semantics<parallel>], iteration_bounds = array<i64: 2, 1>, scalar_prefetch = 0 : i64, scratch_operands = 0 : i64, tpu.core_type = #tpu.core_type<tc>, window_params = [{transform_indices = @transform_0, window_bounds = array<i64: 1, 128, 128>}, {pipeline_mode = #tpu.pipeline_mode<synchronous>, transform_indices = @transform_1, window_bounds = array<i64: 1, 128>}, {pipeline_mode = #tpu.pipeline_mode<synchronous>, transform_indices = @transform_2, window_bounds = array<i64: 1, 128>}, {transform_indices = @transform_3, window_bounds = array<i64: 1, 128, 128>}]} {
    %c0 = arith.constant 0 : index
    %c0_0 = arith.constant 0 : index
    %c0_1 = arith.constant 0 : index
    %0 = vector.load %arg2[%c0, %c0_0, %c0_1] : memref<1x128x128xf32, #tpu.memory_space<vmem>>, vector<1x128x128xf32>
    %1 = vector.shape_cast %0 : vector<1x128x128xf32> to vector<128x128xf32>
    %c0_2 = arith.constant 0 : index
    %c0_3 = arith.constant 0 : index
    %2 = vector.load %arg3[%c0_2, %c0_3] : memref<1x128xf32, #tpu.memory_space<vmem>>, vector<1x128xf32>
    %3 = vector.broadcast %2 : vector<1x128xf32> to vector<128x128xf32>
    %4 = arith.mulf %1, %3 : vector<128x128xf32>
    %c0_4 = arith.constant 0 : index
    %c0_5 = arith.constant 0 : index
    %5 = vector.load %arg4[%c0_4, %c0_5] : memref<1x128xf32, #tpu.memory_space<vmem>>, vector<1x128xf32>
    %6 = vector.broadcast %5 : vector<1x128xf32> to vector<128x128xf32>
    %7 = arith.addf %4, %6 : vector<128x128xf32>
    %8 = tpu.transpose %7, [1, 0] : vector<128x128xf32> -> vector<128x128xf32>
    %c0_6 = arith.constant 0 : index
    %c0_7 = arith.constant 0 : index
    %c0_8 = arith.constant 0 : index
    %9 = vector.load %arg5[%c0_6, %c0_7, %c0_8] : memref<1x128x128xf32, #tpu.memory_space<vmem>>, vector<1x128x128xf32>
    %10 = vector.shape_cast %9 : vector<1x128x128xf32> to vector<128x128xf32>
    %11 = vector.shape_cast %8 : vector<128x128xf32> to vector<1x128x128xf32>
    tpu.vector_store %arg5[%c0_6, %c0_7, %c0_8], %11 {strides = array<i32>} : memref<1x128x128xf32, #tpu.memory_space<vmem>>, vector<1x128x128xf32>,
    return
  }
  func.func @transform_0(%arg0: i32, %arg1: i32) -> (i32, i32, i32) {
    %c0_i32 = arith.constant 0 : i32
    %c0_i32_0 = arith.constant 0 : i32
    return %arg0, %arg1, %c0_i32 : i32, i32, i32
  }
  func.func @transform_1(%arg0: i32, %arg1: i32) -> (i32, i32) {
    %c0_i32 = arith.constant 0 : i32
    %c0_i32_0 = arith.constant 0 : i32
    %c0_i32_1 = arith.constant 0 : i32
    return %c0_i32, %c0_i32_0 : i32, i32
  }
  func.func @transform_2(%arg0: i32, %arg1: i32) -> (i32, i32) {
    %c0_i32 = arith.constant 0 : i32
    %c0_i32_0 = arith.constant 0 : i32
    %c0_i32_1 = arith.constant 0 : i32
    return %c0_i32, %c0_i32_0 : i32, i32
  }
  func.func @transform_3(%arg0: i32, %arg1: i32) -> (i32, i32, i32) {
    %c0_i32 = arith.constant 0 : i32
    %c0_i32_0 = arith.constant 0 : i32
    return %arg0, %c0_i32, %arg1 : i32, i32, i32
  }
}

</mosaic_0001>

<bundles_post_ra>
// kernel: tdnn_block.3
= control target key start
LH: loop header
LB: loop body
LE: loop exit
PB: predicated region body
PF: predicated region fallthrough
CT: control target
= control target key end

     0   :  { %s477_s12 = smov 0   ;;  %s479_s13 = smov 0   ;;  %s595_s0 = inlined_call_operand.vmem [shape: f32[2,128,128], index: 0, kind: input, shape index: {}]   ;;  %s596_s1 = inlined_call_operand.vmem [shape: f32[1,128], index: 1, kind: input, shape index: {}]   ;;  %s597_s2 = inlined_call_operand.vmem [shape: f32[1,128], index: 2, kind: input, shape index: {}]   ;;  %s598_s3 = inlined_call_operand.vmem [shape: f32[2,128,128], index: 3, kind: output, shape index: {}]  }
   0x1   :  { %s481_s14 = smov 0  }
   0x2 LB: > { %s25_s15 = sadd.s32 1, %s451_s13  ;;  %p398_p0 = scmp.ge.s32.totalorder %s455_s14, 1  ;;  %s455_s14 = sphi %s481_s14, %s13_s14   ;;  %s451_s13 = sphi %s479_s13, %s600_s13   ;;  %s447_s12 = sphi %s477_s12, %s599_s12  }
   0x3   : > { %p27_p1 = scmp.ge.s32.totalorder %s25_s15, 2  ;;  %p158_p2 = scmp.lt.s32.totalorder %s455_s14, 3 }
   0x5   : > { %s602_s15 = smov (%p27_p1, %s25_s15), 0  ;;  %p159_p3 = pnand %p398_p0, %p158_p2 }
   0x6   : > { %p190_p4 = scmp.lt.s32.totalorder (!%p159_p3), %s447_s12, 1 }
   0x7   : > { %162 = sbr.rel (%p159_p3) target bundleno = 306 (0x132), region = 32 }
   0xc   : > { %s604_s12 = smov (!%p190_p4, %s447_s12), 1  ;;  %v500_v0 = vld [vmem:[%s596_s1] ss:$0 sm:$0xff] }
   0xd   : > { %s405_s18 = sshll.u32 %s604_s12, 7  ;;  %v513_v1 = vld [vmem:[%s597_s2] ss:$0 sm:$0xff] }
   0xe   : > { %s508_s21 = scalar_lea.vmem %s595_s0, %s405_s18  ;;  %s568_s26 = scalar_lea.vmem %s598_s3, %s405_s18 }
   0xf   : > { %v207_v2 = vld [vmem:[%s508_s21] sm:$0xff]  ;;  %v208_v4 = vld [vmem:[%s508_s21 + $0x8] sm:$0xff]  ;;  %v209_v8 = vld [vmem:[%s508_s21 + $0x10] sm:$0xff] }
  0x10   : > { %v227_v3 = vmul.f32 %v500_v0, %v207_v2  ;;  %v228_v6 = vmul.f32 %v500_v0, %v208_v4  ;;  %v229_v9 = vmul.f32 %v500_v0, %v209_v8  ;;  %v210_v11 = vld [vmem:[%s508_s21 + $0x18] sm:$0xff]  ;;  %v211_v14 = vld [vmem:[%s508_s21 + $0x20] sm:$0xff]  ;;  %v212_v17 = vld [vmem:[%s508_s21 + $0x28] sm:$0xff] }
  0x11   : > { %v230_v12 = vmul.f32 %v500_v0, %v210_v11  ;;  %v231_v15 = vmul.f32 %v500_v0, %v211_v14  ;;  %v232_v18 = vmul.f32 %v500_v0, %v212_v17  ;;  %v213_v20 = vld [vmem:[%s508_s21 + $0x30] sm:$0xff]  ;;  %v214_v23 = vld [vmem:[%s508_s21 + $0x38] sm:$0xff]  ;;  %v215_v26 = vld [vmem:[%s508_s21 + $0x40] sm:$0xff] }
  0x12   : > { %v247_v5 = vadd.f32 %v513_v1, %v227_v3  ;;  %v248_v7 = vadd.f32 %v513_v1, %v228_v6  ;;  %v249_v10 = vadd.f32 %v513_v1, %v229_v9  ;;  %v233_v21 = vmul.f32 %v500_v0, %v213_v20  ;;  %v216_v29 = vld [vmem:[%s508_s21 + $0x48] sm:$0xff]  ;;  %v217_v32 = vld [vmem:[%s508_s21 + $0x50] sm:$0xff]  ;;  %v218_v35 = vld [vmem:[%s508_s21 + $0x58] sm:$0xff] }
  0x13   : > { %v250_v13 = vadd.f32 %v513_v1, %v230_v12  ;;  %v251_v16 = vadd.f32 %v513_v1, %v231_v15  ;;  %v252_v19 = vadd.f32 %v513_v1, %v232_v18  ;;  %v234_v24 = vmul.f32 %v500_v0, %v214_v23  ;;  %v219_v38 = vld [vmem:[%s508_s21 + $0x60] sm:$0xff]  ;;  %v220_v41 = vld [vmem:[%s508_s21 + $0x68] sm:$0xff]  ;;  %v221_v44 = vld [vmem:[%s508_s21 + $0x70] sm:$0xff] }
  0x14   : > { %263 = vxpose.xlu0.b32.start [1/16] %v247_v5, 128  ;;  %v253_v22 = vadd.f32 %v513_v1, %v233_v21  ;;  %v235_v27 = vmul.f32 %v500_v0, %v215_v26  ;;  %v236_v30 = vmul.f32 %v500_v0, %v216_v29  ;;  %v237_v33 = vmul.f32 %v500_v0, %v217_v32  ;;  %v222_v47 = vld [vmem:[%s508_s21 + $0x78] sm:$0xff] }
  0x15   : > { %v254_v25 = vadd.f32 %v513_v1, %v234_v24  ;;  %v238_v36 = vmul.f32 %v500_v0, %v218_v35  ;;  %v239_v39 = vmul.f32 %v500_v0, %v219_v38  ;;  %v240_v42 = vmul.f32 %v500_v0, %v220_v41 }
  0x16   : > { %v255_v28 = vadd.f32 %v513_v1, %v235_v27  ;;  %v256_v31 = vadd.f32 %v513_v1, %v236_v30  ;;  %v257_v34 = vadd.f32 %v513_v1, %v237_v33  ;;  %v241_v45 = vmul.f32 %v500_v0, %v221_v44 }
  0x17   : > { %v258_v37 = vadd.f32 %v513_v1, %v238_v36  ;;  %v259_v40 = vadd.f32 %v513_v1, %v239_v39  ;;  %v260_v43 = vadd.f32 %v513_v1, %v240_v42  ;;  %v242_v48 = vmul.f32 %v500_v0, %v222_v47 }
  0x18   : > { %v261_v46 = vadd.f32 %v513_v1, %v241_v45 }
  0x19   : > { %v262_v49 = vadd.f32 %v513_v1, %v242_v48 }
  0x1c   : > { %264 = vxpose.xlu0.b32.cont [2/16] %v248_v7, 128 }
  0x24   : > { %265 = vxpose.xlu0.b32.cont [3/16] %v249_v10, 128 }
  0x2c   : > { %266 = vxpose.xlu0.b32.cont [4/16] %v250_v13, 128 }
  0x34   : > { %267 = vxpose.xlu0.b32.cont [5/16] %v251_v16, 128 }
  0x3c   : > { %268 = vxpose.xlu0.b32.cont [6/16] %v252_v19, 128 }
  0x44   : > { %269 = vxpose.xlu0.b32.cont [7/16] %v253_v22, 128 }
  0x4c   : > { %270 = vxpose.xlu0.b32.cont [8/16] %v254_v25, 128 }
  0x54   : > { %271 = vxpose.xlu0.b32.cont [9/16] %v255_v28, 128 }
  0x5c   : > { %272 = vxpose.xlu0.b32.cont [10/16] %v256_v31, 128 }
  0x64   : > { %273 = vxpose.xlu0.b32.cont [11/16] %v257_v34, 128 }
  0x6c   : > { %274 = vxpose.xlu0.b32.cont [12/16] %v258_v37, 128 }
  0x74   : > { %275 = vxpose.xlu0.b32.cont [13/16] %v259_v40, 128 }
  0x7c   : > { %276 = vxpose.xlu0.b32.cont [14/16] %v260_v43, 128 }
  0x84   : > { %277 = vxpose.xlu0.b32.cont [15/16] %v261_v46, 128 }
  0x8c   : > { %278 = vxpose.xlu0.b32.end [16/16] %v262_v49, 128 }
  0xb8   : > { %v279_v50 = vpop.trf.xlu0 }
  0xb9   : > { %295 = vst [vmem:[%s568_s26] sm:$0xff] %v279_v50 }
  0xc0   : > { %v280_v51 = vpop.trf.xlu0 }
  0xc1   : > { %296 = vst [vmem:[%s568_s26 + $0x8] sm:$0xff] %v280_v51 }
  0xc8   : > { %v281_v52 = vpop.trf.xlu0 }
  0xc9   : > { %297 = vst [vmem:[%s568_s26 + $0x10] sm:$0xff] %v281_v52 }
  0xd0   : > { %v282_v53 = vpop.trf.xlu0 }
  0xd1   : > { %298 = vst [vmem:[%s568_s26 + $0x18] sm:$0xff] %v282_v53 }
  0xd8   : > { %v283_v54 = vpop.trf.xlu0 }
  0xd9   : > { %299 = vst [vmem:[%s568_s26 + $0x20] sm:$0xff] %v283_v54 }
  0xe0   : > { %v284_v55 = vpop.trf.xlu0 }
  0xe1   : > { %300 = vst [vmem:[%s568_s26 + $0x28] sm:$0xff] %v284_v55 }
  0xe8   : > { %v285_v56 = vpop.trf.xlu0 }
  0xe9   : > { %301 = vst [vmem:[%s568_s26 + $0x30] sm:$0xff] %v285_v56 }
  0xf0   : > { %v286_v57 = vpop.trf.xlu0 }
  0xf1   : > { %302 = vst [vmem:[%s568_s26 + $0x38] sm:$0xff] %v286_v57 }
  0xf8   : > { %v287_v58 = vpop.trf.xlu0 }
  0xf9   : > { %303 = vst [vmem:[%s568_s26 + $0x40] sm:$0xff] %v287_v58 }
 0x100   : > { %v288_v59 = vpop.trf.xlu0 }
 0x101   : > { %304 = vst [vmem:[%s568_s26 + $0x48] sm:$0xff] %v288_v59 }
 0x108   : > { %v289_v60 = vpop.trf.xlu0 }
 0x109   : > { %305 = vst [vmem:[%s568_s26 + $0x50] sm:$0xff] %v289_v60 }
 0x110   : > { %v290_v61 = vpop.trf.xlu0 }
 0x111   : > { %306 = vst [vmem:[%s568_s26 + $0x58] sm:$0xff] %v290_v61 }
 0x118   : > { %v291_v62 = vpop.trf.xlu0 }
 0x119   : > { %307 = vst [vmem:[%s568_s26 + $0x60] sm:$0xff] %v291_v62 }
 0x120   : > { %v292_v63 = vpop.trf.xlu0 }
 0x121   : > { %308 = vst [vmem:[%s568_s26 + $0x68] sm:$0xff] %v292_v63 }
 0x128   : > { %v293_v0 = vpop.trf.xlu0 }
 0x129   : > { %309 = vst [vmem:[%s568_s26 + $0x70] sm:$0xff] %v293_v0 }
 0x130   : > { %v294_v1 = vpop.trf.xlu0 }
 0x131   : > { %310 = vst [vmem:[%s568_s26 + $0x78] sm:$0xff] %v294_v1 }
 0x132 PF: > { %s13_s14 = sadd.s32 1, %s455_s14   ;;  %s599_s12 = smov %s451_s13 }
 0x133   : > { %p10_p5 = scmp.ge.s32.totalorder %s13_s14, 4   ;;  %s600_s13 = smov %s602_s15 }
 0x135   :  { %12 = sbr.rel (!%p10_p5) target bundleno = 2 (0x2), region = 62 }

// kernel: tdnn_block.2
= control target key start
LH: loop header
LB: loop body
LE: loop exit
PB: predicated region body
PF: predicated region fallthrough
CT: control target
= control target key end

     0   :  { %s3444_s18 = smov 0   ;;  %s3446_s19 = smov 0   ;;  %s5507_s0 = inlined_call_operand.vmem [shape: f32[2,144,128], index: 0, kind: input, shape index: {}, may-alias: {0,1}]   ;;  %s5508_s1 = inlined_call_operand.vmem [shape: f32[2,144,128], index: 1, kind: input, shape index: {}, may-alias: {0,1}]   ;;  %s5509_s2 = inlined_call_operand.vmem [shape: f32[384,128], index: 2, kind: input, shape index: {}]   ;;  %s5510_s3 = inlined_call_operand.vmem [shape: f32[1,128], index: 3, kind: input, shape index: {}]   ;;  %s5511_s4 = inlined_call_operand.vmem [shape: f32[2,128,128], index: 4, kind: output, shape index: {0}]   ;;  %s5512_s5 = inlined_call_operand.vmem [shape: f32[2,1,2,128], index: 5, kind: output, shape index: {1}]  }
   0x1   :  { %s3448_s20 = smov 0  }
   0x2 LB: > { %s28_s21 = sadd.s32 1, %s3408_s19  ;;  %p3319_p0 = scmp.ge.s32.totalorder %s3412_s20, 1  ;;  %s3412_s20 = sphi %s3448_s20, %s16_s20   ;;  %s3408_s19 = sphi %s3446_s19, %s5739_s19   ;;  %s3404_s18 = sphi %s3444_s18, %s5738_s18  }
   0x3   : > { %p30_p1 = scmp.ge.s32.totalorder %s28_s21, 2  ;;  %p246_p2 = scmp.lt.s32.totalorder %s3412_s20, 3 }
   0x5   : > { %s5741_s21 = smov (%p30_p1, %s28_s21), 0  ;;  %p247_p3 = pnand %p3319_p0, %p246_p2 }
   0x7   : > { %250 = sbr.rel (%p247_p3) target bundleno = 763 (0x2fb), region = 36 }
   0xc   : > { %v522_v0 = vld [vmem:[%s5509_s2 + $0x78] sm:$0xff]  ;;  %v521_v1 = vld [vmem:[%s5509_s2 + $0x70] sm:$0xff]  ;;  %v520_v2 = vld [vmem:[%s5509_s2 + $0x68] sm:$0xff]  ;;  %p309_p4 = scmp.lt.s32.totalorder %s3404_s18, 1  ;;  %vm3166_vm0 = vcmask 1040384  }
   0xd   : > { %v3474_v3 = vand.u32 4294901760, %v522_v0  ;;  %v3476_v4 = vand.u32 4294901760, %v521_v1  ;;  %v3478_v5 = vand.u32 4294901760, %v520_v2  ;;  %v519_v6 = vld [vmem:[%s5509_s2 + $0x60] sm:$0xff]  ;;  %v518_v7 = vld [vmem:[%s5509_s2 + $0x58] sm:$0xff]  ;;  %v517_v8 = vld [vmem:[%s5509_s2 + $0x50] sm:$0xff] }
   0xe   : > { %v3489_v9 = vand.u32 4294901760, %v519_v6  ;;  %v3491_v10 = vand.u32 4294901760, %v518_v7  ;;  %v3493_v11 = vand.u32 4294901760, %v517_v8  ;;  %v516_v12 = vld [vmem:[%s5509_s2 + $0x48] sm:$0xff]  ;;  %v515_v13 = vld [vmem:[%s5509_s2 + $0x40] sm:$0xff]  ;;  %v514_v17 = vld [vmem:[%s5509_s2 + $0x38] sm:$0xff] }
   0xf   : > { %3330 = vmatpush.msra.mxu2 %v3474_v3  ;;  %v3503_v14 = vsub.f32 %v522_v0, %v3474_v3  ;;  %v3506_v15 = vsub.f32 %v521_v1, %v3476_v4  ;;  %v3509_v16 = vsub.f32 %v520_v2, %v3478_v5  ;;  %560 = vmatpush.msra.mxu0 %v3474_v3  ;;  %s5743_s18 = smov (!%p309_p4, %s3404_s18), 1  ;;  %v3520_v18 = vand.u32 4294901760, %v516_v12  ;;  %v513_v25 = vld [vmem:[%s5509_s2 + $0x30] sm:$0xff]  ;;  %v512_v33 = vld [vmem:[%s5509_s2 + $0x28] sm:$0xff]  ;;  %v511_v44 = vld [vmem:[%s5509_s2 + $0x20] sm:$0xff] }
  0x10   : > { %v3523_v19 = vsub.f32 %v519_v6, %v3489_v9  ;;  %v3526_v20 = vsub.f32 %v518_v7, %v3491_v10  ;;  %v3532_v24 = vand.u32 4294901760, %v515_v13  ;;  %s3362_s17 = smul.u32 144, %s5743_s18  ;;  %v3540_v27 = vand.u32 4294901760, %v514_v17  ;;  %v510_v52 = vld [vmem:[%s5509_s2 + $0x18] sm:$0xff]  ;;  %v509_v58 = vld [vmem:[%s5509_s2 + $0x10] sm:$0xff]  ;;  %v508_v1 = vld [vmem:[%s5509_s2 + $0x8] sm:$0xff] }
  0x11   : > { %3331 = vmatpush.msra.mxu2 %v3476_v4  ;;  %v722_v21 = vand.u32 4294901760, %v3503_v14  ;;  %v728_v22 = vand.u32 4294901760, %v3506_v15  ;;  %v5527_v23 = vand.u32 4294901760, %v3509_v16  ;;  %562 = vmatpush.msra.mxu0 %v3476_v4  ;;  %v3543_v28 = vsub.f32 %v517_v8, %v3493_v11  ;;  %s3324_s8 = sshll.u32 %s5743_s18, 1 }
  0x12   : > { %v5526_v26 = vand.u32 4294901760, %v3523_v19  ;;  %v5523_v32 = vand.u32 4294901760, %v3526_v20  ;;  %s3565_s26 = scalar_lea.vmem %s5507_s0, %s3362_s17  ;;  %v3570_v35 = vand.u32 4294901760, %v513_v25  ;;  %v3573_v36 = vsub.f32 %v516_v12, %v3520_v18  ;;  %v507_v12 = vld [vmem:[%s5509_s2] sm:$0xff]  ;;  %s3328_s9 = sadd.s32 128, %s3362_s17 }
  0x13   : > { %3332 = vmatpush.msra.mxu2 %v3478_v5  ;;  %v723_v29 = vsub.f32 %v3503_v14, %v722_v21  ;;  %v729_v30 = vsub.f32 %v3506_v15, %v728_v22  ;;  %v735_v31 = vsub.f32 %v3509_v16, %v5527_v23  ;;  %564 = vmatpush.msra.mxu0 %v3478_v5  ;;  %v361_v37 = vld [vmem:[%s3565_s26 + $0x40] sm:$0xff]  ;;  %v5521_v40 = vand.u32 4294901760, %v3543_v28  ;;  %v3583_v42 = vld [vmem:[%s3565_s26 + $0x48] sm:$0xff]  ;;  %v3602_v50 = vld [vmem:[%s3565_s26 + $0x50] sm:$0xff]  ;;  %s4812_s13 = scalar_lea.vmem %s5508_s1, %s3328_s9  ;;  %s352_s10 = scalar_lea.vmem %s5512_s5, %s3324_s8 }
  0x14   : > { %v741_v34 = vsub.f32 %v3523_v19, %v5526_v26  ;;  %v3580_v41 = vsub.f32 %v515_v13, %v3532_v24  ;;  %v3585_v43 = vand.u32 4294901760, %v512_v33  ;;  %v3591_v45 = vld [vmem:[%s3565_s26] sm:$0xff]  ;;  %v747_v47 = vsub.f32 %v3526_v20, %v5523_v32  ;;  %v3642_v2 = vld [vmem:[%s3565_s26 + $0x8] sm:$0xff] }
  0x15   : > { %3333 = vmatpush.msra.mxu2 %v3489_v9  ;;  %v724_v38 = vand.u32 4294901760, %v723_v29  ;;  %v730_v39 = vand.u32 4294901760, %v729_v30  ;;  %566 = vmatpush.msra.mxu0 %v3489_v9  ;;  %v736_v46 = vand.u32 4294901760, %v735_v31  ;;  %v5519_v48 = vand.u32 4294901760, %v3573_v36  ;;  %v3759_v32 = vld [vmem:[%s3565_s26 + $0x68] sm:$0xff] }
  0x16   : > { %v3599_v49 = vsub.f32 %v514_v17, %v3540_v27  ;;  %v5518_v51 = vand.u32 4294901760, %v3580_v41  ;;  %v742_v53 = vand.u32 4294901760, %v741_v34  ;;  %v753_v54 = vsub.f32 %v3543_v28, %v5521_v40  ;;  %v3655_v17 = vld [vmem:[%s3565_s26 + $0x58] sm:$0xff] }
  0x17   : > { %3334 = vmatpush.msra.mxu2 %v3491_v10  ;;  %3346 = vmatpush.msra.mxu3 %v724_v38  ;;  %v3613_v55 = vand.u32 4294901760, %v511_v44  ;;  %v3616_v56 = vsub.f32 %v513_v25, %v3570_v35  ;;  %v3623_v59 = vand.u32 4294901760, %v361_v37  ;;  %v748_v60 = vand.u32 4294901760, %v747_v47 }
  0x18   : > { %725 = vmatpush.msra.mxu1 %v724_v38  ;;  %568 = vmatpush.msra.mxu0 %v3491_v10  ;;  %v5515_v57 = vand.u32 4294901760, %v3599_v49  ;;  %v759_v61 = vsub.f32 %v3573_v36, %v5519_v48  ;;  %v3629_v62 = vand.u32 4294901760, %v510_v52  ;;  %v3632_v63 = vsub.f32 %v512_v33, %v3585_v43 }
  0x19   : > { %3335 = vmatpush.msra.mxu2 %v3493_v11  ;;  %3347 = vmatpush.msra.mxu3 %v730_v39  ;;  %v765_v0 = vsub.f32 %v3580_v41, %v5518_v51  ;;  %v754_v6 = vand.u32 4294901760, %v753_v54  ;;  %v3645_v7 = vand.u32 4294901760, %v509_v58  ;;  %v5514_v8 = vand.u32 4294901760, %v3616_v56 }
  0x1a   : > { %731 = vmatpush.msra.mxu1 %v730_v39  ;;  %570 = vmatpush.msra.mxu0 %v3493_v11  ;;  %v3652_v13 = vsub.f32 %v511_v44, %v3613_v55  ;;  %v771_v25 = vsub.f32 %v3599_v49, %v5515_v57  ;;  %v3662_v29 = vsub.f32 %v361_v37, %v3623_v59  ;;  %v760_v30 = vand.u32 4294901760, %v759_v61 }
  0x1b   : > { %3336 = vmatpush.msra.mxu2 %v3520_v18  ;;  %3348 = vmatpush.msra.mxu3 %v736_v46  ;;  %v3665_v31 = vand.u32 4294901760, %v508_v1  ;;  %v5513_v33 = vand.u32 4294901760, %v3632_v63  ;;  %v3669_v34 = vsub.f32 %v510_v52, %v3629_v62  ;;  %v766_v38 = vand.u32 4294901760, %v765_v0 }
  0x1c   : > { %737 = vmatpush.msra.mxu1 %v736_v46  ;;  %572 = vmatpush.msra.mxu0 %v3520_v18  ;;  %v3671_v39 = vand.u32 4294901760, %v507_v12  ;;  %v777_v37 = vsub.f32 %v3616_v56, %v5514_v8  ;;  %v5516_v44 = vand.u32 4294901760, %v3652_v13  ;;  %v3680_v46 = vsub.f32 %v509_v58, %v3645_v7 }
  0x1d   : > { %3337 = vmatpush.msra.mxu2 %v3532_v24  ;;  %3349 = vmatpush.msra.mxu3 %v742_v53  ;;  %v3683_v47 = vand.u32 4294901760, %v3591_v45  ;;  %v772_v52 = vand.u32 4294901760, %v771_v25  ;;  %v3688_v54 = vand.u32 4294901760, %v3583_v42  ;;  %v783_v58 = vsub.f32 %v3632_v63, %v5513_v33  ;;  %v3707_v25 = vld [vmem:[%s3565_s26 + $0x60] sm:$0xff] }
  0x1e   : > { %743 = vmatpush.msra.mxu1 %v742_v53  ;;  %574 = vmatpush.msra.mxu0 %v3532_v24  ;;  %v5517_v53 = vand.u32 4294901760, %v3662_v29  ;;  %v3696_v61 = vsub.f32 %v508_v1, %v3665_v31  ;;  %v778_v33 = vand.u32 4294901760, %v777_v37  ;;  %v789_v1 = vsub.f32 %v3652_v13, %v5516_v44 }
  0x1f   : > { %3338 = vmatpush.msra.mxu2 %v3540_v27  ;;  %3350 = vmatpush.msra.mxu3 %v748_v60  ;;  %v3700_v0 = vsub.f32 %v3591_v45, %v3683_v47  ;;  %v5522_v8 = vand.u32 4294901760, %v3680_v46  ;;  %v3715_v45 = vsub.f32 %v507_v12, %v3671_v39  ;;  %v3723_v57 = vsub.f32 %v3583_v42, %v3688_v54 }
  0x20   : > { %749 = vmatpush.msra.mxu1 %v748_v60  ;;  %576 = vmatpush.msra.mxu0 %v3540_v27  ;;  %v5520_v60 = vand.u32 4294901760, %v3669_v34  ;;  %v3727_v44 = vand.u32 4294901760, %v3642_v2  ;;  %v784_v12 = vand.u32 4294901760, %v783_v58  ;;  %v790_v42 = vand.u32 4294901760, %v789_v1 }
  0x21   : > { %3339 = vmatpush.msra.mxu2 %v3570_v35  ;;  %3351 = vmatpush.msra.mxu3 %v754_v6  ;;  %v5524_v37 = vand.u32 4294901760, %v3700_v0  ;;  %v801_v51 = vsub.f32 %v3680_v46, %v5522_v8  ;;  %v812_v58 = vand.u32 4294901760, %v3715_v45  ;;  %v3741_v48 = vand.u32 4294901760, %v3602_v50 }
  0x22   : > { %755 = vmatpush.msra.mxu1 %v754_v6  ;;  %578 = vmatpush.msra.mxu0 %v3570_v35  ;;  %v3703_v6 = vld [vmem:[%s3565_s26 + $0x10] sm:$0xff]  ;;  %v3750_v40 = vsub.f32 %v3642_v2, %v3727_v44 }
  0x23   : > { %3340 = vmatpush.msra.mxu2 %v3585_v43  ;;  %3352 = vmatpush.msra.mxu3 %v760_v30  ;;  %v594_v1 = vsub.f32 %v3700_v0, %v5524_v37  ;;  %v802_v37 = vand.u32 4294901760, %v801_v51  ;;  %v813_v2 = vsub.f32 %v3715_v45, %v812_v58  ;;  %v3774_v23 = vand.u32 4294901760, %v3703_v6 }
  0x24   : > { %761 = vmatpush.msra.mxu1 %v760_v30  ;;  %580 = vmatpush.msra.mxu0 %v3585_v43  ;;  %v658_v30 = vsub.f32 %v3662_v29, %v5517_v53  ;;  %v795_v53 = vsub.f32 %v3669_v34, %v5520_v60  ;;  %v601_v26 = vand.u32 4294901760, %v3750_v40 }
  0x25   : > { %3341 = vmatpush.msra.mxu2 %v3613_v55  ;;  %3353 = vmatpush.msra.mxu3 %v766_v38 }
  0x26   : > { %767 = vmatpush.msra.mxu1 %v766_v38  ;;  %582 = vmatpush.msra.mxu0 %v3613_v55  ;;  %v5525_v38 = vand.u32 4294901760, %v3696_v61  ;;  %v659_v60 = vand.u32 4294901760, %v658_v30  ;;  %v796_v8 = vand.u32 4294901760, %v795_v53  ;;  %v356_v30 = vld [vmem:[%s3565_s26 + $0x18] sm:$0xff]  ;;  %v3767_v53 = vsub.f32 %v3602_v50, %v3741_v48 }
  0x27   : > { %3342 = vmatpush.msra.mxu2 %v3629_v62  ;;  %3354 = vmatpush.msra.mxu3 %v772_v52  ;;  %v814_v50 = vand.u32 4294901760, %v813_v2  ;;  %v357_v2 = vld [vmem:[%s3565_s26 + $0x20] sm:$0xff] }
  0x28   : > { %773 = vmatpush.msra.mxu1 %v772_v52  ;;  %584 = vmatpush.msra.mxu0 %v3629_v62  ;;  %v665_v52 = vand.u32 4294901760, %v3723_v57 }
  0x29   : > { %3343 = vmatpush.msra.mxu2 %v3645_v7  ;;  %3355 = vmatpush.msra.mxu3 %v778_v33 }
  0x2a   : > { %779 = vmatpush.msra.mxu1 %v778_v33  ;;  %586 = vmatpush.msra.mxu0 %v3645_v7  ;;  %v807_v33 = vsub.f32 %v3696_v61, %v5525_v38  ;;  %v595_v38 = vand.u32 4294901760, %v594_v1  ;;  %v673_v1 = vand.u32 4294901760, %v3767_v53 }
  0x2b   : > { %3344 = vmatpush.msra.mxu2 %v3665_v31  ;;  %3356 = vmatpush.msra.mxu3 %v784_v12 }
  0x2c   : > { %785 = vmatpush.msra.mxu1 %v784_v12  ;;  %588 = vmatpush.msra.mxu0 %v3665_v31  ;;  %v666_v12 = vsub.f32 %v3723_v57, %v665_v52  ;;  %v808_v51 = vand.u32 4294901760, %v807_v33  ;;  %v602_v33 = vsub.f32 %v3750_v40, %v601_v26 }
  0x2d   : > { %3345 = vmatpush.msra.mxu2 %v3671_v39  ;;  %3357 = vmatpush.msra.mxu3 %v790_v42 }
  0x2e   : > { %660 = vmatmul.f32.vlgmr.msra.gmra.mxu2 %v659_v60  ;;  %791 = vmatpush.msra.mxu1 %v790_v42  ;;  %v3780_v60 = vand.u32 4294901760, %v3655_v17  ;;  %v667_v42 = vand.u32 4294901760, %v666_v12  ;;  %v603_v12 = vand.u32 4294901760, %v602_v33  ;;  %v3833_v33 = vld [vmem:[%s3565_s26 + $0x78] sm:$0xff] }
  0x2f   : > { %3358 = vmatpush.msra.mxu3 %v796_v8  ;;  %883 = vmatpush.msrb.mxu2 %v3503_v14 }
  0x30   : > { %797 = vmatpush.msra.mxu1 %v796_v8  ;;  %590 = vmatpush.msra.mxu0 %v3671_v39  ;;  %v3788_v8 = vsub.f32 %v3703_v6, %v3774_v23  ;;  %v674_v6 = vsub.f32 %v3767_v53, %v673_v1 }
  0x31   : > { %3359 = vmatpush.msra.mxu3 %v802_v37  ;;  %886 = vmatpush.msrb.mxu2 %v3506_v15 }
  0x32   : > { %803 = vmatpush.msra.mxu1 %v802_v37  ;;  %596 = vmatmul.f32.vlgmr.msra.gmra.mxu0 %v595_v38  ;;  %v3795_v37 = vld [vmem:[%s3565_s26 + $0x70] sm:$0xff]  ;;  %v3800_v38 = vsub.f32 %v3655_v17, %v3780_v60  ;;  %v609_v14 = vand.u32 4294901760, %v3788_v8  ;;  %v3816_v17 = vand.u32 4294901760, %v3707_v25 }
  0x33   : > { %3360 = vmatpush.msra.mxu3 %v808_v51  ;;  %889 = vmatpush.msrb.mxu2 %v3509_v16 }
  0x34   : > { %809 = vmatpush.msra.mxu1 %v808_v51  ;;  %1142 = vmatpush.msrb.mxu0 %v722_v21  ;;  %v3807_v21 = vand.u32 4294901760, %v356_v30  ;;  %v675_v51 = vand.u32 4294901760, %v674_v6 }
  0x35   : > { %3361 = vmatpush.msra.mxu3 %v814_v50  ;;  %892 = vmatpush.msrb.mxu2 %v3523_v19 }
  0x36   : > { %668 = vmatmul.f32.gmra.mxu2 %v667_v42  ;;  %849 = vmatmul.f32.vlgmr.msra.gmra.mxu3 %v3623_v59  ;;  %v681_v42 = vand.u32 4294901760, %v3800_v38  ;;  %v3824_v15 = vsub.f32 %v356_v30, %v3807_v21  ;;  %v3839_v30 = vsub.f32 %v3707_v25, %v3816_v17 }
  0x37   : > { %1011 = vmatpush.msrb.mxu3 %v3474_v3  ;;  %815 = vmatpush.msra.mxu1 %v814_v50  ;;  %v610_v50 = vsub.f32 %v3788_v8, %v609_v14 }
  0x38   : > { %817 = vmatmul.f32.vlgmr.msra.gmra.mxu1 %v3683_v47  ;;  %1146 = vmatpush.msrb.mxu0 %v728_v22  ;;  %v5612_v22 = vand.u32 4294901760, %v3509_v16  ;;  %v617_v6 = vand.u32 4294901760, %v3824_v15  ;;  %v5530_v25 = vand.u32 4294901760, %v3839_v30 }
  0x39   : > { %1013 = vmatpush.msrb.mxu3 %v3476_v4  ;;  %1269 = vmatpush.msrb.mxu1 %v3474_v3  ;;  %v358_v3 = vld [vmem:[%s3565_s26 + $0x28] sm:$0xff]  ;;  %v611_v16 = vand.u32 4294901760, %v610_v50 }
  0x3a   : > { %895 = vmatpush.msrb.mxu2 %v3526_v20  ;;  %604 = vmatmul.f32.gmra.mxu0 %v603_v12  ;;  %v3846_v12 = vand.u32 4294901760, %v357_v2  ;;  %v618_v50 = vsub.f32 %v3824_v15, %v617_v6 }
  0x3b   : > { %1015 = vmatpush.msrb.mxu3 %v3478_v5  ;;  %1271 = vmatpush.msrb.mxu1 %v3476_v4  ;;  %v682_v4 = vsub.f32 %v3800_v38, %v681_v42 }
  0x3c   : > { %1150 = vmatpush.msrb.mxu0 %v5612_v22  ;;  %898 = vmatpush.msrb.mxu2 %v3543_v28  ;;  %v3864_v22 = vsub.f32 %v357_v2, %v3846_v12  ;;  %v619_v2 = vand.u32 4294901760, %v618_v50 }
  0x3d   : > { %1017 = vmatpush.msrb.mxu3 %v3489_v9  ;;  %1273 = vmatpush.msrb.mxu1 %v3478_v5  ;;  %v5613_v5 = vand.u32 4294901760, %v3523_v19  ;;  %v3861_v19 = vand.u32 4294901760, %v3759_v32 }
  0x3e   : > { %676 = vmatmul.f32.gmra.mxu2 %v675_v51  ;;  %853 = vmatmul.f32.gmra.mxu3 %v3688_v54  ;;  %v683_v51 = vand.u32 4294901760, %v682_v4  ;;  %v690_v4 = vsub.f32 %v3839_v30, %v5530_v25 }
  0x3f   : > { %1019 = vmatpush.msrb.mxu3 %v3491_v10  ;;  %1154 = vmatpush.msrb.mxu0 %v5613_v5  ;;  %v359_v5 = vld [vmem:[%s3565_s26 + $0x30] sm:$0xff] }
  0x40   : > { %821 = vmatmul.f32.gmra.mxu1 %v3727_v44  ;;  %901 = vmatpush.msrb.mxu2 %v3573_v36 }
  0x41   : > { %1021 = vmatpush.msrb.mxu3 %v3493_v11  ;;  %1275 = vmatpush.msrb.mxu1 %v3489_v9  ;;  %v5614_v9 = vand.u32 4294901760, %v3526_v20  ;;  %v3881_v20 = vsub.f32 %v3759_v32, %v3861_v19  ;;  %v3894_v32 = vand.u32 4294901760, %v3795_v37 }
  0x42   : > { %612 = vmatmul.f32.gmra.mxu0 %v611_v16  ;;  %904 = vmatpush.msrb.mxu2 %v3580_v41  ;;  %v5615_v16 = vand.u32 4294901760, %v3543_v28  ;;  %v5616_v28 = vand.u32 4294901760, %v3573_v36 }
  0x43   : > { %1023 = vmatpush.msrb.mxu3 %v3520_v18  ;;  %1158 = vmatpush.msrb.mxu0 %v5614_v9  ;;  %v3884_v9 = vand.u32 4294901760, %v358_v3  ;;  %v5528_v50 = vand.u32 4294901760, %v3881_v20 }
  0x44   : > { %1277 = vmatpush.msrb.mxu1 %v3491_v10  ;;  %907 = vmatpush.msrb.mxu2 %v3599_v49  ;;  %v625_v10 = vand.u32 4294901760, %v3864_v22 }
  0x45   : > { %1025 = vmatpush.msrb.mxu3 %v3532_v24  ;;  %1162 = vmatpush.msrb.mxu0 %v5615_v16  ;;  %v3902_v36 = vsub.f32 %v358_v3, %v3884_v9  ;;  %v5617_v16 = vand.u32 4294901760, %v3580_v41  ;;  %v698_v41 = vsub.f32 %v3881_v20, %v5528_v50  ;;  %v5620_v50 = vand.u32 4294901760, %v3632_v63 }
  0x46   : > { %684 = vmatmul.f32.gmra.mxu2 %v683_v51  ;;  %857 = vmatmul.f32.gmra.mxu3 %v3741_v48  ;;  %v691_v51 = vand.u32 4294901760, %v690_v4  ;;  %v3912_v4 = vsub.f32 %v3795_v37, %v3894_v32  ;;  %v538_v37 = vld [vmem:[%s5509_s2 + $0xf8] sm:$0xff] }
  0x47   : > { %1279 = vmatpush.msrb.mxu1 %v3493_v11  ;;  %1027 = vmatpush.msrb.mxu3 %v3540_v27  ;;  %v626_v11 = vsub.f32 %v3864_v22, %v625_v10 }
  0x48   : > { %825 = vmatmul.f32.gmra.mxu1 %v3774_v23  ;;  %1166 = vmatpush.msrb.mxu0 %v5616_v28  ;;  %v3922_v28 = vand.u32 4294901760, %v359_v5 }
  0x49   : > { %910 = vmatpush.msrb.mxu2 %v3616_v56  ;;  %1281 = vmatpush.msrb.mxu1 %v3520_v18  ;;  %v360_v18 = vld [vmem:[%s3565_s26 + $0x38] sm:$0xff]  ;;  %v627_v3 = vand.u32 4294901760, %v626_v11  ;;  %v5529_v11 = vand.u32 4294901760, %v3912_v4 }
  0x4a   : > { %620 = vmatmul.f32.gmra.mxu0 %v619_v2  ;;  %1029 = vmatpush.msrb.mxu3 %v3570_v35  ;;  %v5618_v2 = vand.u32 4294901760, %v3599_v49  ;;  %v3929_v49 = vand.u32 4294901760, %v538_v37 }
  0x4b   : > { %1170 = vmatpush.msrb.mxu0 %v5617_v16  ;;  %913 = vmatpush.msrb.mxu2 %v3632_v63  ;;  %v3938_v16 = vand.u32 4294901760, %v3833_v33 }
  0x4c   : > { %1283 = vmatpush.msrb.mxu1 %v3532_v24  ;;  %1031 = vmatpush.msrb.mxu3 %v3585_v43  ;;  %v633_v24 = vand.u32 4294901760, %v3902_v36 }
  0x4d   : > { %1174 = vmatpush.msrb.mxu0 %v5618_v2  ;;  %916 = vmatpush.msrb.mxu2 %v3652_v13  ;;  %v699_v2 = vand.u32 4294901760, %v698_v41  ;;  %v5621_v41 = vand.u32 4294901760, %v3652_v13  ;;  %v537_v13 = vld [vmem:[%s5509_s2 + $0xf0] sm:$0xff] }
  0x4e   : > { %692 = vmatmul.f32.gmra.mxu2 %v691_v51  ;;  %861 = vmatmul.f32.gmra.mxu3 %v3780_v60  ;;  %v5619_v51 = vand.u32 4294901760, %v3616_v56  ;;  %v3945_v56 = vsub.f32 %v359_v5, %v3922_v28  ;;  %v3960_v5 = vsub.f32 %v3833_v33, %v3938_v16  ;;  %v3991_v25 = vand.u32 4294901760, %v537_v13 }
  0x4f   : > { %1285 = vmatpush.msrb.mxu1 %v3540_v27  ;;  %1033 = vmatpush.msrb.mxu3 %v3613_v55  ;;  %v634_v27 = vsub.f32 %v3902_v36, %v633_v24 }
  0x50   : > { %829 = vmatmul.f32.gmra.mxu1 %v3807_v21  ;;  %1178 = vmatpush.msrb.mxu0 %v5619_v51  ;;  %v3948_v51 = vsub.f32 %v538_v37, %v3929_v49 }
  0x51   : > { %919 = vmatpush.msrb.mxu2 %v3669_v34  ;;  %1287 = vmatpush.msrb.mxu1 %v3570_v35  ;;  %v706_v35 = vsub.f32 %v3912_v4, %v5529_v11  ;;  %v635_v63 = vand.u32 4294901760, %v634_v27  ;;  %v5622_v27 = vand.u32 4294901760, %v3669_v34 }
  0x52   : > { %628 = vmatmul.f32.gmra.mxu0 %v627_v3  ;;  %1035 = vmatpush.msrb.mxu3 %v3629_v62  ;;  %v5545_v3 = vand.u32 4294901760, %v3948_v51 }
  0x53   : > { %1182 = vmatpush.msrb.mxu0 %v5620_v50  ;;  %922 = vmatpush.msrb.mxu2 %v3680_v46  ;;  %v3967_v50 = vand.u32 4294901760, %v360_v18  ;;  %v707_v37 = vand.u32 4294901760, %v706_v35  ;;  %v5623_v35 = vand.u32 4294901760, %v3680_v46 }
  0x54   : > { %1289 = vmatpush.msrb.mxu1 %v3585_v43  ;;  %1037 = vmatpush.msrb.mxu3 %v3645_v7  ;;  %v641_v43 = vand.u32 4294901760, %v3945_v56  ;;  %v1529_v33 = vsub.f32 %v3948_v51, %v5545_v3 }
  0x55   : > { %1186 = vmatpush.msrb.mxu0 %v5621_v41  ;;  %925 = vmatpush.msrb.mxu2 %v3696_v61  ;;  %v3989_v41 = vsub.f32 %v360_v18, %v3967_v50 }
  0x56   : > { %700 = vmatmul.f32.gmra.mxu2 %v699_v2  ;;  %865 = vmatmul.f32.gmra.mxu3 %v3816_v17  ;;  %v5531_v2 = vand.u32 4294901760, %v3960_v5  ;;  %v1530_v11 = vand.u32 4294901760, %v1529_v33 }
  0x57   : > { %1291 = vmatpush.msrb.mxu1 %v3613_v55  ;;  %928 = vmatpush.msrb.mxu2 %v3715_v45  ;;  %v642_v55 = vsub.f32 %v3945_v56, %v641_v43  ;;  %v649_v46 = vand.u32 4294901760, %v3989_v41 }
  0x58   : > { %833 = vmatmul.f32.gmra.mxu1 %v3846_v12  ;;  %1039 = vmatpush.msrb.mxu3 %v3665_v31  ;;  %v714_v34 = vsub.f32 %v3960_v5, %v5531_v2 }
  0x59   : > { %1190 = vmatpush.msrb.mxu0 %v5622_v27  ;;  %1293 = vmatpush.msrb.mxu1 %v3629_v62  ;;  %v5624_v62 = vand.u32 4294901760, %v3696_v61  ;;  %v643_v18 = vand.u32 4294901760, %v642_v55  ;;  %v536_v61 = vld [vmem:[%s5509_s2 + $0xe8] sm:$0xff]  ;;  %v650_v45 = vsub.f32 %v3989_v41, %v649_v46 }
  0x5a   : > { %636 = vmatmul.f32.gmra.mxu0 %v635_v63  ;;  %1041 = vmatpush.msrb.mxu3 %v3671_v39  ;;  %v715_v63 = vand.u32 4294901760, %v714_v34 }
  0x5b   : > { %1194 = vmatpush.msrb.mxu0 %v5623_v35  ;;  %1295 = vmatpush.msrb.mxu1 %v3645_v7  ;;  %v4006_v7 = vsub.f32 %v537_v13, %v3991_v25  ;;  %v651_v13 = vand.u32 4294901760, %v650_v45 }
  0x5c   : > { %1366 = vmatpush.msra.mxu2 %v3929_v49  ;;  %1531 = vmatpush.msra.mxu3 %v1530_v11 }
  0x5d   : > { %1198 = vmatpush.msrb.mxu0 %v5624_v62  ;;  %1297 = vmatpush.msrb.mxu1 %v3665_v31  ;;  %v4014_v31 = vand.u32 4294901760, %v536_v61  ;;  %v5544_v11 = vand.u32 4294901760, %v4006_v7 }
  0x5e   : > { %708 = vmatmul.f32.gmra.mxu2 %v707_v37  ;;  %869 = vmatmul.f32.gmra.mxu3 %v3861_v19  ;;  %v535_v37 = vld [vmem:[%s5509_s2 + $0xe0] sm:$0xff] }
  0x5f   : > { %1202 = vmatpush.msrb.mxu0 %v812_v58  ;;  %1299 = vmatpush.msrb.mxu1 %v3671_v39  ;;  %v1535_v39 = vsub.f32 %v4006_v7, %v5544_v11  ;;  %v4033_v33 = vsub.f32 %v536_v61, %v4014_v31  ;;  %v4038_v27 = vand.u32 4294901760, %v535_v37 }
  0x60   : > { %837 = vmatmul.f32.gmra.mxu1 %v3884_v9  ;;  %1368 = vmatpush.msra.mxu2 %v3991_v25 }
  0x61   : > { %1689 = vmatpush.msra.mxu0 %v3948_v51  ;;  %1817 = vmatpush.msra.mxu1 %v3929_v49  ;;  %v1536_v58 = vand.u32 4294901760, %v1535_v39  ;;  %v5543_v55 = vand.u32 4294901760, %v4033_v33  ;;  %v4051_v34 = vsub.f32 %v535_v37, %v4038_v27  ;;  %v533_v37 = vld [vmem:[%s5509_s2 + $0xd0] sm:$0xff] }
  0x62   : > { %644 = vmatmul.f32.gmra.mxu0 %v643_v18  ;;  %1370 = vmatpush.msra.mxu2 %v4014_v31  ;;  %v534_v18 = vld [vmem:[%s5509_s2 + $0xd8] sm:$0xff] }
  0x63   : > { %1692 = vmatpush.msra.mxu0 %v4006_v7  ;;  %1819 = vmatpush.msra.mxu1 %v3991_v25  ;;  %v1541_v35 = vsub.f32 %v4033_v33, %v5543_v55  ;;  %v4056_v61 = vand.u32 4294901760, %v534_v18 }
  0x64   : > { %1537 = vmatpush.msra.mxu3 %v1536_v58  ;;  %1372 = vmatpush.msra.mxu2 %v4038_v27  ;;  %v5625_v58 = vand.u32 4294901760, %v3700_v0 }
  0x65   : > { %1821 = vmatpush.msra.mxu1 %v4014_v31  ;;  %1695 = vmatpush.msra.mxu0 %v4033_v33  ;;  %v1542_v62 = vand.u32 4294901760, %v1541_v35  ;;  %v4076_v35 = vand.u32 4294901760, %v533_v37 }
  0x66   : > { %716 = vmatmul.f32.gmra.mxu2 %v715_v63  ;;  %873 = vmatmul.f32.gmra.mxu3 %v3894_v32  ;;  %v5541_v63 = vand.u32 4294901760, %v4051_v34 }
  0x67   : > { %1823 = vmatpush.msra.mxu1 %v4038_v27  ;;  %1543 = vmatpush.msra.mxu3 %v1542_v62 }
  0x68   : > { %841 = vmatmul.f32.gmra.mxu1 %v3922_v28  ;;  %1698 = vmatpush.msra.mxu0 %v4051_v34  ;;  %v1547_v45 = vsub.f32 %v4051_v34, %v5541_v63 }
  0x69   : > { %1374 = vmatpush.msra.mxu2 %v4056_v61  ;;  %1825 = vmatpush.msra.mxu1 %v4056_v61 }
  0x6a   : > { %652 = vmatmul.f32.gmra.mxu0 %v651_v13  ;;  %v1548_v39 = vand.u32 4294901760, %v1547_v45  ;;  %v4071_v13 = vsub.f32 %v534_v18, %v4056_v61  ;;  %v532_v45 = vld [vmem:[%s5509_s2 + $0xc8] sm:$0xff] }
  0x6b   : > { %1376 = vmatpush.msra.mxu2 %v4076_v35  ;;  %1827 = vmatpush.msra.mxu1 %v4076_v35 }
  0x6c   : > { %1549 = vmatpush.msra.mxu3 %v1548_v39  ;;  %v5540_v62 = vand.u32 4294901760, %v4071_v13  ;;  %1701 = vmatpush.msra.mxu0 %v4071_v13  ;;  %v4096_v39 = vand.u32 4294901760, %v532_v45 }
  0x6e   : > { %877 = vmatmul.f32.gmra.mxu3 %v3938_v16  ;;  %931 = vmatmul.f32.vlgmr.msrb.gmra.mxu2 %v3700_v0  ;;  %v1553_v0 = vsub.f32 %v4071_v13, %v5540_v62 }
  0x6f   : > { %1378 = vmatpush.msra.mxu2 %v4096_v39  ;;  %1829 = vmatpush.msra.mxu1 %v4096_v39 }
  0x70   : > { %845 = vmatmul.f32.gmra.mxu1 %v3967_v50  ;;  %v1554_v18 = vand.u32 4294901760, %v1553_v0 }
  0x72   : > { %1204 = vmatmul.f32.vlgmr.msrb.gmra.mxu0 %v3683_v47  ;;  %1555 = vmatpush.msra.mxu3 %v1554_v18 }
  0x76   : > { %936 = vmatmul.f32.gmra.mxu2 %v3750_v40  ;;  %1045 = vmatmul.f32.vlgmr.msrb.gmra.mxu3 %v5625_v58 }
  0x78   : > { %1301 = vmatmul.f32.vlgmr.msrb.gmra.mxu1 %v3683_v47  ;;  %v4091_v47 = vsub.f32 %v533_v37, %v4076_v35  ;;  %v531_v37 = vld [vmem:[%s5509_s2 + $0xc0] sm:$0xff] }
  0x79   : > { %v4116_v0 = vand.u32 4294901760, %v531_v37 }
  0x7a   : > { %1208 = vmatmul.f32.gmra.mxu0 %v3727_v44  ;;  %v5539_v58 = vand.u32 4294901760, %v4091_v47 }
  0x7b   : > { %1704 = vmatpush.msra.mxu0 %v4091_v47  ;;  %1380 = vmatpush.msra.mxu2 %v4116_v0 }
  0x7c   : > { %1831 = vmatpush.msra.mxu1 %v4116_v0 }
  0x7e   : > { %941 = vmatmul.f32.gmra.mxu2 %v3788_v8  ;;  %1051 = vmatmul.f32.gmra.mxu3 %v601_v26  ;;  %v1559_v26 = vsub.f32 %v4091_v47, %v5539_v58 }
  0x80   : > { %1305 = vmatmul.f32.gmra.mxu1 %v3727_v44  ;;  %v1560_v40 = vand.u32 4294901760, %v1559_v26  ;;  %v4111_v44 = vsub.f32 %v532_v45, %v4096_v39 }
  0x82   : > { %1212 = vmatmul.f32.gmra.mxu0 %v3774_v23  ;;  %1561 = vmatpush.msra.mxu3 %v1560_v40  ;;  %v5537_v18 = vand.u32 4294901760, %v4111_v44 }
  0x83   : > { %1707 = vmatpush.msra.mxu0 %v4111_v44 }
  0x84   : > { %v1565_v8 = vsub.f32 %v4111_v44, %v5537_v18 }
  0x86   : > { %946 = vmatmul.f32.gmra.mxu2 %v3824_v15  ;;  %1057 = vmatmul.f32.gmra.mxu3 %v609_v14  ;;  %v1566_v14 = vand.u32 4294901760, %v1565_v8  ;;  %v530_v15 = vld [vmem:[%s5509_s2 + $0xb8] sm:$0xff] }
  0x88   : > { %1309 = vmatmul.f32.gmra.mxu1 %v3774_v23  ;;  %v4131_v23 = vsub.f32 %v531_v37, %v4116_v0  ;;  %1567 = vmatpush.msra.mxu3 %v1566_v14 }
  0x8a   : > { %1216 = vmatmul.f32.gmra.mxu0 %v3807_v21  ;;  %v5536_v45 = vand.u32 4294901760, %v4131_v23 }
  0x8b   : > { %1710 = vmatpush.msra.mxu0 %v4131_v23 }
  0x8c   : > { %v1571_v26 = vsub.f32 %v4131_v23, %v5536_v45 }
  0x8e   : > { %951 = vmatmul.f32.gmra.mxu2 %v3864_v22  ;;  %1063 = vmatmul.f32.gmra.mxu3 %v617_v6  ;;  %v4143_v6 = vand.u32 4294901760, %v530_v15  ;;  %v1572_v40 = vand.u32 4294901760, %v1571_v26  ;;  %v529_v22 = vld [vmem:[%s5509_s2 + $0xb0] sm:$0xff] }
  0x90   : > { %1313 = vmatmul.f32.gmra.mxu1 %v3807_v21  ;;  %1382 = vmatpush.msra.mxu2 %v4143_v6  ;;  %v4151_v21 = vsub.f32 %v530_v15, %v4143_v6 }
  0x91   : > { %1833 = vmatpush.msra.mxu1 %v4143_v6  ;;  %1573 = vmatpush.msra.mxu3 %v1572_v40 }
  0x92   : > { %1220 = vmatmul.f32.gmra.mxu0 %v3846_v12  ;;  %v5535_v37 = vand.u32 4294901760, %v4151_v21 }
  0x93   : > { %1713 = vmatpush.msra.mxu0 %v4151_v21 }
  0x94   : > { %v1577_v8 = vsub.f32 %v4151_v21, %v5535_v37 }
  0x96   : > { %956 = vmatmul.f32.gmra.mxu2 %v3902_v36  ;;  %1069 = vmatmul.f32.gmra.mxu3 %v625_v10  ;;  %v4163_v10 = vand.u32 4294901760, %v529_v22  ;;  %v1578_v14 = vand.u32 4294901760, %v1577_v8  ;;  %v528_v36 = vld [vmem:[%s5509_s2 + $0xa8] sm:$0xff] }
  0x98   : > { %1317 = vmatmul.f32.gmra.mxu1 %v3846_v12  ;;  %1384 = vmatpush.msra.mxu2 %v4163_v10  ;;  %v4171_v12 = vsub.f32 %v529_v22, %v4163_v10 }
  0x99   : > { %1835 = vmatpush.msra.mxu1 %v4163_v10  ;;  %1579 = vmatpush.msra.mxu3 %v1578_v14 }
  0x9a   : > { %1224 = vmatmul.f32.gmra.mxu0 %v3884_v9  ;;  %v5534_v26 = vand.u32 4294901760, %v4171_v12 }
  0x9b   : > { %1716 = vmatpush.msra.mxu0 %v4171_v12 }
  0x9c   : > { %v1583_v15 = vsub.f32 %v4171_v12, %v5534_v26 }
  0x9e   : > { %961 = vmatmul.f32.gmra.mxu2 %v3945_v56  ;;  %1075 = vmatmul.f32.gmra.mxu3 %v633_v24  ;;  %v4183_v24 = vand.u32 4294901760, %v528_v36  ;;  %v1584_v40 = vand.u32 4294901760, %v1583_v15  ;;  %v527_v56 = vld [vmem:[%s5509_s2 + $0xa0] sm:$0xff] }
  0xa0   : > { %1321 = vmatmul.f32.gmra.mxu1 %v3884_v9  ;;  %1386 = vmatpush.msra.mxu2 %v4183_v24  ;;  %v4191_v9 = vsub.f32 %v528_v36, %v4183_v24 }
  0xa1   : > { %1837 = vmatpush.msra.mxu1 %v4183_v24  ;;  %1585 = vmatpush.msra.mxu3 %v1584_v40 }
  0xa2   : > { %1228 = vmatmul.f32.gmra.mxu0 %v3922_v28  ;;  %v5533_v8 = vand.u32 4294901760, %v4191_v9 }
  0xa3   : > { %1719 = vmatpush.msra.mxu0 %v4191_v9 }
  0xa4   : > { %v1589_v22 = vsub.f32 %v4191_v9, %v5533_v8 }
  0xa6   : > { %966 = vmatmul.f32.gmra.mxu2 %v3989_v41  ;;  %1081 = vmatmul.f32.gmra.mxu3 %v641_v43  ;;  %v4203_v43 = vand.u32 4294901760, %v527_v56  ;;  %v1590_v14 = vand.u32 4294901760, %v1589_v22 }
  0xa8   : > { %1325 = vmatmul.f32.gmra.mxu1 %v3922_v28  ;;  %1388 = vmatpush.msra.mxu2 %v4203_v43  ;;  %v4213_v28 = vld [vmem:[%s5510_s3] ss:$0 sm:$0xff]  ;;  %v4216_v15 = vsub.f32 %v527_v56, %v4203_v43  ;;  %v526_v56 = vld [vmem:[%s5509_s2 + $0x98] sm:$0xff] }
  0xa9   : > { %1839 = vmatpush.msra.mxu1 %v4203_v43  ;;  %1591 = vmatpush.msra.mxu3 %v1590_v14  ;;  %v4231_v14 = vand.u32 4294901760, %v526_v56 }
  0xaa   : > { %1232 = vmatmul.f32.gmra.mxu0 %v3967_v50  ;;  %v5532_v40 = vand.u32 4294901760, %v4216_v15 }
  0xab   : > { %1722 = vmatpush.msra.mxu0 %v4216_v15  ;;  %1390 = vmatpush.msra.mxu2 %v4231_v14 }
  0xac   : > { %1841 = vmatpush.msra.mxu1 %v4231_v14 }
  0xae   : > { %971 = vmatmul.f32.gmra.mxu2 %v3662_v29  ;;  %1087 = vmatmul.f32.gmra.mxu3 %v649_v46  ;;  %v1595_v46 = vsub.f32 %v4216_v15, %v5532_v40  ;;  %v4241_v40 = vsub.f32 %v526_v56, %v4231_v14 }
  0xaf   : > { %v4218_v36 = vpop.f32.mrf.mxu0 }
  0xb0   : > { %1329 = vmatmul.f32.gmra.mxu1 %v3967_v50  ;;  %v1596_v50 = vand.u32 4294901760, %v1595_v46  ;;  %v5538_v46 = vand.u32 4294901760, %v4241_v40  ;;  %1725 = vmatpush.msra.mxu0 %v4241_v40 }
  0xb1   : > { %v661_v22 = vpop.f32.mrf.mxu2 }
  0xb2   : > { %v662_v41 = vadd.f32 %v4213_v28, %v661_v22  ;;  %1236 = vmatmul.f32.gmra.mxu0 %v3623_v59  ;;  %v5626_v22 = vand.u32 4294901760, %v3662_v29  ;;  %1597 = vmatpush.msra.mxu3 %v1596_v50  ;;  %v1601_v29 = vsub.f32 %v4241_v40, %v5538_v46 }
  0xb4   : > { %v1602_v50 = vand.u32 4294901760, %v1601_v29 }
  0xb5   : > { %v4233_v2 = vpop.f32.mrf.mxu1 }
  0xb6   : > { %976 = vmatmul.f32.gmra.mxu2 %v3723_v57  ;;  %1093 = vmatmul.f32.gmra.mxu3 %v5626_v22 }
  0xb7   : > { %v4243_v8 = vpop.f32.mrf.mxu0  ;;  %1603 = vmatpush.msra.mxu3 %v1602_v50 }
  0xb8   : > { %1333 = vmatmul.f32.gmra.mxu1 %v3623_v59  ;;  %v525_v59 = vld [vmem:[%s5509_s2 + $0x90] sm:$0xff] }
  0xb9   : > { %v669_v26 = vpop.f32.mrf.mxu2  ;;  %v850_v37 = vpop.f32.mrf.mxu3  ;;  %v4258_v56 = vand.u32 4294901760, %v525_v59 }
  0xba   : > { %v670_v45 = vadd.f32 %v4213_v28, %v669_v26  ;;  %v4249_v18 = vadd.f32 %v850_v37, %v662_v41  ;;  %1240 = vmatmul.f32.gmra.mxu0 %v3688_v54 }
  0xbb   : > { %1392 = vmatpush.msra.mxu2 %v4258_v56  ;;  %1843 = vmatpush.msra.mxu1 %v4258_v56  ;;  %v4268_v37 = vsub.f32 %v525_v59, %v4258_v56  ;;  %v4288_v59 = vld [vmem:[%s3565_s26 + $0x2] sm:$0xff] }
  0xbd   : > { %v4260_v22 = vpop.f32.mrf.mxu1  ;;  %v5542_v41 = vand.u32 4294901760, %v4268_v37  ;;  %1728 = vmatpush.msra.mxu0 %v4268_v37 }
  0xbe   : > { %981 = vmatmul.f32.gmra.mxu2 %v3767_v53  ;;  %1099 = vmatmul.f32.gmra.mxu3 %v665_v52 }
  0xbf   : > { %v4270_v26 = vpop.f32.mrf.mxu0  ;;  %v1607_v57 = vsub.f32 %v4268_v37, %v5542_v41 }
  0xc0   : > { %1337 = vmatmul.f32.gmra.mxu1 %v3688_v54  ;;  %v524_v54 = vld [vmem:[%s5509_s2 + $0x88] sm:$0xff] }
  0xc1   : > { %v677_v29 = vpop.f32.mrf.mxu2  ;;  %v854_v46 = vpop.f32.mrf.mxu3  ;;  %v4285_v52 = vand.u32 4294901760, %v524_v54  ;;  %v1608_v50 = vand.u32 4294901760, %v1607_v57 }
  0xc2   : > { %v678_v58 = vadd.f32 %v4213_v28, %v677_v29  ;;  %v4276_v62 = vadd.f32 %v854_v46, %v670_v45  ;;  %1244 = vmatmul.f32.gmra.mxu0 %v3741_v48 }
  0xc3   : > { %1394 = vmatpush.msra.mxu2 %v4285_v52  ;;  %1845 = vmatpush.msra.mxu1 %v4285_v52  ;;  %v4298_v45 = vsub.f32 %v524_v54, %v4285_v52  ;;  %v4318_v54 = vld [vmem:[%s3565_s26 + $0xa] sm:$0xff] }
  0xc4   : > { %5627 = vst [vmem:[#allocation3_spill] sm:$0xff] %v4276_v62  ;;  %1609 = vmatpush.msra.mxu3 %v1608_v50 }
  0xc5   : > { %v4290_v63 = vpop.f32.mrf.mxu1  ;;  %v5546_v29 = vand.u32 4294901760, %v4298_v45  ;;  %1731 = vmatpush.msra.mxu0 %v4298_v45 }
  0xc6   : > { %986 = vmatmul.f32.gmra.mxu2 %v3800_v38  ;;  %1105 = vmatmul.f32.gmra.mxu3 %v673_v1 }
  0xc7   : > { %v4300_v46 = vpop.f32.mrf.mxu0  ;;  %v1613_v53 = vsub.f32 %v4298_v45, %v5546_v29 }
  0xc8   : > { %1341 = vmatmul.f32.gmra.mxu1 %v3741_v48  ;;  %v523_v48 = vld [vmem:[%s5509_s2 + $0x80] sm:$0xff] }
  0xc9   : > { %v685_v57 = vpop.f32.mrf.mxu2  ;;  %v858_v41 = vpop.f32.mrf.mxu3  ;;  %v4315_v1 = vand.u32 4294901760, %v523_v48  ;;  %v1614_v50 = vand.u32 4294901760, %v1613_v53  ;;  %v5629_v53 = vand.u32 4294901760, %v3948_v51 }
  0xca   : > { %v686_v55 = vadd.f32 %v4213_v28, %v685_v57  ;;  %v4306_v11 = vadd.f32 %v858_v41, %v678_v58  ;;  %1248 = vmatmul.f32.gmra.mxu0 %v3780_v60 }
  0xcb   : > { %1396 = vmatpush.msra.mxu2 %v4315_v1  ;;  %v4324_v58 = vsub.f32 %v523_v48, %v4315_v1  ;;  %1847 = vmatpush.msra.mxu1 %v4315_v1 }
  0xcc   : > { %5628 = vst [vmem:[#allocation4_spill] sm:$0xff] %v4306_v11  ;;  %1615 = vmatpush.msra.mxu3 %v1614_v50 }
  0xcd   : > { %v4320_v3 = vpop.f32.mrf.mxu1  ;;  %v5547_v57 = vand.u32 4294901760, %v4324_v58  ;;  %1948 = vmatpush.msrb.mxu2 %v5629_v53  ;;  %1734 = vmatpush.msra.mxu0 %v4324_v58  ;;  %v4347_v53 = vld [vmem:[%s3565_s26 + $0x12] sm:$0xff] }
  0xce   : > { %991 = vmatmul.f32.gmra.mxu2 %v3839_v30  ;;  %1111 = vmatmul.f32.gmra.mxu3 %v681_v42  ;;  %v5630_v42 = vand.u32 4294901760, %v4006_v7  ;;  %v5633_v7 = vand.u32 4294901760, %v3839_v30 }
  0xcf   : > { %v4330_v41 = vpop.f32.mrf.mxu0  ;;  %v1619_v38 = vsub.f32 %v4324_v58, %v5547_v57  ;;  %v5632_v57 = vand.u32 4294901760, %v4051_v34  ;;  %v4365_v34 = vand.u32 4294901760, %v4288_v59 }
  0xd0   : > { %1345 = vmatmul.f32.gmra.mxu1 %v3780_v60  ;;  %1952 = vmatpush.msrb.mxu2 %v5630_v42  ;;  %v5631_v60 = vand.u32 4294901760, %v4033_v33  ;;  %v5638_v42 = vand.u32 4294901760, %v3881_v20 }
  0xd1   : > { %v693_v48 = vpop.f32.mrf.mxu2  ;;  %v862_v29 = vpop.f32.mrf.mxu3  ;;  %v1620_v51 = vand.u32 4294901760, %v1619_v38 }
  0xd2   : > { %v694_v50 = vadd.f32 %v4213_v28, %v693_v48  ;;  %v4343_v11 = vadd.f32 %v862_v29, %v686_v55  ;;  %1252 = vmatmul.f32.gmra.mxu0 %v3816_v17  ;;  %1956 = vmatpush.msrb.mxu2 %v5631_v60  ;;  %v5634_v29 = vand.u32 4294901760, %v4071_v13 }
  0xd3   : > { %1621 = vmatpush.msra.mxu3 %v1620_v51 }
  0xd4   : > { %1960 = vmatpush.msrb.mxu2 %v5632_v57  ;;  %v5635_v57 = vand.u32 4294901760, %v4091_v47  ;;  %v5637_v47 = vand.u32 4294901760, %v4131_v23 }
  0xd5   : > { %v4351_v62 = vpop.f32.mrf.mxu1  ;;  %2075 = vmatpush.msrb.mxu3 %v3929_v49  ;;  %v4375_v49 = vld [vmem:[%s3565_s26 + $0x1a] sm:$0xff] }
  0xd6   : > { %996 = vmatmul.f32.gmra.mxu2 %v3881_v20  ;;  %1117 = vmatmul.f32.gmra.mxu3 %v5633_v7 }
  0xd7   : > { %v4358_v55 = vpop.f32.mrf.mxu0  ;;  %1964 = vmatpush.msrb.mxu2 %v5634_v29  ;;  %2077 = vmatpush.msrb.mxu3 %v3991_v25  ;;  %v4384_v25 = vsub.f32 %v4288_v59, %v4365_v34  ;;  %v4420_v29 = vld [vmem:[%s3565_s26 + $0x22] sm:$0xff] }
  0xd8   : > { %1349 = vmatmul.f32.gmra.mxu1 %v3816_v17  ;;  %v5636_v17 = vand.u32 4294901760, %v4111_v44 }
  0xd9   : > { %v701_v33 = vpop.f32.mrf.mxu2  ;;  %v866_v48 = vpop.f32.mrf.mxu3  ;;  %1968 = vmatpush.msrb.mxu2 %v5635_v57  ;;  %2079 = vmatpush.msrb.mxu3 %v4014_v31  ;;  %v554_v31 = vld [vmem:[%s5509_s2 + $0x178] sm:$0xff]  ;;  %v1399_v20 = vand.u32 4294901760, %v4384_v25  ;;  %v5642_v57 = vand.u32 4294901760, %v3912_v4 }
  0xda   : > { %v702_v30 = vadd.f32 %v4213_v28, %v701_v33  ;;  %v4371_v38 = vadd.f32 %v866_v48, %v694_v50  ;;  %1256 = vmatmul.f32.gmra.mxu0 %v3861_v19  ;;  %v4397_v50 = vand.u32 4294901760, %v554_v31 }
  0xdb   : > { %1972 = vmatpush.msrb.mxu2 %v5636_v17  ;;  %2081 = vmatpush.msrb.mxu3 %v4038_v27  ;;  %v5639_v27 = vand.u32 4294901760, %v4151_v21  ;;  %v1400_v48 = vsub.f32 %v4384_v25, %v1399_v20 }
  0xdc   : > { %2172 = vmatpush.msrb.mxu0 %v4397_v50  ;;  %v4406_v51 = vsub.f32 %v554_v31, %v4397_v50 }
  0xdd   : > { %v4380_v13 = vpop.f32.mrf.mxu1  ;;  %1976 = vmatpush.msrb.mxu2 %v5637_v47  ;;  %2083 = vmatpush.msrb.mxu3 %v4056_v61  ;;  %v4414_v61 = vand.u32 4294901760, %v4318_v54 }
  0xde   : > { %1001 = vmatmul.f32.gmra.mxu2 %v3912_v4  ;;  %1123 = vmatmul.f32.gmra.mxu3 %v5638_v42  ;;  %v5553_v21 = vand.u32 4294901760, %v4406_v51  ;;  %v1401_v42 = vand.u32 4294901760, %v1400_v48  ;;  %v5645_v48 = vand.u32 4294901760, %v4268_v37 }
  0xdf   : > { %v4395_v44 = vpop.f32.mrf.mxu0  ;;  %1980 = vmatpush.msrb.mxu2 %v5639_v27  ;;  %2085 = vmatpush.msrb.mxu3 %v4076_v35  ;;  %v5641_v35 = vand.u32 4294901760, %v4191_v9  ;;  %v553_v9 = vld [vmem:[%s5509_s2 + $0x170] sm:$0xff] }
  0xe0   : > { %1353 = vmatmul.f32.gmra.mxu1 %v3861_v19  ;;  %v5640_v19 = vand.u32 4294901760, %v4171_v12  ;;  %v2335_v12 = vsub.f32 %v4406_v51, %v5553_v21  ;;  %v4446_v47 = vand.u32 4294901760, %v553_v9 }
  0xe1   : > { %v709_v23 = vpop.f32.mrf.mxu2  ;;  %v870_v59 = vpop.f32.mrf.mxu3  ;;  %2087 = vmatpush.msrb.mxu3 %v4096_v39  ;;  %v4439_v39 = vsub.f32 %v4318_v54, %v4414_v61 }
  0xe2   : > { %v710_v60 = vadd.f32 %v4213_v28, %v709_v23  ;;  %v4410_v7 = vadd.f32 %v870_v59, %v702_v30  ;;  %1260 = vmatmul.f32.gmra.mxu0 %v3894_v32  ;;  %1984 = vmatpush.msrb.mxu2 %v5640_v19  ;;  %v2336_v17 = vand.u32 4294901760, %v2335_v12  ;;  %v4454_v31 = vsub.f32 %v553_v9, %v4446_v47  ;;  %v4467_v59 = vld [vmem:[%s3565_s26 + $0x2a] sm:$0xff] }
  0xe3   : > { %2089 = vmatpush.msrb.mxu3 %v4116_v0  ;;  %v5643_v0 = vand.u32 4294901760, %v4216_v15  ;;  %2174 = vmatpush.msrb.mxu0 %v4446_v47  ;;  %v4462_v15 = vand.u32 4294901760, %v4347_v53  ;;  %v5644_v19 = vand.u32 4294901760, %v4241_v40  ;;  %v552_v12 = vld [vmem:[%s5509_s2 + $0x168] sm:$0xff] }
  0xe4   : > { %1988 = vmatpush.msrb.mxu2 %v5641_v35  ;;  %2337 = vmatpush.msrb.mxu1 %v2336_v17  ;;  %v4491_v37 = vand.u32 4294901760, %v552_v12 }
  0xe5   : > { %v4425_v33 = vpop.f32.mrf.mxu1  ;;  %2091 = vmatpush.msrb.mxu3 %v4143_v6  ;;  %v1407_v6 = vand.u32 4294901760, %v4439_v39 }
  0xe6   : > { %1006 = vmatmul.f32.gmra.mxu2 %v3960_v5  ;;  %1129 = vmatmul.f32.gmra.mxu3 %v5642_v57 }
  0xe7   : > { %v4444_v30 = vpop.f32.mrf.mxu0  ;;  %1992 = vmatpush.msrb.mxu2 %v5643_v0  ;;  %2093 = vmatpush.msrb.mxu3 %v4163_v10  ;;  %v5646_v10 = vand.u32 4294901760, %v3960_v5  ;;  %v1408_v40 = vsub.f32 %v4439_v39, %v1407_v6  ;;  %v5647_v5 = vand.u32 4294901760, %v4298_v45 }
  0xe8   : > { %1357 = vmatmul.f32.gmra.mxu1 %v3894_v32  ;;  %v5552_v32 = vand.u32 4294901760, %v4454_v31  ;;  %2176 = vmatpush.msrb.mxu0 %v4491_v37 }
  0xe9   : > { %v717_v4 = vpop.f32.mrf.mxu2  ;;  %v874_v54 = vpop.f32.mrf.mxu3  ;;  %1996 = vmatpush.msrb.mxu2 %v5644_v19  ;;  %2095 = vmatpush.msrb.mxu3 %v4183_v24  ;;  %v4486_v24 = vsub.f32 %v4347_v53, %v4462_v15  ;;  %v598_v53 = vadd.f32 %v4213_v28, %v4218_v36  ;;  %v5649_v19 = vand.u32 4294901760, %v4324_v58 }
  0xea   : > { %v718_v27 = vadd.f32 %v4213_v28, %v717_v4  ;;  %v4457_v23 = vadd.f32 %v874_v54, %v710_v60  ;;  %1264 = vmatmul.f32.gmra.mxu0 %v3938_v16  ;;  %v2341_v35 = vsub.f32 %v4454_v31, %v5552_v32  ;;  %v4501_v4 = vsub.f32 %v552_v12, %v4491_v37 }
  0xeb   : > { %2000 = vmatpush.msrb.mxu2 %v5645_v48  ;;  %2097 = vmatpush.msrb.mxu3 %v4203_v43  ;;  %v1409_v43 = vand.u32 4294901760, %v1408_v40  ;;  %v1415_v45 = vand.u32 4294901760, %v4486_v24  ;;  %v819_v48 = vadd.f32 %v4233_v2, %v598_v53 }
  0xec   : > { %v2342_v9 = vand.u32 4294901760, %v2341_v35  ;;  %v5550_v36 = vand.u32 4294901760, %v4501_v4 }
  0xed   : > { %v4472_v60 = vpop.f32.mrf.mxu1  ;;  %2004 = vmatpush.msrb.mxu2 %v5647_v5  ;;  %2099 = vmatpush.msrb.mxu3 %v4231_v14  ;;  %v1416_v14 = vsub.f32 %v4486_v24, %v1415_v45 }
  0xee   : > { %1135 = vmatmul.f32.gmra.mxu3 %v5646_v10  ;;  %1402 = vmatmul.f32.vlgmr.msra.gmra.mxu2 %v1401_v42  ;;  %v4513_v42 = vld [vmem:[%s3565_s26 + $0x32] sm:$0xff]  ;;  %v2347_v35 = vsub.f32 %v4501_v4, %v5550_v36 }
  0xef   : > { %v1205_v57 = vpop.f32.mrf.mxu0  ;;  %2343 = vmatpush.msrb.mxu1 %v2342_v9  ;;  %2008 = vmatpush.msrb.mxu2 %v5649_v19 }
  0xf0   : > { %1361 = vmatmul.f32.gmra.mxu1 %v3938_v16  ;;  %v4508_v16 = vand.u32 4294901760, %v4375_v49  ;;  %2101 = vmatpush.msrb.mxu3 %v4258_v56  ;;  %v551_v56 = vld [vmem:[%s5509_s2 + $0x160] sm:$0xff]  ;;  %v2348_v40 = vand.u32 4294901760, %v2347_v35 }
  0xf1   : > { %v878_v17 = vpop.f32.mrf.mxu3  ;;  %v932_v0 = vpop.f32.mrf.mxu2  ;;  %2495 = vmatpush.msra.mxu2 %v4406_v51  ;;  %v4534_v12 = vand.u32 4294901760, %v551_v56 }
  0xf2   : > { %v4503_v54 = vadd.f32 %v878_v17, %v718_v27  ;;  %1737 = vmatmul.f32.vlgmr.msra.gmra.mxu0 %v4384_v25  ;;  %5648 = vst [vmem:[#allocation5_spill] sm:$0xff] %v4508_v16  ;;  %v4529_v58 = vsub.f32 %v4375_v49, %v4508_v16  ;;  %2103 = vmatpush.msrb.mxu3 %v4285_v52  ;;  %v1417_v52 = vand.u32 4294901760, %v1416_v14  ;;  %v4549_v25 = vand.u32 4294901760, %v4420_v29  ;;  %v550_v14 = vld [vmem:[%s5509_s2 + $0x158] sm:$0xff] }
  0xf3   : > { %2498 = vmatpush.msra.mxu2 %v4454_v31  ;;  %v933_v2 = vadd.f32 %v932_v0, %v819_v48  ;;  %v606_v49 = vadd.f32 %v4213_v28, %v4243_v8  ;;  %2349 = vmatpush.msrb.mxu1 %v2348_v40  ;;  %v4544_v53 = vsub.f32 %v551_v56, %v4534_v12 }
  0xf4   : > { %2178 = vmatpush.msrb.mxu0 %v4534_v12  ;;  %5650 = vst [vmem:[#allocation6_spill] sm:$0xff] %v4549_v25  ;;  %2105 = vmatpush.msrb.mxu3 %v4315_v1 }
  0xf5   : > { %v1302_v27 = vpop.f32.mrf.mxu1  ;;  %v5549_v8 = vand.u32 4294901760, %v4544_v53  ;;  %2501 = vmatpush.msra.mxu2 %v4501_v4  ;;  %v823_v19 = vadd.f32 %v4260_v22, %v606_v49  ;;  %v4572_v22 = vsub.f32 %v4420_v29, %v4549_v25  ;;  %v614_v49 = vadd.f32 %v4213_v28, %v4270_v26 }
  0xf6   : > { %1410 = vmatmul.f32.gmra.mxu2 %v1409_v43  ;;  %1623 = vmatmul.f32.vlgmr.msra.gmra.mxu3 %v4365_v34  ;;  %v1423_v43 = vand.u32 4294901760, %v4529_v58 }
  0xf7   : > { %v1209_v10 = vpop.f32.mrf.mxu0  ;;  %2623 = vmatpush.msra.mxu3 %v4397_v50  ;;  %v2353_v48 = vsub.f32 %v4544_v53, %v5549_v8  ;;  %2504 = vmatpush.msra.mxu2 %v4544_v53 }
  0xf8   : > { %1851 = vmatmul.f32.vlgmr.msra.gmra.mxu1 %v1399_v20  ;;  %v4554_v20 = vld [vmem:[%s3565_s26 + $0x3a] sm:$0xff] }
  0xf9   : > { %v937_v9 = vpop.f32.mrf.mxu2  ;;  %v1046_v5 = vpop.f32.mrf.mxu3  ;;  %2625 = vmatpush.msra.mxu3 %v4446_v47  ;;  %v2354_v40 = vand.u32 4294901760, %v2353_v48  ;;  %v1431_v48 = vand.u32 4294901760, %v4572_v22 }
  0xfa   : > { %v1047_v17 = vadd.f32 %v1046_v5, %v933_v2  ;;  %1742 = vmatmul.f32.gmra.mxu0 %v4439_v39  ;;  %v4577_v2 = vand.u32 4294901760, %v550_v14  ;;  %v4591_v39 = vand.u32 4294901760, %v4467_v59 }
  0xfb   : > { %2627 = vmatpush.msra.mxu3 %v4491_v37  ;;  %2355 = vmatpush.msrb.mxu1 %v2354_v40 }
  0xfc   : > { %v1206_v0 = vadd.f32 %v1205_v57, %v1047_v17  ;;  %v1424_v57 = vsub.f32 %v4529_v58, %v1423_v43  ;;  %2180 = vmatpush.msrb.mxu0 %v4577_v2  ;;  %v4586_v17 = vsub.f32 %v550_v14, %v4577_v2  ;;  %5651 = vst [vmem:[#allocation7_spill] sm:$0xff] %v4591_v39 }
  0xfd   : > { %v1306_v35 = vpop.f32.mrf.mxu1  ;;  %2629 = vmatpush.msra.mxu3 %v4534_v12 }
  0xfe   : > { %v4564_v1 = vadd.f32 %v1302_v27, %v1206_v0  ;;  %1418 = vmatmul.f32.gmra.mxu2 %v1417_v52  ;;  %1627 = vmatmul.f32.gmra.mxu3 %v4414_v61  ;;  %v938_v27 = vadd.f32 %v937_v9, %v823_v19  ;;  %v1425_v0 = vand.u32 4294901760, %v1424_v57  ;;  %v5548_v26 = vand.u32 4294901760, %v4586_v17 }
  0xff   : > { %v1213_v56 = vpop.f32.mrf.mxu0  ;;  %2507 = vmatpush.msra.mxu2 %v4586_v17  ;;  %2631 = vmatpush.msra.mxu3 %v4577_v2  ;;  %v827_v19 = vadd.f32 %v4290_v63, %v614_v49  ;;  %v549_v63 = vld [vmem:[%s5509_s2 + $0x150] sm:$0xff] }
 0x100   : > { %1857 = vmatmul.f32.gmra.mxu1 %v1407_v6  ;;  %v4596_v6 = vld [vmem:[%s3565_s26 + $0x42] sm:$0xff]  ;;  %v2359_v14 = vsub.f32 %v4586_v17, %v5548_v26 }
 0x101   : > { %v942_v29 = vpop.f32.mrf.mxu2  ;;  %v1052_v5 = vpop.f32.mrf.mxu3 }
 0x102   : > { %v1053_v52 = vadd.f32 %v1052_v5, %v938_v27  ;;  %1747 = vmatmul.f32.gmra.mxu0 %v4486_v24  ;;  %v1432_v27 = vsub.f32 %v4572_v22, %v1431_v48  ;;  %v2360_v5 = vand.u32 4294901760, %v2359_v14  ;;  %v4630_v24 = vand.u32 4294901760, %v4513_v42 }
 0x104   : > { %v1210_v9 = vadd.f32 %v1209_v10, %v1053_v52  ;;  %v4612_v10 = vsub.f32 %v4467_v59, %v4591_v39  ;;  %v4617_v52 = vand.u32 4294901760, %v549_v63  ;;  %2361 = vmatpush.msrb.mxu1 %v2360_v5  ;;  %v1433_v14 = vand.u32 4294901760, %v1432_v27  ;;  %5652 = vst [vmem:[#allocation8_spill] sm:$0xff] %v4630_v24 }
 0x105   : > { %v1310_v57 = vpop.f32.mrf.mxu1 }
 0x106   : > { %v4604_v40 = vadd.f32 %v1306_v35, %v1210_v9  ;;  %1426 = vmatmul.f32.gmra.mxu2 %v1425_v0  ;;  %1631 = vmatmul.f32.gmra.mxu3 %v4462_v15  ;;  %v943_v35 = vadd.f32 %v942_v29, %v827_v19  ;;  %v622_v0 = vadd.f32 %v4213_v28, %v4300_v46  ;;  %v5556_v36 = vand.u32 4294901760, %v4612_v10 }
 0x107   : > { %v1217_v49 = vpop.f32.mrf.mxu0  ;;  %2182 = vmatpush.msrb.mxu0 %v4617_v52  ;;  %v4625_v59 = vsub.f32 %v549_v63, %v4617_v52  ;;  %2633 = vmatpush.msra.mxu3 %v4617_v52 }
 0x108   : > { %1863 = vmatmul.f32.gmra.mxu1 %v1415_v45  ;;  %v4635_v45 = vld [vmem:[%s3565_s26 + $0x4a] sm:$0xff]  ;;  %v831_v19 = vadd.f32 %v4320_v3, %v622_v0  ;;  %v1440_v5 = vsub.f32 %v4612_v10, %v5556_v36 }
 0x109   : > { %v947_v9 = vpop.f32.mrf.mxu2  ;;  %v1058_v26 = vpop.f32.mrf.mxu3  ;;  %v5551_v46 = vand.u32 4294901760, %v4625_v59  ;;  %2510 = vmatpush.msra.mxu2 %v4625_v59  ;;  %v548_v3 = vld [vmem:[%s5509_s2 + $0x148] sm:$0xff] }
 0x10a   : > { %v1059_v8 = vadd.f32 %v1058_v26, %v943_v35  ;;  %1752 = vmatmul.f32.gmra.mxu0 %v4529_v58  ;;  %v4650_v35 = vsub.f32 %v4513_v42, %v4630_v24  ;;  %v4655_v0 = vand.u32 4294901760, %v548_v3  ;;  %v4668_v58 = vand.u32 4294901760, %v4554_v20 }
 0x10b   : > { %v2365_v27 = vsub.f32 %v4625_v59, %v5551_v46 }
 0x10c   : > { %v1214_v29 = vadd.f32 %v1213_v56, %v1059_v8  ;;  %2184 = vmatpush.msrb.mxu0 %v4655_v0  ;;  %v4663_v42 = vsub.f32 %v548_v3, %v4655_v0  ;;  %v5555_v21 = vand.u32 4294901760, %v4650_v35  ;;  %5654 = vst [vmem:[#allocation10_spill] sm:$0xff] %v4668_v58  ;;  %2635 = vmatpush.msra.mxu3 %v4655_v0 }
 0x10d   : > { %v1314_v26 = vpop.f32.mrf.mxu1  ;;  %v2366_v56 = vand.u32 4294901760, %v2365_v27  ;;  %v1441_v27 = vand.u32 4294901760, %v1440_v5 }
 0x10e   : > { %v4642_v63 = vadd.f32 %v1310_v57, %v1214_v29  ;;  %1434 = vmatmul.f32.gmra.mxu2 %v1433_v14  ;;  %1635 = vmatmul.f32.gmra.mxu3 %v4508_v16  ;;  %v948_v57 = vadd.f32 %v947_v9, %v831_v19  ;;  %v630_v14 = vadd.f32 %v4213_v28, %v4330_v41  ;;  %v5554_v41 = vand.u32 4294901760, %v4663_v42 }
 0x10f   : > { %v1221_v8 = vpop.f32.mrf.mxu0  ;;  %2367 = vmatpush.msrb.mxu1 %v2366_v56  ;;  %2513 = vmatpush.msra.mxu2 %v4663_v42  ;;  %v1448_v56 = vsub.f32 %v4650_v35, %v5555_v21 }
 0x110   : > { %5653 = vst [vmem:[#allocation9_spill] sm:$0xff] %v4642_v63  ;;  %1869 = vmatmul.f32.gmra.mxu1 %v1423_v43  ;;  %v4673_v43 = vld [vmem:[%s3565_s26 + $0x52] sm:$0xff]  ;;  %v835_v19 = vadd.f32 %v4351_v62, %v630_v14  ;;  %v2371_v5 = vsub.f32 %v4663_v42, %v5554_v41  ;;  %v547_v62 = vld [vmem:[%s5509_s2 + $0x140] sm:$0xff] }
 0x111   : > { %v952_v29 = vpop.f32.mrf.mxu2  ;;  %v1064_v46 = vpop.f32.mrf.mxu3  ;;  %v4693_v14 = vand.u32 4294901760, %v547_v62 }
 0x112   : > { %v1065_v32 = vadd.f32 %v1064_v46, %v948_v57  ;;  %1757 = vmatmul.f32.gmra.mxu0 %v4572_v22  ;;  %v4688_v57 = vsub.f32 %v4554_v20, %v4668_v58  ;;  %v4706_v22 = vand.u32 4294901760, %v4596_v6 }
 0x113   : > { %2186 = vmatpush.msrb.mxu0 %v4693_v14  ;;  %v4701_v20 = vsub.f32 %v547_v62, %v4693_v14  ;;  %2637 = vmatpush.msra.mxu3 %v4693_v14 }
 0x114   : > { %v1218_v9 = vadd.f32 %v1217_v49, %v1065_v32  ;;  %v2372_v49 = vand.u32 4294901760, %v2371_v5  ;;  %v1449_v5 = vand.u32 4294901760, %v1448_v56  ;;  %v5558_v36 = vand.u32 4294901760, %v4688_v57  ;;  %5656 = vst [vmem:[#allocation12_spill] sm:$0xff] %v4706_v22 }
 0x115   : > { %v1318_v46 = vpop.f32.mrf.mxu1  ;;  %2516 = vmatpush.msra.mxu2 %v4701_v20 }
 0x116   : > { %v4680_v3 = vadd.f32 %v1314_v26, %v1218_v9  ;;  %1442 = vmatmul.f32.gmra.mxu2 %v1441_v27  ;;  %1639 = vmatmul.f32.gmra.mxu3 %v4549_v25  ;;  %v953_v26 = vadd.f32 %v952_v29, %v835_v19  ;;  %v638_v27 = vadd.f32 %v4213_v28, %v4358_v55  ;;  %v5557_v55 = vand.u32 4294901760, %v4701_v20 }
 0x117   : > { %v1225_v32 = vpop.f32.mrf.mxu0  ;;  %2373 = vmatpush.msrb.mxu1 %v2372_v49  ;;  %v1456_v49 = vsub.f32 %v4688_v57, %v5558_v36  ;;  %v4736_v36 = vand.u32 4294901760, %v4635_v45 }
 0x118   : > { %5655 = vst [vmem:[#allocation11_spill] sm:$0xff] %v4680_v3  ;;  %1875 = vmatmul.f32.gmra.mxu1 %v1431_v48  ;;  %v4711_v48 = vld [vmem:[%s3565_s26 + $0x5a] sm:$0xff]  ;;  %v839_v19 = vadd.f32 %v4380_v13, %v638_v27  ;;  %v2377_v56 = vsub.f32 %v4701_v20, %v5557_v55 }
 0x119   : > { %v957_v9 = vpop.f32.mrf.mxu2  ;;  %v1070_v41 = vpop.f32.mrf.mxu3  ;;  %v546_v13 = vld [vmem:[%s5509_s2 + $0x138] sm:$0xff]  ;;  %5659 = vst [vmem:[#allocation14_spill] sm:$0xff] %v4736_v36 }
 0x11a   : > { %v1071_v21 = vadd.f32 %v1070_v41, %v953_v26  ;;  %1762 = vmatmul.f32.gmra.mxu0 %v4612_v10  ;;  %v4726_v26 = vsub.f32 %v4596_v6, %v4706_v22  ;;  %v4731_v27 = vand.u32 4294901760, %v546_v13 }
 0x11c   : > { %v1222_v29 = vadd.f32 %v1221_v8, %v1071_v21  ;;  %v2378_v8 = vand.u32 4294901760, %v2377_v56  ;;  %2188 = vmatpush.msrb.mxu0 %v4731_v27  ;;  %v4740_v6 = vsub.f32 %v546_v13, %v4731_v27  ;;  %v646_v56 = vadd.f32 %v4213_v28, %v4395_v44  ;;  %2639 = vmatpush.msra.mxu3 %v4731_v27 }
 0x11d   : > { %v1322_v41 = vpop.f32.mrf.mxu1 }
 0x11e   : > { %v4718_v62 = vadd.f32 %v1318_v46, %v1222_v29  ;;  %1450 = vmatmul.f32.gmra.mxu2 %v1449_v5  ;;  %1643 = vmatmul.f32.gmra.mxu3 %v4591_v39  ;;  %v958_v46 = vadd.f32 %v957_v9, %v839_v19  ;;  %v5658_v5 = vand.u32 4294901760, %v4612_v10  ;;  %v5564_v9 = vand.u32 4294901760, %v4726_v26  ;;  %v4749_v19 = vld [vmem:[%s3565_s26 + $0x62] sm:$0xff] }
 0x11f   : > { %v1229_v21 = vpop.f32.mrf.mxu0  ;;  %2379 = vmatpush.msrb.mxu1 %v2378_v8  ;;  %v5563_v10 = vand.u32 4294901760, %v4740_v6  ;;  %2519 = vmatpush.msra.mxu2 %v4740_v6 }
 0x120   : > { %5657 = vst [vmem:[#allocation13_spill] sm:$0xff] %v4718_v62  ;;  %1881 = vmatmul.f32.gmra.mxu1 %v5658_v5  ;;  %v1457_v62 = vand.u32 4294901760, %v1456_v49  ;;  %v4754_v5 = vsub.f32 %v4635_v45, %v4736_v36  ;;  %v545_v45 = vld [vmem:[%s5509_s2 + $0x130] sm:$0xff] }
 0x121   : > { %v962_v29 = vpop.f32.mrf.mxu2  ;;  %v1076_v55 = vpop.f32.mrf.mxu3  ;;  %v2383_v44 = vsub.f32 %v4740_v6, %v5563_v10  ;;  %v4769_v25 = vand.u32 4294901760, %v545_v45 }
 0x122   : > { %v1077_v39 = vadd.f32 %v1076_v55, %v958_v46  ;;  %1767 = vmatmul.f32.gmra.mxu0 %v4650_v35  ;;  %v843_v55 = vadd.f32 %v4425_v33, %v646_v56  ;;  %v5661_v33 = vand.u32 4294901760, %v4650_v35  ;;  %v5566_v56 = vand.u32 4294901760, %v4754_v5 }
 0x123   : > { %v2384_v46 = vand.u32 4294901760, %v2383_v44  ;;  %2190 = vmatpush.msrb.mxu0 %v4769_v25  ;;  %v4779_v44 = vsub.f32 %v545_v45, %v4769_v25  ;;  %2641 = vmatpush.msra.mxu3 %v4769_v25 }
 0x124   : > { %v1226_v8 = vadd.f32 %v1225_v32, %v1077_v39  ;;  %v1464_v39 = vsub.f32 %v4726_v26, %v5564_v9  ;;  %v963_v10 = vadd.f32 %v962_v29, %v843_v55  ;;  %v654_v29 = vadd.f32 %v4213_v28, %v4444_v30  ;;  %v4787_v9 = vld [vmem:[%s3565_s26 + $0x6a] sm:$0xff] }
 0x125   : > { %v1326_v13 = vpop.f32.mrf.mxu1  ;;  %2385 = vmatpush.msrb.mxu1 %v2384_v46  ;;  %2522 = vmatpush.msra.mxu2 %v4779_v44  ;;  %v1472_v28 = vsub.f32 %v4754_v5, %v5566_v56 }
 0x126   : > { %v4760_v49 = vadd.f32 %v1322_v41, %v1226_v8  ;;  %1458 = vmatmul.f32.gmra.mxu2 %v1457_v62  ;;  %1647 = vmatmul.f32.gmra.mxu3 %v4630_v24  ;;  %v4775_v8 = vand.u32 4294901760, %v4673_v43  ;;  %v1465_v35 = vand.u32 4294901760, %v1464_v39  ;;  %v847_v39 = vadd.f32 %v4472_v60, %v654_v29 }
 0x127   : > { %v1233_v32 = vpop.f32.mrf.mxu0 }
 0x128   : > { %5660 = vst [vmem:[#allocation15_spill] sm:$0xff] %v4760_v49  ;;  %1887 = vmatmul.f32.gmra.mxu1 %v5661_v33  ;;  %v5565_v33 = vand.u32 4294901760, %v4779_v44  ;;  %v4797_v30 = vsub.f32 %v4673_v43, %v4775_v8 }
 0x129   : > { %v967_v41 = vpop.f32.mrf.mxu2  ;;  %v1082_v62 = vpop.f32.mrf.mxu3  ;;  %5662 = vst [vmem:[#allocation16_spill] sm:$0xff] %v4775_v8 }
 0x12a   : > { %v1083_v55 = vadd.f32 %v1082_v62, %v963_v10  ;;  %1772 = vmatmul.f32.gmra.mxu0 %v4688_v57  ;;  %v2389_v10 = vsub.f32 %v4779_v44, %v5565_v33  ;;  %v968_v60 = vadd.f32 %v967_v41, %v847_v39 }
 0x12c   : > { %v1230_v46 = vadd.f32 %v1229_v21, %v1083_v55  ;;  %v544_v21 = vld [vmem:[%s5509_s2 + $0x128] sm:$0xff]  ;;  %v2390_v55 = vand.u32 4294901760, %v2389_v10  ;;  %v417_v10 = vld [vmem:[%s4812_s13] sm:$0x3] }
 0x12d   : > { %v1330_v45 = vpop.f32.mrf.mxu1  ;;  %v4814_v33 = vand.u32 4294901760, %v544_v21  ;;  %v419_v39 = vrot.slane %v417_v10, 2 }
 0x12e   : > { %v4803_v62 = vadd.f32 %v1326_v13, %v1230_v46  ;;  %1466 = vmatmul.f32.gmra.mxu2 %v1465_v35  ;;  %1651 = vmatmul.f32.gmra.mxu3 %v4668_v58  ;;  %v5664_v13 = vand.u32 4294901760, %v4688_v57  ;;  %v1473_v46 = vand.u32 4294901760, %v1472_v28  ;;  %v4827_v57 = vand.u32 4294901760, %v4711_v48 }
 0x12f   : > { %v1237_v43 = vpop.f32.mrf.mxu0  ;;  %2391 = vmatpush.msrb.mxu1 %v2390_v55  ;;  %2192 = vmatpush.msrb.mxu0 %v4814_v33  ;;  %v4821_v58 = vsub.f32 %v544_v21, %v4814_v33  ;;  %v4832_v55 = vld [vmem:[%s3565_s26 + $0x72] sm:$0xff]  ;;  %421 = vst [vmem:[#allocation2 + $0xd0] sm:$0xc0] %v419_v39 }
 0x130   : > { %5663 = vst [vmem:[#allocation17_spill] sm:$0xff] %v4803_v62  ;;  %1893 = vmatmul.f32.gmra.mxu1 %v5664_v13  ;;  %2643 = vmatpush.msra.mxu3 %v4814_v33  ;;  %v400_v13 = vld [vmem:[%s3565_s26 + $0x7a] sm:$0x3f]  ;;  %v4847_v10 = vsub.f32 %v4711_v48, %v4827_v57 }
 0x131   : > { %v972_v29 = vpop.f32.mrf.mxu2  ;;  %v1088_v35 = vpop.f32.mrf.mxu3  ;;  %5665 = vst [vmem:[#allocation18_spill] sm:$0xff] %v4827_v57  ;;  %v5571_v28 = vand.u32 4294901760, %v4821_v58  ;;  %2525 = vmatpush.msra.mxu2 %v4821_v58 }
 0x132   : > { %v973_v62 = vadd.f32 %v972_v29, %v4249_v18  ;;  %v1089_v41 = vadd.f32 %v1088_v35, %v968_v60  ;;  %1777 = vmatmul.f32.gmra.mxu0 %v4726_v26  ;;  %v5666_v18 = vand.u32 4294901760, %v4797_v30  ;;  %416 = vst [vmem:[#allocation2 + $0xd0] sm:$0x3f] %v400_v13  ;;  %v5668_v13 = vand.u32 4294901760, %v4726_v26 }
 0x133   : > { %v2395_v29 = vsub.f32 %v4821_v58, %v5571_v28  ;;  %v5669_v28 = vld [vmem:[#allocation3_spill] sm:$0xff]  ;;  %v5575_v39 = vand.u32 4294901760, %v4847_v10 }
 0x134   : > { %v1234_v21 = vadd.f32 %v1233_v32, %v1089_v41  ;;  %v1480_v60 = vsub.f32 %v4797_v30, %v5666_v18  ;;  %v543_v32 = vld [vmem:[%s5509_s2 + $0x120] sm:$0xff] }
 0x135   : > { %v1334_v56 = vpop.f32.mrf.mxu1  ;;  %v2396_v18 = vand.u32 4294901760, %v2395_v29  ;;  %v4852_v24 = vand.u32 4294901760, %v543_v32  ;;  %v4864_v29 = vand.u32 4294901760, %v4749_v19 }
 0x136   : > { %v4842_v35 = vadd.f32 %v1330_v45, %v1234_v21  ;;  %1474 = vmatmul.f32.gmra.mxu2 %v1473_v46  ;;  %1655 = vmatmul.f32.gmra.mxu3 %v4706_v22  ;;  %v1481_v21 = vand.u32 4294901760, %v1480_v60 }
 0x137   : > { %v1241_v41 = vpop.f32.mrf.mxu0  ;;  %2397 = vmatpush.msrb.mxu1 %v2396_v18  ;;  %2194 = vmatpush.msrb.mxu0 %v4852_v24  ;;  %v4858_v48 = vsub.f32 %v543_v32, %v4852_v24  ;;  %5670 = vst [vmem:[#allocation3_spill] sm:$0xff] %v4864_v29  ;;  %v1488_v32 = vsub.f32 %v4847_v10, %v5575_v39  ;;  %v5673_v39 = vld [vmem:[#allocation4_spill] sm:$0xff] }
 0x138   : > { %5667 = vst [vmem:[#allocation19_spill] sm:$0xff] %v4842_v35  ;;  %1899 = vmatmul.f32.gmra.mxu1 %v5668_v13  ;;  %2645 = vmatpush.msra.mxu3 %v4852_v24  ;;  %v4880_v13 = vsub.f32 %v4749_v19, %v4864_v29 }
 0x139   : > { %v977_v45 = vpop.f32.mrf.mxu2  ;;  %v1094_v46 = vpop.f32.mrf.mxu3  ;;  %v5574_v26 = vand.u32 4294901760, %v4858_v48  ;;  %2528 = vmatpush.msra.mxu2 %v4858_v48 }
 0x13a   : > { %v978_v22 = vadd.f32 %v977_v45, %v5669_v28  ;;  %v1095_v35 = vadd.f32 %v1094_v46, %v973_v62  ;;  %1782 = vmatmul.f32.gmra.mxu0 %v4754_v5  ;;  %v5579_v49 = vand.u32 4294901760, %v4880_v13 }
 0x13b   : > { %v2401_v28 = vsub.f32 %v4858_v48, %v5574_v26  ;;  %v4890_v26 = vand.u32 4294901760, %v4787_v9 }
 0x13c   : > { %v1238_v60 = vadd.f32 %v1237_v43, %v1095_v35  ;;  %v542_v43 = vld [vmem:[%s5509_s2 + $0x118] sm:$0xff] }
 0x13d   : > { %v1338_v18 = vpop.f32.mrf.mxu1  ;;  %v2402_v45 = vand.u32 4294901760, %v2401_v28  ;;  %v4885_v46 = vand.u32 4294901760, %v542_v43  ;;  %v1489_v28 = vand.u32 4294901760, %v1488_v32  ;;  %v1496_v32 = vsub.f32 %v4880_v13, %v5579_v49 }
 0x13e   : > { %v4872_v62 = vadd.f32 %v1334_v56, %v1238_v60  ;;  %1482 = vmatmul.f32.gmra.mxu2 %v1481_v21  ;;  %1659 = vmatmul.f32.gmra.mxu3 %v4736_v36  ;;  %v5672_v56 = vand.u32 4294901760, %v4754_v5 }
 0x13f   : > { %v1245_v35 = vpop.f32.mrf.mxu0  ;;  %2403 = vmatpush.msrb.mxu1 %v2402_v45  ;;  %2196 = vmatpush.msrb.mxu0 %v4885_v46  ;;  %v4894_v19 = vsub.f32 %v542_v43, %v4885_v46  ;;  %v4904_v43 = vsub.f32 %v4787_v9, %v4890_v26 }
 0x140   : > { %5671 = vst [vmem:[#allocation20_spill] sm:$0xff] %v4872_v62  ;;  %1905 = vmatmul.f32.gmra.mxu1 %v5672_v56  ;;  %2647 = vmatpush.msra.mxu3 %v4885_v46 }
 0x141   : > { %v982_v21 = vpop.f32.mrf.mxu2  ;;  %v1100_v60 = vpop.f32.mrf.mxu3  ;;  %v5578_v5 = vand.u32 4294901760, %v4894_v19  ;;  %2531 = vmatpush.msra.mxu2 %v4894_v19 }
 0x142   : > { %v983_v36 = vadd.f32 %v982_v21, %v5673_v39  ;;  %v1101_v62 = vadd.f32 %v1100_v60, %v978_v22  ;;  %1787 = vmatmul.f32.gmra.mxu0 %v4797_v30  ;;  %v5675_v60 = vand.u32 4294901760, %v4797_v30 }
 0x143   : > { %v2407_v22 = vsub.f32 %v4894_v19, %v5578_v5 }
 0x144   : > { %v1242_v45 = vadd.f32 %v1241_v41, %v1101_v62  ;;  %v541_v41 = vld [vmem:[%s5509_s2 + $0x110] sm:$0xff] }
 0x145   : > { %v1342_v56 = vpop.f32.mrf.mxu1  ;;  %v2408_v9 = vand.u32 4294901760, %v2407_v22  ;;  %v4918_v21 = vand.u32 4294901760, %v541_v41  ;;  %v4930_v22 = vand.u32 4294901760, %v4832_v55 }
 0x146   : > { %v4909_v39 = vadd.f32 %v1338_v18, %v1242_v45  ;;  %1490 = vmatmul.f32.gmra.mxu2 %v1489_v28  ;;  %1663 = vmatmul.f32.gmra.mxu3 %v4775_v8  ;;  %v5582_v28 = vand.u32 4294901760, %v4904_v43 }
 0x147   : > { %v1249_v62 = vpop.f32.mrf.mxu0  ;;  %2409 = vmatpush.msrb.mxu1 %v2408_v9  ;;  %2198 = vmatpush.msrb.mxu0 %v4918_v21  ;;  %v4925_v5 = vsub.f32 %v541_v41, %v4918_v21 }
 0x148   : > { %5674 = vst [vmem:[#allocation4_spill] sm:$0xff] %v4909_v39  ;;  %1911 = vmatmul.f32.gmra.mxu1 %v5675_v60  ;;  %v1497_v39 = vand.u32 4294901760, %v1496_v32  ;;  %2649 = vmatpush.msra.mxu3 %v4918_v21  ;;  %v1504_v41 = vsub.f32 %v4904_v43, %v5582_v28  ;;  %v4946_v32 = vsub.f32 %v4832_v55, %v4930_v22 }
 0x149   : > { %v987_v18 = vpop.f32.mrf.mxu2  ;;  %v1106_v45 = vpop.f32.mrf.mxu3  ;;  %v5583_v30 = vand.u32 4294901760, %v4925_v5  ;;  %2534 = vmatpush.msra.mxu2 %v4925_v5 }
 0x14a   : > { %v988_v49 = vadd.f32 %v987_v18, %v4343_v11  ;;  %v1107_v8 = vadd.f32 %v1106_v45, %v983_v36  ;;  %1792 = vmatmul.f32.gmra.mxu0 %v4847_v10  ;;  %v505_v18 = vld [vmem:[#allocation2 + $0xd0] sm:$0xff] }
 0x14b   : > { %v2413_v11 = vsub.f32 %v4925_v5, %v5583_v30  ;;  %v1505_v30 = vand.u32 4294901760, %v1504_v41  ;;  %v4962_v3 = vand.u32 4294901760, %v505_v18  ;;  %v422_v41 = vld [vmem:[%s3565_s26 + $0x4] sm:$0xff] }
 0x14c   : > { %v1246_v9 = vadd.f32 %v1245_v35, %v1107_v8  ;;  %v540_v8 = vld [vmem:[%s5509_s2 + $0x108] sm:$0xff] }
 0x14d   : > { %v1346_v60 = vpop.f32.mrf.mxu1  ;;  %v2414_v45 = vand.u32 4294901760, %v2413_v11  ;;  %v4951_v28 = vand.u32 4294901760, %v540_v8  ;;  %v5589_v11 = vand.u32 4294901760, %v4946_v32 }
 0x14e   : > { %v4941_v36 = vadd.f32 %v1342_v56, %v1246_v9  ;;  %1498 = vmatmul.f32.gmra.mxu2 %v1497_v39  ;;  %1667 = vmatmul.f32.gmra.mxu3 %v4827_v57  ;;  %v5677_v56 = vand.u32 4294901760, %v4847_v10 }
 0x14f   : > { %v1253_v35 = vpop.f32.mrf.mxu0  ;;  %2415 = vmatpush.msrb.mxu1 %v2414_v45  ;;  %2200 = vmatpush.msrb.mxu0 %v4951_v28  ;;  %v4957_v55 = vsub.f32 %v540_v8, %v4951_v28  ;;  %v539_v8 = vld [vmem:[%s5509_s2 + $0x100] sm:$0xff] }
 0x150   : > { %5676 = vst [vmem:[#allocation21_spill] sm:$0xff] %v4941_v36  ;;  %1917 = vmatmul.f32.gmra.mxu1 %v5677_v56  ;;  %2651 = vmatpush.msra.mxu3 %v4951_v28  ;;  %v4974_v56 = vand.u32 4294901760, %v539_v8 }
 0x151   : > { %v992_v39 = vpop.f32.mrf.mxu2  ;;  %v1112_v9 = vpop.f32.mrf.mxu3  ;;  %v5588_v10 = vand.u32 4294901760, %v4957_v55  ;;  %2537 = vmatpush.msra.mxu2 %v4957_v55 }
 0x152   : > { %v993_v57 = vadd.f32 %v992_v39, %v4371_v38  ;;  %v1113_v36 = vadd.f32 %v1112_v9, %v988_v49  ;;  %1797 = vmatmul.f32.gmra.mxu0 %v4880_v13  ;;  %5678 = vst [vmem:[#allocation22_spill] sm:$0xff] %v4974_v56  ;;  %2653 = vmatpush.msra.mxu3 %v4974_v56 }
 0x153   : > { %v2419_v49 = vsub.f32 %v4957_v55, %v5588_v10  ;;  %2202 = vmatpush.msrb.mxu0 %v4974_v56  ;;  %v4987_v10 = vsub.f32 %v539_v8, %v4974_v56  ;;  %v5683_v56 = vand.u32 4294901760, %v4501_v4  ;;  %v5685_v4 = vand.u32 4294901760, %v4904_v43 }
 0x154   : > { %v1250_v45 = vadd.f32 %v1249_v62, %v1113_v36  ;;  %v1512_v62 = vsub.f32 %v4946_v32, %v5589_v11  ;;  %v4983_v36 = vsub.f32 %v505_v18, %v4962_v3 }
 0x155   : > { %v1350_v38 = vpop.f32.mrf.mxu1  ;;  %v2420_v16 = vand.u32 4294901760, %v2419_v49  ;;  %v2424_v18 = vand.u32 4294901760, %v4987_v10  ;;  %2540 = vmatpush.msra.mxu2 %v4987_v10 }
 0x156   : > { %v4976_v39 = vadd.f32 %v1346_v60, %v1250_v45  ;;  %1506 = vmatmul.f32.gmra.mxu2 %v1505_v30  ;;  %1671 = vmatmul.f32.gmra.mxu3 %v4864_v29  ;;  %v5680_v30 = vand.u32 4294901760, %v4880_v13  ;;  %v5681_v60 = vand.u32 4294901760, %v4406_v51  ;;  %v1513_v8 = vand.u32 4294901760, %v1512_v62  ;;  %v423_v13 = vld [vmem:[%s3565_s26 + $0xc] sm:$0xff] }
 0x157   : > { %v1257_v9 = vpop.f32.mrf.mxu0  ;;  %2421 = vmatpush.msrb.mxu1 %v2420_v16  ;;  %v2425_v51 = vsub.f32 %v4987_v10, %v2424_v18 }
 0x158   : > { %5679 = vst [vmem:[#allocation23_spill] sm:$0xff] %v4976_v39  ;;  %1923 = vmatmul.f32.gmra.mxu1 %v5680_v30  ;;  %2754 = vmatpush.msra.mxu0 %v5681_v60  ;;  %v1519_v39 = vand.u32 4294901760, %v4983_v36  ;;  %v5682_v30 = vand.u32 4294901760, %v4454_v31 }
 0x159   : > { %v997_v45 = vpop.f32.mrf.mxu2  ;;  %v1118_v11 = vpop.f32.mrf.mxu3  ;;  %v2426_v63 = vand.u32 4294901760, %v2425_v51 }
 0x15a   : > { %v998_v49 = vadd.f32 %v997_v45, %v4410_v7  ;;  %v1119_v29 = vadd.f32 %v1118_v11, %v993_v57  ;;  %1802 = vmatmul.f32.gmra.mxu0 %v4904_v43  ;;  %v1520_v57 = vsub.f32 %v4983_v36, %v1519_v39  ;;  %v5013_v11 = vand.u32 4294901760, %v422_v41 }
 0x15b   : > { %2758 = vmatpush.msra.mxu0 %v5682_v30  ;;  %2427 = vmatpush.msrb.mxu1 %v2426_v63  ;;  %v5687_v43 = vand.u32 4294901760, %v4625_v59  ;;  %v5689_v59 = vand.u32 4294901760, %v4701_v20  ;;  %v5691_v30 = vand.u32 4294901760, %v4740_v6 }
 0x15c   : > { %v1254_v16 = vadd.f32 %v1253_v35, %v1119_v29  ;;  %v5684_v29 = vand.u32 4294901760, %v4544_v53  ;;  %v5025_v63 = vsub.f32 %v422_v41, %v5013_v11  ;;  %v424_v53 = vld [vmem:[%s3565_s26 + $0x14] sm:$0xff] }
 0x15d   : > { %v1354_v60 = vpop.f32.mrf.mxu1  ;;  %2762 = vmatpush.msra.mxu0 %v5683_v56  ;;  %2881 = vmatpush.msra.mxu1 %v4397_v50  ;;  %v5686_v56 = vand.u32 4294901760, %v4586_v17  ;;  %v5688_v17 = vand.u32 4294901760, %v4663_v42 }
 0x15e   : > { %v5007_v7 = vadd.f32 %v1350_v38, %v1254_v16  ;;  %1514 = vmatmul.f32.gmra.mxu2 %v1513_v8  ;;  %1675 = vmatmul.f32.gmra.mxu3 %v4890_v26  ;;  %v1521_v8 = vand.u32 4294901760, %v1520_v57  ;;  %v5603_v41 = vand.u32 4294901760, %v5025_v63 }
 0x15f   : > { %v1261_v31 = vpop.f32.mrf.mxu0  ;;  %2766 = vmatpush.msra.mxu0 %v5684_v29  ;;  %2883 = vmatpush.msra.mxu1 %v4446_v47  ;;  %v5038_v47 = vand.u32 4294901760, %v423_v13 }
 0x160   : > { %1929 = vmatmul.f32.gmra.mxu1 %v5685_v4  ;;  %v5068_v4 = vand.u32 4294901760, %v424_v53 }
 0x161   : > { %v1002_v35 = vpop.f32.mrf.mxu2  ;;  %v1124_v38 = vpop.f32.mrf.mxu3  ;;  %2770 = vmatpush.msra.mxu0 %v5686_v56  ;;  %2885 = vmatpush.msra.mxu1 %v4491_v37  ;;  %v5690_v37 = vand.u32 4294901760, %v4946_v32  ;;  %v5054_v20 = vsub.f32 %v423_v13, %v5038_v47 }
 0x162   : > { %v1003_v62 = vadd.f32 %v1002_v35, %v4457_v23  ;;  %v1125_v45 = vadd.f32 %v1124_v38, %v998_v49  ;;  %1807 = vmatmul.f32.gmra.mxu0 %v4946_v32  ;;  %v425_v32 = vld [vmem:[%s3565_s26 + $0x1c] sm:$0xff]  ;;  %v5695_v35 = vand.u32 4294901760, %v4894_v19 }
 0x163   : > { %2774 = vmatpush.msra.mxu0 %v5687_v43  ;;  %2887 = vmatpush.msra.mxu1 %v4534_v12  ;;  %v2206_v12 = vsub.f32 %v5025_v63, %v5603_v41 }
 0x164   : > { %v1258_v51 = vadd.f32 %v1257_v9, %v1125_v45 }
 0x165   : > { %v1358_v50 = vpop.f32.mrf.mxu1  ;;  %2778 = vmatpush.msra.mxu0 %v5688_v17  ;;  %2889 = vmatpush.msra.mxu1 %v4577_v2  ;;  %v5692_v2 = vand.u32 4294901760, %v4779_v44  ;;  %v2207_v13 = vand.u32 4294901760, %v2206_v12 }
 0x166   : > { %v5034_v23 = vadd.f32 %v1354_v60, %v1258_v51  ;;  %1522 = vmatmul.f32.gmra.mxu2 %v1521_v8  ;;  %1679 = vmatmul.f32.gmra.mxu3 %v4930_v22  ;;  %v5097_v8 = vand.u32 4294901760, %v425_v32 }
 0x167   : > { %v1265_v49 = vpop.f32.mrf.mxu0  ;;  %2782 = vmatpush.msra.mxu0 %v5689_v59  ;;  %2891 = vmatpush.msra.mxu1 %v4617_v52  ;;  %v5602_v52 = vand.u32 4294901760, %v5054_v20  ;;  %v5698_v59 = vld [vmem:[#allocation22_spill] sm:$0xff] }
 0x168   : > { %1935 = vmatmul.f32.gmra.mxu1 %v5690_v37  ;;  %v5109_v51 = vsub.f32 %v425_v32, %v5097_v8 }
 0x169   : > { %v1007_v42 = vpop.f32.mrf.mxu2  ;;  %v1130_v9 = vpop.f32.mrf.mxu3  ;;  %2786 = vmatpush.msra.mxu0 %v5691_v30  ;;  %2893 = vmatpush.msra.mxu1 %v4655_v0  ;;  %v5694_v0 = vand.u32 4294901760, %v4858_v48  ;;  %v5083_v48 = vsub.f32 %v424_v53, %v5068_v4 }
 0x16a   : > { %v1008_v16 = vadd.f32 %v1007_v42, %v4503_v54  ;;  %v1131_v60 = vadd.f32 %v1130_v9, %v1003_v62  ;;  %1812 = vmatmul.f32.gmra.mxu0 %v4983_v36  ;;  %v5693_v54 = vand.u32 4294901760, %v4821_v58  ;;  %v426_v36 = vld [vmem:[%s3565_s26 + $0x24] sm:$0xff] }
 0x16b   : > { %2790 = vmatpush.msra.mxu0 %v5692_v2  ;;  %2895 = vmatpush.msra.mxu1 %v4693_v14  ;;  %v2214_v14 = vsub.f32 %v5054_v20, %v5602_v52  ;;  %v5119_v17 = vand.u32 4294901760, %v426_v36  ;;  %v5700_v2 = vld [vmem:[#allocation5_spill] sm:$0xff] }
 0x16c   : > { %v1262_v6 = vadd.f32 %v1261_v31, %v1131_v60 }
 0x16d   : > { %v1362_v57 = vpop.f32.mrf.mxu1  ;;  %2794 = vmatpush.msra.mxu0 %v5693_v54  ;;  %2897 = vmatpush.msra.mxu1 %v4731_v27  ;;  %v2215_v45 = vand.u32 4294901760, %v2214_v14  ;;  %v5128_v30 = vsub.f32 %v426_v36, %v5119_v17 }
 0x16e   : > { %v5063_v29 = vadd.f32 %v1358_v50, %v1262_v6  ;;  %1683 = vmatmul.f32.gmra.mxu3 %v4962_v3  ;;  %2010 = vmatmul.f32.vlgmr.msrb.gmra.mxu2 %v4365_v34 }
 0x16f   : > { %v1738_v44 = vpop.f32.mrf.mxu0  ;;  %2798 = vmatpush.msra.mxu0 %v5694_v0  ;;  %2899 = vmatpush.msra.mxu1 %v4769_v25  ;;  %v5601_v25 = vand.u32 4294901760, %v5083_v48 }
 0x170   : > { %1941 = vmatmul.f32.gmra.mxu1 %v1519_v39  ;;  %v5696_v39 = vand.u32 4294901760, %v4925_v5 }
 0x171   : > { %v1136_v58 = vpop.f32.mrf.mxu3  ;;  %v1403_v31 = vpop.f32.mrf.mxu2  ;;  %2802 = vmatpush.msra.mxu0 %v5695_v35  ;;  %2901 = vmatpush.msra.mxu1 %v4814_v33  ;;  %v2222_v43 = vsub.f32 %v5083_v48, %v5601_v25 }
 0x172   : > { %v1137_v38 = vadd.f32 %v1136_v58, %v1008_v16  ;;  %v1404_v56 = vadd.f32 %v1403_v31, %v4564_v1  ;;  %2208 = vmatmul.f32.vlgmr.msrb.gmra.mxu0 %v2207_v13  ;;  %v5697_v1 = vand.u32 4294901760, %v4957_v55  ;;  %v428_v16 = vld [vmem:[%s3565_s26 + $0x34] sm:$0xff]  ;;  %v5701_v58 = vld [vmem:[#allocation11_spill] sm:$0xff] }
 0x173   : > { %2806 = vmatpush.msra.mxu0 %v5696_v39  ;;  %2903 = vmatpush.msra.mxu1 %v4852_v24  ;;  %v427_v24 = vld [vmem:[%s3565_s26 + $0x2c] sm:$0xff] }
 0x174   : > { %v1266_v27 = vadd.f32 %v1265_v49, %v1137_v38  ;;  %v5136_v54 = vand.u32 4294901760, %v427_v24 }
 0x175   : > { %v1852_v19 = vpop.f32.mrf.mxu1  ;;  %2810 = vmatpush.msra.mxu0 %v5697_v1  ;;  %2905 = vmatpush.msra.mxu1 %v4885_v46  ;;  %v5600_v46 = vand.u32 4294901760, %v5109_v51 }
 0x176   : > { %v5092_v62 = vadd.f32 %v1362_v57, %v1266_v27  ;;  %2014 = vmatmul.f32.gmra.mxu2 %v4414_v61  ;;  %2107 = vmatmul.f32.vlgmr.msrb.gmra.mxu3 %v4365_v34  ;;  %v5598_v57 = vand.u32 4294901760, %v5128_v30  ;;  %v5702_v27 = vld [vmem:[#allocation6_spill] sm:$0xff] }
 0x177   : > { %v1743_v5 = vpop.f32.mrf.mxu0  ;;  %2814 = vmatpush.msra.mxu0 %v2424_v18  ;;  %2907 = vmatpush.msra.mxu1 %v4918_v21 }
 0x178   : > { %2429 = vmatmul.f32.vlgmr.msrb.gmra.mxu1 %v5013_v11  ;;  %v2238_v38 = vsub.f32 %v5128_v30, %v5598_v57  ;;  %v5715_v57 = vld [vmem:[#allocation16_spill] sm:$0xff] }
 0x179   : > { %v1411_v33 = vpop.f32.mrf.mxu2  ;;  %v1624_v55 = vpop.f32.mrf.mxu3  ;;  %2909 = vmatpush.msra.mxu1 %v4951_v28  ;;  %v5699_v28 = vld [vmem:[#allocation9_spill] sm:$0xff] }
 0x17a   : > { %v1412_v34 = vadd.f32 %v1411_v33, %v4604_v40  ;;  %v1625_v53 = vadd.f32 %v1624_v55, %v1404_v56  ;;  %2216 = vmatmul.f32.gmra.mxu0 %v2215_v45  ;;  %v2223_v40 = vand.u32 4294901760, %v2222_v43  ;;  %v429_v56 = vld [vmem:[%s3565_s26 + $0x3c] sm:$0xff]  ;;  %v5152_v45 = vand.u32 4294901760, %v428_v16 }
 0x17b   : > { %2911 = vmatpush.msra.mxu1 %v5698_v59 }
 0x17c   : > { %v1739_v10 = vadd.f32 %v1738_v44, %v1625_v53 }
 0x17d   : > { %v1858_v18 = vpop.f32.mrf.mxu1 }
 0x17e   : > { %v5114_v50 = vadd.f32 %v1852_v19, %v1739_v10  ;;  %2018 = vmatmul.f32.gmra.mxu2 %v4462_v15  ;;  %2111 = vmatmul.f32.gmra.mxu3 %v4414_v61  ;;  %v2230_v61 = vsub.f32 %v5109_v51, %v5600_v46  ;;  %v2239_v19 = vand.u32 4294901760, %v2238_v38  ;;  %v5160_v10 = vsub.f32 %v428_v16, %v5152_v45  ;;  %v437_v46 = vld [vmem:[%s3565_s26 + $0x7c] sm:$0xf] }
 0x17f   : > { %v1748_v49 = vpop.f32.mrf.mxu0  ;;  %453 = vst [vmem:[#allocation2 + $0x100] sm:$0xf] %v437_v46 }
 0x180   : > { %2433 = vmatmul.f32.gmra.mxu1 %v5038_v47  ;;  %v2231_v6 = vand.u32 4294901760, %v2230_v61 }
 0x181   : > { %v1419_v21 = vpop.f32.mrf.mxu2  ;;  %v1628_v37 = vpop.f32.mrf.mxu3 }
 0x182   : > { %v1420_v42 = vadd.f32 %v1419_v21, %v5699_v28  ;;  %v1629_v9 = vadd.f32 %v1628_v37, %v1412_v34  ;;  %2224 = vmatmul.f32.gmra.mxu0 %v2223_v40  ;;  %v5703_v34 = vld [vmem:[#allocation13_spill] sm:$0xff]  ;;  %v5704_v21 = vld [vmem:[#allocation7_spill] sm:$0xff]  ;;  %v5596_v28 = vand.u32 4294901760, %v5160_v10 }
 0x184   : > { %v1744_v60 = vadd.f32 %v1743_v5, %v1629_v9 }
 0x185   : > { %v1864_v12 = vpop.f32.mrf.mxu1 }
 0x186   : > { %v5131_v32 = vadd.f32 %v1858_v18, %v1744_v60  ;;  %2022 = vmatmul.f32.gmra.mxu2 %v5700_v2  ;;  %2115 = vmatmul.f32.gmra.mxu3 %v4462_v15  ;;  %v5144_v15 = vsub.f32 %v427_v24, %v5136_v54  ;;  %v430_v18 = vld [vmem:[%s3565_s26 + $0x44] sm:$0xff] }
 0x187   : > { %v1753_v13 = vpop.f32.mrf.mxu0  ;;  %v5705_v60 = vld [vmem:[#allocation15_spill] sm:$0xff] }
 0x188   : > { %2437 = vmatmul.f32.gmra.mxu1 %v5068_v4  ;;  %v5597_v1 = vand.u32 4294901760, %v5144_v15 }
 0x189   : > { %v1427_v44 = vpop.f32.mrf.mxu2  ;;  %v1632_v0 = vpop.f32.mrf.mxu3 }
 0x18a   : > { %v1428_v31 = vadd.f32 %v1427_v44, %v5701_v58  ;;  %v1633_v35 = vadd.f32 %v1632_v0, %v1420_v42  ;;  %2232 = vmatmul.f32.gmra.mxu0 %v2231_v6  ;;  %v2246_v24 = vsub.f32 %v5144_v15, %v5597_v1  ;;  %v5168_v42 = vand.u32 4294901760, %v429_v56  ;;  %v431_v44 = vld [vmem:[%s3565_s26 + $0x4c] sm:$0xff] }
 0x18b   : > { %v2254_v6 = vsub.f32 %v5160_v10, %v5596_v28 }
 0x18c   : > { %v1749_v14 = vadd.f32 %v1748_v49, %v1633_v35  ;;  %v2247_v37 = vand.u32 4294901760, %v2246_v24  ;;  %v5706_v35 = vld [vmem:[#allocation8_spill] sm:$0xff] }
 0x18d   : > { %v1870_v36 = vpop.f32.mrf.mxu1  ;;  %v2255_v38 = vand.u32 4294901760, %v2254_v6 }
 0x18e   : > { %v5147_v39 = vadd.f32 %v1864_v12, %v1749_v14  ;;  %2026 = vmatmul.f32.gmra.mxu2 %v5702_v27  ;;  %2119 = vmatmul.f32.gmra.mxu3 %v5700_v2 }
 0x18f   : > { %v1758_v5 = vpop.f32.mrf.mxu0 }
 0x190   : > { %2441 = vmatmul.f32.gmra.mxu1 %v5097_v8 }
 0x191   : > { %v1435_v33 = vpop.f32.mrf.mxu2  ;;  %v1636_v55 = vpop.f32.mrf.mxu3 }
 0x192   : > { %v1436_v53 = vadd.f32 %v1435_v33, %v5703_v34  ;;  %v1637_v43 = vadd.f32 %v1636_v55, %v1428_v31  ;;  %2240 = vmatmul.f32.gmra.mxu0 %v2239_v19  ;;  %v5707_v33 = vld [vmem:[#allocation17_spill] sm:$0xff] }
 0x194   : > { %v1754_v40 = vadd.f32 %v1753_v13, %v1637_v43  ;;  %v5176_v13 = vsub.f32 %v429_v56, %v5168_v42  ;;  %v432_v43 = vld [vmem:[%s3565_s26 + $0x54] sm:$0xff] }
 0x195   : > { %v1876_v49 = vpop.f32.mrf.mxu1 }
 0x196   : > { %v5163_v59 = vadd.f32 %v1870_v36, %v1754_v40  ;;  %2030 = vmatmul.f32.gmra.mxu2 %v5704_v21  ;;  %2123 = vmatmul.f32.gmra.mxu3 %v5702_v27  ;;  %v5594_v14 = vand.u32 4294901760, %v5176_v13  ;;  %v5184_v36 = vand.u32 4294901760, %v430_v18 }
 0x197   : > { %v1763_v9 = vpop.f32.mrf.mxu0 }
 0x198   : > { %2445 = vmatmul.f32.gmra.mxu1 %v5119_v17  ;;  %v2262_v34 = vsub.f32 %v5176_v13, %v5594_v14  ;;  %v5713_v14 = vld [vmem:[#allocation14_spill] sm:$0xff] }
 0x199   : > { %v1443_v61 = vpop.f32.mrf.mxu2  ;;  %v1640_v16 = vpop.f32.mrf.mxu3 }
 0x19a   : > { %v1444_v12 = vadd.f32 %v1443_v61, %v5705_v60  ;;  %v1641_v2 = vadd.f32 %v1640_v16, %v1436_v53  ;;  %2248 = vmatmul.f32.gmra.mxu0 %v2247_v37  ;;  %v5192_v53 = vsub.f32 %v430_v18, %v5184_v36  ;;  %v2263_v37 = vand.u32 4294901760, %v2262_v34 }
 0x19b   : > { %v5200_v16 = vand.u32 4294901760, %v431_v44  ;;  %v5216_v34 = vand.u32 4294901760, %v432_v43 }
 0x19c   : > { %v1759_v0 = vadd.f32 %v1758_v5, %v1641_v2  ;;  %v5593_v61 = vand.u32 4294901760, %v5192_v53  ;;  %v5709_v2 = vld [vmem:[#allocation19_spill] sm:$0xff] }
 0x19d   : > { %v1882_v58 = vpop.f32.mrf.mxu1 }
 0x19e   : > { %v5179_v31 = vadd.f32 %v1876_v49, %v1759_v0  ;;  %2034 = vmatmul.f32.gmra.mxu2 %v5706_v35  ;;  %2127 = vmatmul.f32.gmra.mxu3 %v5704_v21  ;;  %v5708_v21 = vld [vmem:[#allocation10_spill] sm:$0xff]  ;;  %v2270_v0 = vsub.f32 %v5192_v53, %v5593_v61 }
 0x19f   : > { %v1768_v27 = vpop.f32.mrf.mxu0 }
 0x1a0   : > { %2449 = vmatmul.f32.gmra.mxu1 %v5136_v54 }
 0x1a1   : > { %v1451_v56 = vpop.f32.mrf.mxu2  ;;  %v1644_v19 = vpop.f32.mrf.mxu3 }
 0x1a2   : > { %v1452_v5 = vadd.f32 %v1451_v56, %v5707_v33  ;;  %v1645_v55 = vadd.f32 %v1644_v19, %v1444_v12  ;;  %2256 = vmatmul.f32.gmra.mxu0 %v2255_v38  ;;  %v5710_v33 = vld [vmem:[#allocation12_spill] sm:$0xff] }
 0x1a4   : > { %v1764_v24 = vadd.f32 %v1763_v9, %v1645_v55  ;;  %v2271_v55 = vand.u32 4294901760, %v2270_v0 }
 0x1a5   : > { %v1888_v40 = vpop.f32.mrf.mxu1 }
 0x1a6   : > { %v5195_v49 = vadd.f32 %v1882_v58, %v1764_v24  ;;  %2038 = vmatmul.f32.gmra.mxu2 %v5708_v21  ;;  %2131 = vmatmul.f32.gmra.mxu3 %v5706_v35  ;;  %v5208_v58 = vsub.f32 %v431_v44, %v5200_v16  ;;  %v433_v35 = vld [vmem:[%s3565_s26 + $0x5c] sm:$0xff] }
 0x1a7   : > { %v1773_v60 = vpop.f32.mrf.mxu0 }
 0x1a8   : > { %2453 = vmatmul.f32.gmra.mxu1 %v5152_v45 }
 0x1a9   : > { %v1459_v18 = vpop.f32.mrf.mxu2  ;;  %v1648_v12 = vpop.f32.mrf.mxu3 }
 0x1aa   : > { %v1460_v9 = vadd.f32 %v1459_v18, %v5709_v2  ;;  %v1649_v6 = vadd.f32 %v1648_v12, %v1452_v5  ;;  %2264 = vmatmul.f32.gmra.mxu0 %v2263_v37  ;;  %v5595_v5 = vand.u32 4294901760, %v5208_v58  ;;  %v5711_v18 = vld [vmem:[#allocation20_spill] sm:$0xff] }
 0x1ab   : > { %v434_v2 = vld [vmem:[%s3565_s26 + $0x64] sm:$0xff] }
 0x1ac   : > { %v1769_v38 = vadd.f32 %v1768_v27, %v1649_v6 }
 0x1ad   : > { %v1894_v56 = vpop.f32.mrf.mxu1 }
 0x1ae   : > { %v5211_v19 = vadd.f32 %v1888_v40, %v1769_v38  ;;  %2042 = vmatmul.f32.gmra.mxu2 %v5710_v33  ;;  %2135 = vmatmul.f32.gmra.mxu3 %v5708_v21  ;;  %v2278_v40 = vsub.f32 %v5208_v58, %v5595_v5  ;;  %v5224_v21 = vsub.f32 %v432_v43, %v5216_v34  ;;  %v5227_v38 = vand.u32 4294901760, %v433_v35 }
 0x1af   : > { %v1778_v24 = vpop.f32.mrf.mxu0 }
 0x1b0   : > { %2457 = vmatmul.f32.gmra.mxu1 %v5168_v42  ;;  %5712 = vst [vmem:[#allocation22_spill] sm:$0xff] %v5224_v21 }
 0x1b1   : > { %v1467_v44 = vpop.f32.mrf.mxu2  ;;  %v1652_v37 = vpop.f32.mrf.mxu3 }
 0x1b2   : > { %v1468_v27 = vadd.f32 %v1467_v44, %v5711_v18  ;;  %v1653_v12 = vadd.f32 %v1652_v37, %v1460_v9  ;;  %2272 = vmatmul.f32.gmra.mxu0 %v2271_v55  ;;  %v2279_v9 = vand.u32 4294901760, %v2278_v40  ;;  %v5599_v55 = vand.u32 4294901760, %v5224_v21  ;;  %v5714_v18 = vld [vmem:[#allocation4_spill] sm:$0xff] }
 0x1b4   : > { %v1774_v6 = vadd.f32 %v1773_v60, %v1653_v12  ;;  %v5236_v60 = vsub.f32 %v433_v35, %v5227_v38 }
 0x1b5   : > { %v1900_v0 = vpop.f32.mrf.mxu1 }
 0x1b6   : > { %v5229_v61 = vadd.f32 %v1894_v56, %v1774_v6  ;;  %2046 = vmatmul.f32.gmra.mxu2 %v5713_v14  ;;  %2139 = vmatmul.f32.gmra.mxu3 %v5710_v33  ;;  %v2286_v56 = vsub.f32 %v5224_v21, %v5599_v55  ;;  %v435_v33 = vld [vmem:[%s3565_s26 + $0x6c] sm:$0xff]  ;;  %v5606_v28 = vand.u32 4294901760, %v5236_v60  ;;  %v5718_v21 = vld [vmem:[#allocation18_spill] sm:$0xff] }
 0x1b7   : > { %v1783_v44 = vpop.f32.mrf.mxu0 }
 0x1b8   : > { %2461 = vmatmul.f32.gmra.mxu1 %v5184_v36  ;;  %v2287_v35 = vand.u32 4294901760, %v2286_v56  ;;  %v436_v56 = vld [vmem:[%s3565_s26 + $0x74] sm:$0xff]  ;;  %s3329_s26 = sshll.u32 %s5743_s18, 7 }
 0x1b9   : > { %v1475_v43 = vpop.f32.mrf.mxu2  ;;  %v1656_v37 = vpop.f32.mrf.mxu3  ;;  %s5461_s7 = scalar_lea.vmem %s5511_s4, %s3329_s26 }
 0x1ba   : > { %v1476_v12 = vadd.f32 %v1475_v43, %v5714_v18  ;;  %v1657_v5 = vadd.f32 %v1656_v37, %v1468_v27  ;;  %2280 = vmatmul.f32.gmra.mxu0 %v2279_v9  ;;  %v5248_v27 = vand.u32 4294901760, %v434_v2 }
 0x1bc   : > { %v1779_v40 = vadd.f32 %v1778_v24, %v1657_v5  ;;  %v2294_v5 = vsub.f32 %v5236_v60, %v5606_v28  ;;  %v454_v24 = vld [vmem:[%s4812_s13] sm:$0xf]  ;;  %v5257_v55 = vsub.f32 %v434_v2, %v5248_v27 }
 0x1bd   : > { %v1906_v6 = vpop.f32.mrf.mxu1 }
 0x1be   : > { %v5244_v1 = vadd.f32 %v1900_v0, %v1779_v40  ;;  %2050 = vmatmul.f32.gmra.mxu2 %v5715_v57  ;;  %2143 = vmatmul.f32.gmra.mxu3 %v5713_v14  ;;  %v5716_v0 = vld [vmem:[#allocation21_spill] sm:$0xff]  ;;  %5717 = vst [vmem:[#allocation9_spill] sm:$0xff] %v5257_v55  ;;  %v456_v14 = vrot.slane %v454_v24, 4  ;;  %v2295_v28 = vand.u32 4294901760, %v2294_v5 }
 0x1bf   : > { %v1788_v9 = vpop.f32.mrf.mxu0 }
 0x1c0   : > { %2465 = vmatmul.f32.gmra.mxu1 %v5200_v16  ;;  %458 = vst [vmem:[#allocation2 + $0x100] sm:$0xf0] %v456_v14 }
 0x1c1   : > { %v1483_v43 = vpop.f32.mrf.mxu2  ;;  %v1660_v37 = vpop.f32.mrf.mxu3 }
 0x1c2   : > { %v1484_v18 = vadd.f32 %v1483_v43, %v5716_v0  ;;  %v1661_v40 = vadd.f32 %v1660_v37, %v1476_v12  ;;  %2288 = vmatmul.f32.gmra.mxu0 %v2287_v35  ;;  %v5607_v43 = vand.u32 4294901760, %v5257_v55  ;;  %v5266_v12 = vand.u32 4294901760, %v435_v33 }
 0x1c4   : > { %v1784_v25 = vadd.f32 %v1783_v44, %v1661_v40  ;;  %v5719_v44 = vld [vmem:[#allocation23_spill] sm:$0xff] }
 0x1c5   : > { %v1912_v52 = vpop.f32.mrf.mxu1  ;;  %v5720_v40 = vld [vmem:[#allocation3_spill] sm:$0xff] }
 0x1c6   : > { %v5261_v41 = vadd.f32 %v1906_v6, %v1784_v25  ;;  %2054 = vmatmul.f32.gmra.mxu2 %v5718_v21  ;;  %2147 = vmatmul.f32.gmra.mxu3 %v5715_v57  ;;  %v2302_v25 = vsub.f32 %v5257_v55, %v5607_v43  ;;  %v5274_v57 = vsub.f32 %v435_v33, %v5266_v12 }
 0x1c7   : > { %v1793_v2 = vpop.f32.mrf.mxu0 }
 0x1c8   : > { %2469 = vmatmul.f32.gmra.mxu1 %v5216_v34  ;;  %v2303_v14 = vand.u32 4294901760, %v2302_v25 }
 0x1c9   : > { %v1491_v35 = vpop.f32.mrf.mxu2  ;;  %v1664_v37 = vpop.f32.mrf.mxu3 }
 0x1ca   : > { %v1492_v24 = vadd.f32 %v1491_v35, %v5719_v44  ;;  %v1665_v46 = vadd.f32 %v1664_v37, %v1484_v18  ;;  %2296 = vmatmul.f32.gmra.mxu0 %v2295_v28  ;;  %v5610_v35 = vand.u32 4294901760, %v5274_v57  ;;  %v5281_v18 = vand.u32 4294901760, %v436_v56 }
 0x1cc   : > { %v1789_v6 = vadd.f32 %v1788_v9, %v1665_v46  ;;  %v506_v46 = vld [vmem:[#allocation2 + $0x100] sm:$0xff] }
 0x1cd   : > { %v1918_v5 = vpop.f32.mrf.mxu1 }
 0x1ce   : > { %v5276_v0 = vadd.f32 %v1912_v52, %v1789_v6  ;;  %2058 = vmatmul.f32.gmra.mxu2 %v5720_v40  ;;  %2151 = vmatmul.f32.gmra.mxu3 %v5718_v21  ;;  %v2310_v52 = vsub.f32 %v5274_v57, %v5610_v35  ;;  %v5289_v21 = vsub.f32 %v436_v56, %v5281_v18 }
 0x1cf   : > { %v1798_v28 = vpop.f32.mrf.mxu0 }
 0x1d0   : > { %2473 = vmatmul.f32.gmra.mxu1 %v5227_v38  ;;  %v2311_v55 = vand.u32 4294901760, %v2310_v52 }
 0x1d1   : > { %v1499_v37 = vpop.f32.mrf.mxu2  ;;  %v1668_v44 = vpop.f32.mrf.mxu3 }
 0x1d2   : > { %v1500_v33 = vadd.f32 %v1499_v37, %v5007_v7  ;;  %v1669_v9 = vadd.f32 %v1668_v44, %v1492_v24  ;;  %2304 = vmatmul.f32.gmra.mxu0 %v2303_v14  ;;  %v5611_v7 = vand.u32 4294901760, %v5289_v21  ;;  %v5296_v24 = vand.u32 4294901760, %v506_v46 }
 0x1d4   : > { %v1794_v25 = vadd.f32 %v1793_v2, %v1669_v9 }
 0x1d5   : > { %v1924_v6 = vpop.f32.mrf.mxu1 }
 0x1d6   : > { %v5291_v43 = vadd.f32 %v1918_v5, %v1794_v25  ;;  %2062 = vmatmul.f32.gmra.mxu2 %v4890_v26  ;;  %2155 = vmatmul.f32.gmra.mxu3 %v5720_v40  ;;  %v2318_v5 = vsub.f32 %v5289_v21, %v5611_v7  ;;  %v5304_v40 = vsub.f32 %v506_v46, %v5296_v24 }
 0x1d7   : > { %v1803_v14 = vpop.f32.mrf.mxu0 }
 0x1d8   : > { %2477 = vmatmul.f32.gmra.mxu1 %v5248_v27  ;;  %v2319_v35 = vand.u32 4294901760, %v2318_v5 }
 0x1d9   : > { %v1507_v37 = vpop.f32.mrf.mxu2  ;;  %v1672_v56 = vpop.f32.mrf.mxu3 }
 0x1da   : > { %v1508_v44 = vadd.f32 %v1507_v37, %v5034_v23  ;;  %v1673_v2 = vadd.f32 %v1672_v56, %v1500_v33  ;;  %2312 = vmatmul.f32.gmra.mxu0 %v2311_v55  ;;  %v2325_v23 = vand.u32 4294901760, %v5304_v40 }
 0x1dc   : > { %v1799_v9 = vadd.f32 %v1798_v28, %v1673_v2  ;;  %v2326_v28 = vsub.f32 %v5304_v40, %v2325_v23 }
 0x1dd   : > { %v1930_v52 = vpop.f32.mrf.mxu1 }
 0x1de   : > { %v5306_v25 = vadd.f32 %v1924_v6, %v1799_v9  ;;  %2066 = vmatmul.f32.gmra.mxu2 %v4930_v22  ;;  %2159 = vmatmul.f32.gmra.mxu3 %v4890_v26  ;;  %v2327_v26 = vand.u32 4294901760, %v2326_v28 }
 0x1df   : > { %v1808_v33 = vpop.f32.mrf.mxu0 }
 0x1e0   : > { %2481 = vmatmul.f32.gmra.mxu1 %v5266_v12 }
 0x1e1   : > { %v1515_v55 = vpop.f32.mrf.mxu2  ;;  %v1676_v37 = vpop.f32.mrf.mxu3 }
 0x1e2   : > { %v1516_v56 = vadd.f32 %v1515_v55, %v5063_v29  ;;  %v1677_v46 = vadd.f32 %v1676_v37, %v1508_v44  ;;  %2320 = vmatmul.f32.gmra.mxu0 %v2319_v35 }
 0x1e4   : > { %v1804_v6 = vadd.f32 %v1803_v14, %v1677_v46 }
 0x1e5   : > { %v1936_v2 = vpop.f32.mrf.mxu1 }
 0x1e6   : > { %v5316_v9 = vadd.f32 %v1930_v52, %v1804_v6  ;;  %2070 = vmatmul.f32.gmra.mxu2 %v4962_v3  ;;  %2163 = vmatmul.f32.gmra.mxu3 %v4930_v22 }
 0x1e7   : > { %v1813_v5 = vpop.f32.mrf.mxu0 }
 0x1e8   : > { %2485 = vmatmul.f32.gmra.mxu1 %v5281_v18 }
 0x1e9   : > { %v1523_v7 = vpop.f32.mrf.mxu2  ;;  %v1680_v29 = vpop.f32.mrf.mxu3 }
 0x1ea   : > { %v1524_v35 = vadd.f32 %v1523_v7, %v5092_v62  ;;  %v1681_v44 = vadd.f32 %v1680_v29, %v1516_v56  ;;  %2328 = vmatmul.f32.gmra.mxu0 %v2327_v26 }
 0x1ec   : > { %v1809_v55 = vadd.f32 %v1808_v33, %v1681_v44 }
 0x1ed   : > { %v1942_v37 = vpop.f32.mrf.mxu1 }
 0x1ee   : > { %v5322_v14 = vadd.f32 %v1936_v2, %v1809_v55  ;;  %2167 = vmatmul.f32.gmra.mxu3 %v4962_v3  ;;  %2543 = vmatmul.f32.vlgmr.msra.gmra.mxu2 %v5025_v63  ;;  %v5721_v3 = vand.u32 4294901760, %v5025_v63  ;;  %v5722_v55 = vand.u32 4294901760, %v5054_v20 }
 0x1ef   : > { %v2209_v52 = vpop.f32.mrf.mxu0 }
 0x1f0   : > { %2489 = vmatmul.f32.gmra.mxu1 %v5296_v24 }
 0x1f1   : > { %v1684_v22 = vpop.f32.mrf.mxu3  ;;  %v2011_v46 = vpop.f32.mrf.mxu2 }
 0x1f2   : > { %v1685_v28 = vadd.f32 %v1684_v22, %v1524_v35  ;;  %v2012_v6 = vadd.f32 %v2011_v46, %v5114_v50  ;;  %2816 = vmatmul.f32.vlgmr.msra.gmra.mxu0 %v5013_v11 }
 0x1f4   : > { %v1814_v62 = vadd.f32 %v1813_v5, %v1685_v28 }
 0x1f5   : > { %v2430_v7 = vpop.f32.mrf.mxu1 }
 0x1f6   : > { %v5329_v33 = vadd.f32 %v1942_v37, %v1814_v62  ;;  %2548 = vmatmul.f32.gmra.mxu2 %v5054_v20  ;;  %2657 = vmatmul.f32.vlgmr.msra.gmra.mxu3 %v5721_v3 }
 0x1f7   : > { %v2217_v56 = vpop.f32.mrf.mxu0 }
 0x1f8   : > { %2913 = vmatmul.f32.vlgmr.msra.gmra.mxu1 %v5013_v11 }
 0x1f9   : > { %v2015_v2 = vpop.f32.mrf.mxu2  ;;  %v2108_v26 = vpop.f32.mrf.mxu3 }
 0x1fa   : > { %v2016_v29 = vadd.f32 %v2015_v2, %v5131_v32  ;;  %v2109_v35 = vadd.f32 %v2108_v26, %v2012_v6  ;;  %2820 = vmatmul.f32.gmra.mxu0 %v5038_v47  ;;  %v5723_v6 = vand.u32 4294901760, %v5083_v48  ;;  %v5724_v26 = vand.u32 4294901760, %v5109_v51 }
 0x1fc   : > { %v2210_v50 = vadd.f32 %v2209_v52, %v2109_v35 }
 0x1fd   : > { %v2434_v5 = vpop.f32.mrf.mxu1 }
 0x1fe   : > { %v5337_v44 = vadd.f32 %v2430_v7, %v2210_v50  ;;  %2553 = vmatmul.f32.gmra.mxu2 %v5083_v48  ;;  %2663 = vmatmul.f32.gmra.mxu3 %v5722_v55 }
 0x1ff   : > { %v2225_v63 = vpop.f32.mrf.mxu0 }
 0x200   : > { %2917 = vmatmul.f32.gmra.mxu1 %v5038_v47 }
 0x201   : > { %v2019_v11 = vpop.f32.mrf.mxu2  ;;  %v2112_v37 = vpop.f32.mrf.mxu3 }
 0x202   : > { %v2020_v22 = vadd.f32 %v2019_v11, %v5147_v39  ;;  %v2113_v32 = vadd.f32 %v2112_v37, %v2016_v29  ;;  %2824 = vmatmul.f32.gmra.mxu0 %v5068_v4 }
 0x204   : > { %v2218_v46 = vadd.f32 %v2217_v56, %v2113_v32 }
 0x205   : > { %v2438_v52 = vpop.f32.mrf.mxu1 }
 0x206   : > { %v5345_v28 = vadd.f32 %v2434_v5, %v2218_v46  ;;  %2558 = vmatmul.f32.gmra.mxu2 %v5109_v51  ;;  %2669 = vmatmul.f32.gmra.mxu3 %v5723_v6 }
 0x207   : > { %v2233_v20 = vpop.f32.mrf.mxu0 }
 0x208   : > { %2921 = vmatmul.f32.gmra.mxu1 %v5068_v4 }
 0x209   : > { %v2023_v47 = vpop.f32.mrf.mxu2  ;;  %v2116_v62 = vpop.f32.mrf.mxu3 }
 0x20a   : > { %v2024_v7 = vadd.f32 %v2023_v47, %v5163_v59  ;;  %v2117_v39 = vadd.f32 %v2116_v62, %v2020_v22  ;;  %2828 = vmatmul.f32.gmra.mxu0 %v5097_v8 }
 0x20c   : > { %v2226_v3 = vadd.f32 %v2225_v63, %v2117_v39  ;;  %v5725_v63 = vand.u32 4294901760, %v5128_v30  ;;  %v5727_v39 = vand.u32 4294901760, %v5160_v10 }
 0x20d   : > { %v2442_v56 = vpop.f32.mrf.mxu1 }
 0x20e   : > { %v5353_v2 = vadd.f32 %v2438_v52, %v2226_v3  ;;  %2563 = vmatmul.f32.gmra.mxu2 %v5128_v30  ;;  %2675 = vmatmul.f32.gmra.mxu3 %v5724_v26  ;;  %v5726_v52 = vand.u32 4294901760, %v5144_v15 }
 0x20f   : > { %v2241_v48 = vpop.f32.mrf.mxu0 }
 0x210   : > { %2925 = vmatmul.f32.gmra.mxu1 %v5097_v8 }
 0x211   : > { %v2027_v4 = vpop.f32.mrf.mxu2  ;;  %v2120_v29 = vpop.f32.mrf.mxu3 }
 0x212   : > { %v2028_v35 = vadd.f32 %v2027_v4, %v5179_v31  ;;  %v2121_v59 = vadd.f32 %v2120_v29, %v2024_v7  ;;  %2832 = vmatmul.f32.gmra.mxu0 %v5119_v17  ;;  %v5728_v29 = vand.u32 4294901760, %v5176_v13 }
 0x214   : > { %v2234_v50 = vadd.f32 %v2233_v20, %v2121_v59 }
 0x215   : > { %v2446_v5 = vpop.f32.mrf.mxu1 }
 0x216   : > { %v5361_v55 = vadd.f32 %v2442_v56, %v2234_v50  ;;  %2568 = vmatmul.f32.gmra.mxu2 %v5144_v15  ;;  %2681 = vmatmul.f32.gmra.mxu3 %v5725_v63 }
 0x217   : > { %v2249_v51 = vpop.f32.mrf.mxu0 }
 0x218   : > { %2929 = vmatmul.f32.gmra.mxu1 %v5119_v17 }
 0x219   : > { %v2031_v8 = vpop.f32.mrf.mxu2  ;;  %v2124_v11 = vpop.f32.mrf.mxu3 }
 0x21a   : > { %v2032_v37 = vadd.f32 %v2031_v8, %v5195_v49  ;;  %v2125_v31 = vadd.f32 %v2124_v11, %v2028_v35  ;;  %2836 = vmatmul.f32.gmra.mxu0 %v5136_v54 }
 0x21c   : > { %v2242_v22 = vadd.f32 %v2241_v48, %v2125_v31 }
 0x21d   : > { %v2450_v32 = vpop.f32.mrf.mxu1 }
 0x21e   : > { %v5369_v46 = vadd.f32 %v2446_v5, %v2242_v22  ;;  %2573 = vmatmul.f32.gmra.mxu2 %v5160_v10  ;;  %2687 = vmatmul.f32.gmra.mxu3 %v5726_v52  ;;  %v5731_v52 = vand.u32 4294901760, %v5208_v58 }
 0x21f   : > { %v2257_v30 = vpop.f32.mrf.mxu0 }
 0x220   : > { %2933 = vmatmul.f32.gmra.mxu1 %v5136_v54 }
 0x221   : > { %v2035_v17 = vpop.f32.mrf.mxu2  ;;  %v2128_v6 = vpop.f32.mrf.mxu3 }
 0x222   : > { %v2036_v20 = vadd.f32 %v2035_v17, %v5211_v19  ;;  %v2129_v49 = vadd.f32 %v2128_v6, %v2032_v37  ;;  %2840 = vmatmul.f32.gmra.mxu0 %v5152_v45 }
 0x224   : > { %v2250_v47 = vadd.f32 %v2249_v51, %v2129_v49  ;;  %v5729_v51 = vand.u32 4294901760, %v5192_v53 }
 0x225   : > { %v2454_v62 = vpop.f32.mrf.mxu1 }
 0x226   : > { %v5377_v7 = vadd.f32 %v2450_v32, %v2250_v47  ;;  %2578 = vmatmul.f32.gmra.mxu2 %v5176_v13  ;;  %2693 = vmatmul.f32.gmra.mxu3 %v5727_v39  ;;  %v5730_v32 = vld [vmem:[#allocation22_spill] sm:$0xff] }
 0x227   : > { %v2265_v15 = vpop.f32.mrf.mxu0  ;;  %v5732_v47 = vand.u32 4294901760, %v5730_v32 }
 0x228   : > { %2937 = vmatmul.f32.gmra.mxu1 %v5152_v45 }
 0x229   : > { %v2039_v54 = vpop.f32.mrf.mxu2  ;;  %v2132_v3 = vpop.f32.mrf.mxu3 }
 0x22a   : > { %v2040_v56 = vadd.f32 %v2039_v54, %v5229_v61  ;;  %v2133_v19 = vadd.f32 %v2132_v3, %v2036_v20  ;;  %2844 = vmatmul.f32.gmra.mxu0 %v5168_v42 }
 0x22c   : > { %v2258_v26 = vadd.f32 %v2257_v30, %v2133_v19  ;;  %v5734_v19 = vand.u32 4294901760, %v5236_v60 }
 0x22d   : > { %v2458_v48 = vpop.f32.mrf.mxu1 }
 0x22e   : > { %v5385_v4 = vadd.f32 %v2454_v62, %v2258_v26  ;;  %2583 = vmatmul.f32.gmra.mxu2 %v5192_v53  ;;  %2699 = vmatmul.f32.gmra.mxu3 %v5728_v29 }
 0x22f   : > { %v2273_v10 = vpop.f32.mrf.mxu0 }
 0x230   : > { %2941 = vmatmul.f32.gmra.mxu1 %v5168_v42 }
 0x231   : > { %v2043_v45 = vpop.f32.mrf.mxu2  ;;  %v2136_v35 = vpop.f32.mrf.mxu3 }
 0x232   : > { %v2044_v59 = vadd.f32 %v2043_v45, %v5244_v1  ;;  %v2137_v61 = vadd.f32 %v2136_v35, %v2040_v56  ;;  %2848 = vmatmul.f32.gmra.mxu0 %v5184_v36  ;;  %v5733_v56 = vld [vmem:[#allocation9_spill] sm:$0xff] }
 0x234   : > { %v2266_v50 = vadd.f32 %v2265_v15, %v2137_v61 }
 0x235   : > { %v2462_v5 = vpop.f32.mrf.mxu1 }
 0x236   : > { %v5393_v63 = vadd.f32 %v2458_v48, %v2266_v50  ;;  %2588 = vmatmul.f32.gmra.mxu2 %v5208_v58  ;;  %2705 = vmatmul.f32.gmra.mxu3 %v5729_v51 }
 0x237   : > { %v2281_v13 = vpop.f32.mrf.mxu0 }
 0x238   : > { %2945 = vmatmul.f32.gmra.mxu1 %v5184_v36 }
 0x239   : > { %v2047_v42 = vpop.f32.mrf.mxu2  ;;  %v2140_v8 = vpop.f32.mrf.mxu3 }
 0x23a   : > { %v2048_v11 = vadd.f32 %v2047_v42, %v5261_v41  ;;  %v2141_v1 = vadd.f32 %v2140_v8, %v2044_v59  ;;  %2852 = vmatmul.f32.gmra.mxu0 %v5200_v16  ;;  %v5735_v59 = vand.u32 4294901760, %v5733_v56  ;;  %v5736_v42 = vand.u32 4294901760, %v5274_v57 }
 0x23c   : > { %v2274_v37 = vadd.f32 %v2273_v10, %v2141_v1 }
 0x23d   : > { %v2466_v31 = vpop.f32.mrf.mxu1 }
 0x23e   : > { %v5401_v22 = vadd.f32 %v2462_v5, %v2274_v37  ;;  %2593 = vmatmul.f32.gmra.mxu2 %v5730_v32  ;;  %2711 = vmatmul.f32.gmra.mxu3 %v5731_v52  ;;  %v5737_v52 = vand.u32 4294901760, %v5289_v21 }
 0x23f   : > { %v2289_v53 = vpop.f32.mrf.mxu0 }
 0x240   : > { %2949 = vmatmul.f32.gmra.mxu1 %v5200_v16 }
 0x241   : > { %v2051_v36 = vpop.f32.mrf.mxu2  ;;  %v2144_v30 = vpop.f32.mrf.mxu3 }
 0x242   : > { %v2052_v17 = vadd.f32 %v2051_v36, %v5276_v0  ;;  %v2145_v41 = vadd.f32 %v2144_v30, %v2048_v11  ;;  %2856 = vmatmul.f32.gmra.mxu0 %v5216_v34 }
 0x244   : > { %v2282_v6 = vadd.f32 %v2281_v13, %v2145_v41 }
 0x245   : > { %v2470_v20 = vpop.f32.mrf.mxu1 }
 0x246   : > { %v5409_v49 = vadd.f32 %v2466_v31, %v2282_v6  ;;  %2598 = vmatmul.f32.gmra.mxu2 %v5236_v60  ;;  %2717 = vmatmul.f32.gmra.mxu3 %v5732_v47 }
 0x247   : > { %v2297_v58 = vpop.f32.mrf.mxu0 }
 0x248   : > { %2953 = vmatmul.f32.gmra.mxu1 %v5216_v34 }
 0x249   : > { %v2055_v16 = vpop.f32.mrf.mxu2  ;;  %v2148_v62 = vpop.f32.mrf.mxu3 }
 0x24a   : > { %v2056_v39 = vadd.f32 %v2055_v16, %v5291_v43  ;;  %v2149_v0 = vadd.f32 %v2148_v62, %v2052_v17  ;;  %2860 = vmatmul.f32.gmra.mxu0 %v5227_v38 }
 0x24c   : > { %v2290_v15 = vadd.f32 %v2289_v53, %v2149_v0 }
 0x24d   : > { %v2474_v54 = vpop.f32.mrf.mxu1 }
 0x24e   : > { %v5417_v3 = vadd.f32 %v2470_v20, %v2290_v15  ;;  %2603 = vmatmul.f32.gmra.mxu2 %v5733_v56  ;;  %2723 = vmatmul.f32.gmra.mxu3 %v5734_v19 }
 0x24f   : > { %v2305_v26 = vpop.f32.mrf.mxu0 }
 0x250   : > { %2957 = vmatmul.f32.gmra.mxu1 %v5227_v38 }
 0x251   : > { %v2059_v34 = vpop.f32.mrf.mxu2  ;;  %v2152_v48 = vpop.f32.mrf.mxu3 }
 0x252   : > { %v2060_v29 = vadd.f32 %v2059_v34, %v5306_v25  ;;  %v2153_v43 = vadd.f32 %v2152_v48, %v2056_v39  ;;  %2864 = vmatmul.f32.gmra.mxu0 %v5248_v27 }
 0x254   : > { %v2298_v10 = vadd.f32 %v2297_v58, %v2153_v43 }
 0x255   : > { %v2478_v45 = vpop.f32.mrf.mxu1 }
 0x256   : > { %v5425_v35 = vadd.f32 %v2474_v54, %v2298_v10  ;;  %2608 = vmatmul.f32.gmra.mxu2 %v5274_v57  ;;  %2729 = vmatmul.f32.gmra.mxu3 %v5735_v59 }
 0x257   : > { %v2313_v60 = vpop.f32.mrf.mxu0 }
 0x258   : > { %2961 = vmatmul.f32.gmra.mxu1 %v5248_v27 }
 0x259   : > { %v2063_v38 = vpop.f32.mrf.mxu2  ;;  %v2156_v61 = vpop.f32.mrf.mxu3 }
 0x25a   : > { %v2064_v50 = vadd.f32 %v2063_v38, %v5316_v9  ;;  %v2157_v25 = vadd.f32 %v2156_v61, %v2060_v29  ;;  %2868 = vmatmul.f32.gmra.mxu0 %v5266_v12 }
 0x25c   : > { %v2306_v5 = vadd.f32 %v2305_v26, %v2157_v25 }
 0x25d   : > { %v2482_v51 = vpop.f32.mrf.mxu1 }
 0x25e   : > { %v5433_v13 = vadd.f32 %v2478_v45, %v2306_v5  ;;  %2613 = vmatmul.f32.gmra.mxu2 %v5289_v21  ;;  %2735 = vmatmul.f32.gmra.mxu3 %v5736_v42 }
 0x25f   : > { %v2321_v8 = vpop.f32.mrf.mxu0 }
 0x260   : > { %2965 = vmatmul.f32.gmra.mxu1 %v5266_v12 }
 0x261   : > { %v2067_v27 = vpop.f32.mrf.mxu2  ;;  %v2160_v11 = vpop.f32.mrf.mxu3 }
 0x262   : > { %v2068_v1 = vadd.f32 %v2067_v27, %v5322_v14  ;;  %v2161_v9 = vadd.f32 %v2160_v11, %v2064_v50  ;;  %2872 = vmatmul.f32.gmra.mxu0 %v5281_v18 }
 0x264   : > { %v2314_v37 = vadd.f32 %v2313_v60, %v2161_v9 }
 0x265   : > { %v2486_v31 = vpop.f32.mrf.mxu1 }
 0x266   : > { %v5441_v32 = vadd.f32 %v2482_v51, %v2314_v37  ;;  %2618 = vmatmul.f32.gmra.mxu2 %v5304_v40  ;;  %2741 = vmatmul.f32.gmra.mxu3 %v5737_v52 }
 0x267   : > { %v2329_v57 = vpop.f32.mrf.mxu0 }
 0x268   : > { %2969 = vmatmul.f32.gmra.mxu1 %v5281_v18 }
 0x269   : > { %v2071_v12 = vpop.f32.mrf.mxu2  ;;  %v2164_v53 = vpop.f32.mrf.mxu3 }
 0x26a   : > { %v2072_v36 = vadd.f32 %v2071_v12, %v5329_v33  ;;  %v2165_v14 = vadd.f32 %v2164_v53, %v2068_v1  ;;  %2876 = vmatmul.f32.gmra.mxu0 %v5296_v24 }
 0x26c   : > { %v2322_v30 = vadd.f32 %v2321_v8, %v2165_v14 }
 0x26d   : > { %v2490_v17 = vpop.f32.mrf.mxu1 }
 0x26e   : > { %v5449_v41 = vadd.f32 %v2486_v31, %v2322_v30  ;;  %2747 = vmatmul.f32.gmra.mxu3 %v2325_v23 }
 0x26f   : > { %v2817_v21 = vpop.f32.mrf.mxu0 }
 0x270   : > { %2973 = vmatmul.f32.gmra.mxu1 %v5296_v24 }
 0x271   : > { %v2168_v6 = vpop.f32.mrf.mxu3  ;;  %v2544_v18 = vpop.f32.mrf.mxu2 }
 0x272   : > { %v2169_v20 = vadd.f32 %v2168_v6, %v2072_v36  ;;  %v2545_v62 = vadd.f32 %v2544_v18, %v5337_v44 }
 0x274   : > { %v2330_v47 = vadd.f32 %v2329_v57, %v2169_v20 }
 0x275   : > { %v2914_v58 = vpop.f32.mrf.mxu1 }
 0x276   : > { %v5454_v33 = vadd.f32 %v2490_v17, %v2330_v47 }
 0x277   : > { %v2821_v16 = vpop.f32.mrf.mxu0 }
 0x279   : > { %v2549_v39 = vpop.f32.mrf.mxu2  ;;  %v2658_v0 = vpop.f32.mrf.mxu3 }
 0x27a   : > { %v2659_v15 = vadd.f32 %v2658_v0, %v2545_v62  ;;  %v2550_v56 = vadd.f32 %v2549_v39, %v5345_v28 }
 0x27c   : > { %v2818_v54 = vadd.f32 %v2817_v21, %v2659_v15 }
 0x27d   : > { %v2918_v40 = vpop.f32.mrf.mxu1 }
 0x27e   : > { %v2915_v23 = vadd.f32 %v2914_v58, %v2818_v54 }
 0x27f   : > { %v2825_v24 = vpop.f32.mrf.mxu0 }
 0x280   : > { %v2977_v19 = vmax.f32 %v2915_v23, 0.0 }
 0x281   : > { %v2554_v26 = vpop.f32.mrf.mxu2  ;;  %v2664_v44 = vpop.f32.mrf.mxu3 }
 0x282   : > { %2993 = vst [vmem:[%s5461_s7] sm:$0xff] %v2977_v19  ;;  %v2665_v34 = vadd.f32 %v2664_v44, %v2550_v56  ;;  %v2555_v45 = vadd.f32 %v2554_v26, %v5353_v2  ;;  %v3129_v61 = vmul.f32 %v2977_v19, %v2977_v19 }
 0x284   : > { %v2822_v48 = vadd.f32 %v2821_v16, %v2665_v34 }
 0x285   : > { %v2922_v29 = vpop.f32.mrf.mxu1 }
 0x286   : > { %v2919_v43 = vadd.f32 %v2918_v40, %v2822_v48 }
 0x287   : > { %v2829_v10 = vpop.f32.mrf.mxu0 }
 0x288   : > { %v2978_v59 = vmax.f32 %v2919_v43, 0.0 }
 0x289   : > { %v2559_v60 = vpop.f32.mrf.mxu2  ;;  %v2670_v38 = vpop.f32.mrf.mxu3 }
 0x28a   : > { %2994 = vst [vmem:[%s5461_s7 + $0x8] sm:$0xff] %v2978_v59  ;;  %v3108_v50 = vadd.f32 %v2978_v59, %v2977_v19  ;;  %v3130_v25 = vmul.f32 %v2978_v59, %v2978_v59  ;;  %v2671_v5 = vadd.f32 %v2670_v38, %v2555_v45  ;;  %v2560_v31 = vadd.f32 %v2559_v60, %v5361_v55 }
 0x28c   : > { %v3123_v28 = vrot.slane %v3108_v50, 4  ;;  %v3145_v51 = vadd.f32 %v3130_v25, %v3129_v61  ;;  %v2826_v42 = vadd.f32 %v2825_v24, %v2671_v5 }
 0x28d   : > { %v2926_v8 = vpop.f32.mrf.mxu1 }
 0x28e   : > { %v3124_v27 = vadd.f32 %v3123_v28, %v3108_v50  ;;  %v3160_v11 = vrot.slane %v3145_v51, 4  ;;  %v2923_v1 = vadd.f32 %v2922_v29, %v2826_v42 }
 0x28f   : > { %v2833_v9 = vpop.f32.mrf.mxu0 }
 0x290   : > { %v3125_v37 = vrot.slane %v3124_v27, 2  ;;  %v3161_v2 = vadd.f32 %v3160_v11, %v3145_v51  ;;  %v2979_v52 = vmax.f32 %v2923_v1, 0.0 }
 0x291   : > { %v2564_v57 = vpop.f32.mrf.mxu2  ;;  %v2676_v12 = vpop.f32.mrf.mxu3 }
 0x292   : > { %v3126_v53 = vadd.f32 %v3125_v37, %v3124_v27  ;;  %v3162_v36 = vrot.slane %v3161_v2, 2  ;;  %2995 = vst [vmem:[%s5461_s7 + $0x10] sm:$0xff] %v2979_v52  ;;  %v2677_v14 = vadd.f32 %v2676_v12, %v2560_v31  ;;  %v2565_v16 = vadd.f32 %v2564_v57, %v5369_v46 }
 0x294   : > { %v3127_v30 = vrot.slane %v3126_v53, 1  ;;  %v3163_v17 = vadd.f32 %v3162_v36, %v3161_v2  ;;  %v2830_v21 = vadd.f32 %v2829_v10, %v2677_v14 }
 0x295   : > { %v2930_v6 = vpop.f32.mrf.mxu1 }
 0x296   : > { %v3164_v18 = vrot.slane %v3163_v17, 1  ;;  %v2927_v20 = vadd.f32 %v2926_v8, %v2830_v21  ;;  %v3128_v55 = vadd.f32 %v3127_v30, %v3126_v53 }
 0x297   : > { %v2837_v47 = vpop.f32.mrf.mxu0 }
 0x298   : > { %v3165_v58 = vadd.f32 %v3164_v18, %v3163_v17  ;;  %v2980_v62 = vmax.f32 %v2927_v20, 0.0 }
 0x299   : > { %v2569_v39 = vpop.f32.mrf.mxu2  ;;  %v2682_v0 = vpop.f32.mrf.mxu3 }
 0x29a   : > { %v3167_v15 = vsel %vm3166_vm0, %v3128_v55, %v3165_v58  ;;  %2996 = vst [vmem:[%s5461_s7 + $0x18] sm:$0xff] %v2980_v62  ;;  %v2683_v54 = vadd.f32 %v2682_v0, %v2565_v16  ;;  %v2570_v19 = vadd.f32 %v2569_v39, %v5377_v7 }
 0x29b   : > { %3168 = vst [vmem:[%s352_s10] sm:$0x3] %v3167_v15 }
 0x29c   : > { %v2834_v40 = vadd.f32 %v2833_v9, %v2683_v54 }
 0x29d   : > { %v2934_v23 = vpop.f32.mrf.mxu1 }
 0x29e   : > { %v2931_v24 = vadd.f32 %v2930_v6, %v2834_v40 }
 0x29f   : > { %v2841_v56 = vpop.f32.mrf.mxu0 }
 0x2a0   : > { %v2981_v26 = vmax.f32 %v2931_v24, 0.0 }
 0x2a1   : > { %v2574_v44 = vpop.f32.mrf.mxu2  ;;  %v2688_v34 = vpop.f32.mrf.mxu3 }
 0x2a2   : > { %2997 = vst [vmem:[%s5461_s7 + $0x20] sm:$0xff] %v2981_v26  ;;  %v2689_v46 = vadd.f32 %v2688_v34, %v2570_v19  ;;  %v2575_v45 = vadd.f32 %v2574_v44, %v5385_v4 }
 0x2a4   : > { %v2838_v48 = vadd.f32 %v2837_v47, %v2689_v46 }
 0x2a5   : > { %v2938_v29 = vpop.f32.mrf.mxu1 }
 0x2a6   : > { %v2935_v43 = vadd.f32 %v2934_v23, %v2838_v48 }
 0x2a7   : > { %v2845_v10 = vpop.f32.mrf.mxu0 }
 0x2a8   : > { %v2982_v59 = vmax.f32 %v2935_v43, 0.0 }
 0x2a9   : > { %v2579_v60 = vpop.f32.mrf.mxu2  ;;  %v2694_v38 = vpop.f32.mrf.mxu3 }
 0x2aa   : > { %2998 = vst [vmem:[%s5461_s7 + $0x28] sm:$0xff] %v2982_v59  ;;  %v2695_v61 = vadd.f32 %v2694_v38, %v2575_v45  ;;  %v2580_v28 = vadd.f32 %v2579_v60, %v5393_v63 }
 0x2ac   : > { %v2842_v50 = vadd.f32 %v2841_v56, %v2695_v61 }
 0x2ad   : > { %v2942_v25 = vpop.f32.mrf.mxu1 }
 0x2ae   : > { %v2939_v7 = vadd.f32 %v2938_v29, %v2842_v50 }
 0x2af   : > { %v2849_v5 = vpop.f32.mrf.mxu0 }
 0x2b0   : > { %v2983_v51 = vmax.f32 %v2939_v7, 0.0 }
 0x2b1   : > { %v2584_v42 = vpop.f32.mrf.mxu2  ;;  %v2700_v8 = vpop.f32.mrf.mxu3 }
 0x2b2   : > { %2999 = vst [vmem:[%s5461_s7 + $0x30] sm:$0xff] %v2983_v51  ;;  %v2701_v27 = vadd.f32 %v2700_v8, %v2580_v28  ;;  %v2585_v37 = vadd.f32 %v2584_v42, %v5401_v22 }
 0x2b4   : > { %v2846_v11 = vadd.f32 %v2845_v10, %v2701_v27 }
 0x2b5   : > { %v2946_v1 = vpop.f32.mrf.mxu1 }
 0x2b6   : > { %v2943_v4 = vadd.f32 %v2942_v25, %v2846_v11 }
 0x2b7   : > { %v2853_v9 = vpop.f32.mrf.mxu0 }
 0x2b8   : > { %v2984_v2 = vmax.f32 %v2943_v4, 0.0 }
 0x2b9   : > { %v2589_v31 = vpop.f32.mrf.mxu2  ;;  %v2706_v52 = vpop.f32.mrf.mxu3 }
 0x2ba   : > { %3000 = vst [vmem:[%s5461_s7 + $0x38] sm:$0xff] %v2984_v2  ;;  %v2707_v57 = vadd.f32 %v2706_v52, %v2585_v37  ;;  %v2590_v14 = vadd.f32 %v2589_v31, %v5409_v49 }
 0x2bc   : > { %v2850_v12 = vadd.f32 %v2849_v5, %v2707_v57 }
 0x2bd   : > { %v2950_v53 = vpop.f32.mrf.mxu1 }
 0x2be   : > { %v2947_v63 = vadd.f32 %v2946_v1, %v2850_v12 }
 0x2bf   : > { %v2857_v36 = vpop.f32.mrf.mxu0 }
 0x2c0   : > { %v2985_v30 = vmax.f32 %v2947_v63, 0.0 }
 0x2c1   : > { %v2594_v17 = vpop.f32.mrf.mxu2  ;;  %v2712_v21 = vpop.f32.mrf.mxu3 }
 0x2c2   : > { %3001 = vst [vmem:[%s5461_s7 + $0x40] sm:$0xff] %v2985_v30  ;;  %v2713_v6 = vadd.f32 %v2712_v21, %v2590_v14  ;;  %v2595_v47 = vadd.f32 %v2594_v17, %v5417_v3 }
 0x2c4   : > { %v2854_v18 = vadd.f32 %v2853_v9, %v2713_v6 }
 0x2c5   : > { %v2954_v20 = vpop.f32.mrf.mxu1 }
 0x2c6   : > { %v2951_v22 = vadd.f32 %v2950_v53, %v2854_v18 }
 0x2c7   : > { %v2861_v58 = vpop.f32.mrf.mxu0 }
 0x2c8   : > { %v2986_v55 = vmax.f32 %v2951_v22, 0.0 }
 0x2c9   : > { %v2599_v16 = vpop.f32.mrf.mxu2  ;;  %v2718_v62 = vpop.f32.mrf.mxu3 }
 0x2ca   : > { %3002 = vst [vmem:[%s5461_s7 + $0x48] sm:$0xff] %v2986_v55  ;;  %v2719_v39 = vadd.f32 %v2718_v62, %v2595_v47  ;;  %v2600_v54 = vadd.f32 %v2599_v16, %v5425_v35 }
 0x2cc   : > { %v2858_v0 = vadd.f32 %v2857_v36, %v2719_v39 }
 0x2cd   : > { %v2958_v15 = vpop.f32.mrf.mxu1 }
 0x2ce   : > { %v2955_v49 = vadd.f32 %v2954_v20, %v2858_v0 }
 0x2cf   : > { %v2865_v19 = vpop.f32.mrf.mxu0 }
 0x2d0   : > { %v2987_v40 = vmax.f32 %v2955_v49, 0.0 }
 0x2d1   : > { %v2604_v23 = vpop.f32.mrf.mxu2  ;;  %v2724_v24 = vpop.f32.mrf.mxu3 }
 0x2d2   : > { %3003 = vst [vmem:[%s5461_s7 + $0x50] sm:$0xff] %v2987_v40  ;;  %v2725_v56 = vadd.f32 %v2724_v24, %v2600_v54  ;;  %v2605_v34 = vadd.f32 %v2604_v23, %v5433_v13 }
 0x2d4   : > { %v2862_v26 = vadd.f32 %v2861_v58, %v2725_v56 }
 0x2d5   : > { %v2962_v3 = vpop.f32.mrf.mxu1 }
 0x2d6   : > { %v2959_v44 = vadd.f32 %v2958_v15, %v2862_v26 }
 0x2d7   : > { %v2869_v45 = vpop.f32.mrf.mxu0 }
 0x2d8   : > { %v2988_v46 = vmax.f32 %v2959_v44, 0.0 }
 0x2d9   : > { %v2609_v48 = vpop.f32.mrf.mxu2  ;;  %v2730_v29 = vpop.f32.mrf.mxu3 }
 0x2da   : > { %3004 = vst [vmem:[%s5461_s7 + $0x58] sm:$0xff] %v2988_v46  ;;  %v2731_v43 = vadd.f32 %v2730_v29, %v2605_v34  ;;  %v2610_v60 = vadd.f32 %v2609_v48, %v5441_v32 }
 0x2dc   : > { %v2866_v10 = vadd.f32 %v2865_v19, %v2731_v43 }
 0x2dd   : > { %v2966_v59 = vpop.f32.mrf.mxu1 }
 0x2de   : > { %v2963_v35 = vadd.f32 %v2962_v3, %v2866_v10 }
 0x2df   : > { %v2873_v5 = vpop.f32.mrf.mxu0 }
 0x2e0   : > { %v2989_v38 = vmax.f32 %v2963_v35, 0.0 }
 0x2e1   : > { %v2736_v61 = vpop.f32.mrf.mxu3  ;;  %v2614_v25 = vpop.f32.mrf.mxu2 }
 0x2e2   : > { %3005 = vst [vmem:[%s5461_s7 + $0x60] sm:$0xff] %v2989_v38  ;;  %v2737_v50 = vadd.f32 %v2736_v61, %v2610_v60  ;;  %v2615_v28 = vadd.f32 %v2614_v25, %v5449_v41 }
 0x2e4   : > { %v2870_v7 = vadd.f32 %v2869_v45, %v2737_v50 }
 0x2e5   : > { %v2970_v8 = vpop.f32.mrf.mxu1 }
 0x2e6   : > { %v2967_v13 = vadd.f32 %v2966_v59, %v2870_v7 }
 0x2e7   : > { %v2877_v2 = vpop.f32.mrf.mxu0 }
 0x2e8   : > { %v2990_v51 = vmax.f32 %v2967_v13, 0.0 }
 0x2e9   : > { %v2742_v42 = vpop.f32.mrf.mxu3  ;;  %v2619_v1 = vpop.f32.mrf.mxu2 }
 0x2ea   : > { %3006 = vst [vmem:[%s5461_s7 + $0x68] sm:$0xff] %v2990_v51  ;;  %v2743_v27 = vadd.f32 %v2742_v42, %v2615_v28  ;;  %v2620_v4 = vadd.f32 %v2619_v1, %v5454_v33 }
 0x2ec   : > { %v2874_v11 = vadd.f32 %v2873_v5, %v2743_v27 }
 0x2ed   : > { %v2974_v52 = vpop.f32.mrf.mxu1 }
 0x2ee   : > { %v2971_v32 = vadd.f32 %v2970_v8, %v2874_v11 }
 0x2f0   : > { %v2991_v9 = vmax.f32 %v2971_v32, 0.0 }
 0x2f1   : > { %v2748_v37 = vpop.f32.mrf.mxu3 }
 0x2f2   : > { %3007 = vst [vmem:[%s5461_s7 + $0x70] sm:$0xff] %v2991_v9  ;;  %v2749_v31 = vadd.f32 %v2748_v37, %v2620_v4 }
 0x2f4   : > { %v2878_v57 = vadd.f32 %v2877_v2, %v2749_v31 }
 0x2f6   : > { %v2975_v12 = vadd.f32 %v2974_v52, %v2878_v57 }
 0x2f8   : > { %v2992_v41 = vmax.f32 %v2975_v12, 0.0 }
 0x2fa   : > { %3008 = vst [vmem:[%s5461_s7 + $0x78] sm:$0xff] %v2992_v41 }
 0x2fb PF: > { %s16_s20 = sadd.s32 1, %s3412_s20   ;;  %s5738_s18 = smov %s3408_s19 }
 0x2fc   : > { %p13_p5 = scmp.ge.s32.totalorder %s16_s20, 4   ;;  %s5739_s19 = smov %s5741_s21 }
 0x2fe   :  { %15 = sbr.rel (!%p13_p5) target bundleno = 2 (0x2), region = 81 }

</bundles_post_ra>
